<compile_context>
chip_gen: v5e
topology: v5e:2x2
jax: 0.10.0
libtpu: 0.0.40
codegen_flags: <defaults>
</compile_context>

<pallas_src>
import functools

import jax
import jax.numpy as jnp
from jax import lax
from jax.experimental import pallas as pl
from jax.experimental.pallas import tpu as pltpu


def _round_up(x, m):
    return ((x + m - 1) // m) * m


@functools.lru_cache(maxsize=None)
def _vmem_budget_bytes():
    """Generation-aware scoped-VMEM budget (~3/4 of physical, capped at 100 MiB)."""
    cap = 64 * 1024 * 1024  # conservative fallback (v7x physical VMEM)
    try:
        cap = int(pltpu.get_tpu_info().vmem_capacity_bytes)
    except Exception:
        pass
    return int(min(cap * 3 // 4, 100 * 1024 * 1024))


def _pick_tile(dim, target, align):
    """Largest multiple of `align` <= target that evenly divides `dim`, else `dim`."""
    if dim <= target:
        return dim
    t = (min(target, dim) // align) * align
    while t >= align:
        if dim % t == 0:
            return t
        t -= align
    return dim


# ----------------------------------------------------------------------------
# Kernel 1: dense linear  y = x @ W^T (+ b)
#   x: (M, K), w: (Nout, K)  [PyTorch nn.Linear layout], b: (Nout,) or None
# ----------------------------------------------------------------------------
_TRANS_B_DIMS = (((1,), (1,)), ((), ()))  # contract last dim of x with last of w


def _linear_res_kernel(x_ref, w_ref, o_ref):
    o_ref[...] = lax.dot_general(
        x_ref[...], w_ref[...], _TRANS_B_DIMS,
        preferred_element_type=jnp.float32).astype(o_ref.dtype)


def _linear_res_bias_kernel(x_ref, w_ref, b_ref, o_ref):
    acc = lax.dot_general(
        x_ref[...], w_ref[...], _TRANS_B_DIMS,
        preferred_element_type=jnp.float32)
    o_ref[...] = (acc + b_ref[...].astype(jnp.float32)).astype(o_ref.dtype)


def _linear_tiled_kernel(x_ref, w_ref, o_ref, acc_ref):
    @pl.when(pl.program_id(2) == 0)
    def _():
        acc_ref[...] = jnp.zeros_like(acc_ref)

    acc_ref[...] += lax.dot_general(
        x_ref[...], w_ref[...], _TRANS_B_DIMS, preferred_element_type=jnp.float32)

    @pl.when(pl.program_id(2) == pl.num_programs(2) - 1)
    def _():
        o_ref[...] = acc_ref[...].astype(o_ref.dtype)


def _linear_tiled_bias_kernel(x_ref, w_ref, b_ref, o_ref, acc_ref):
    @pl.when(pl.program_id(2) == 0)
    def _():
        acc_ref[...] = jnp.zeros_like(acc_ref)

    acc_ref[...] += lax.dot_general(
        x_ref[...], w_ref[...], _TRANS_B_DIMS, preferred_element_type=jnp.float32)

    @pl.when(pl.program_id(2) == pl.num_programs(2) - 1)
    def _():
        o_ref[...] = (acc_ref[...] + b_ref[...].astype(jnp.float32)).astype(o_ref.dtype)


def linear(x2d, w, b=None, *, tm_target=512, tn_target=512, tk_target=1024):
    """x2d: (M, K), w: (Nout, K) [PyTorch layout], b: (Nout,) or None -> (M, Nout)."""
    M, K = x2d.shape
    Nout = w.shape[0]
    x_isz = jnp.dtype(x2d.dtype).itemsize
    w_isz = jnp.dtype(w.dtype).itemsize
    budget = _vmem_budget_bytes()
    b2d = None if b is None else b.reshape(1, Nout)

    # ---- Path 1 (preferred): whole weight VMEM-resident, grid over M only.
    def _resident_bytes(tm):
        return (2 * tm * K * x_isz          # double-buffered activation blocks
                + 2 * tm * Nout * x_isz     # double-buffered output blocks
                + 2 * Nout * K * w_isz      # resident weight (2x safety margin)
                + tm * Nout * 4             # f32 matmul temporary
                + 2 * Nout * 4)             # bias

    tm = max(8, (min(tm_target, _round_up(M, 8)) // 8) * 8)
    while tm > 8 and _resident_bytes(tm) > budget:
        tm = max(8, ((tm // 2) // 8) * 8)

    if _resident_bytes(tm) <= budget:
        grid = (pl.cdiv(M, tm),)
        x_spec = pl.BlockSpec((tm, K), lambda i: (i, 0))
        w_spec = pl.BlockSpec((Nout, K), lambda i: (0, 0))   # constant -> stays resident
        o_spec = pl.BlockSpec((tm, Nout), lambda i: (i, 0))
        if b is None:
            kernel, in_specs, args = _linear_res_kernel, [x_spec, w_spec], (x2d, w)
        else:
            kernel = _linear_res_bias_kernel
            in_specs = [x_spec, w_spec, pl.BlockSpec((1, Nout), lambda i: (0, 0))]
            args = (x2d, w, b2d)
        return pl.pallas_call(
            kernel,
            out_shape=jax.ShapeDtypeStruct((M, Nout), x2d.dtype),
            grid_spec=pltpu.PrefetchScalarGridSpec(
                num_scalar_prefetch=0, grid=grid,
                in_specs=in_specs, out_specs=o_spec),
            compiler_params=pltpu.CompilerParams(
                dimension_semantics=("parallel",),
                vmem_limit_bytes=budget),
        )(*args)

    # ---- Path 2 (fallback: weight too large for VMEM): M/N/K tiled accumulator.
    tm = _pick_tile(M, tm_target, 8)
    tn = _pick_tile(Nout, tn_target, 128)
    tk = _pick_tile(K, tk_target, 128)
    grid = (M // tm, Nout // tn, K // tk)
    x_spec = pl.BlockSpec((tm, tk), lambda i, j, k: (i, k))
    w_spec = pl.BlockSpec((tn, tk), lambda i, j, k: (j, k))
    o_spec = pl.BlockSpec((tm, tn), lambda i, j, k: (i, j))
    if b is None:
        kernel, in_specs, args = _linear_tiled_kernel, [x_spec, w_spec], (x2d, w)
    else:
        kernel = _linear_tiled_bias_kernel
        in_specs = [x_spec, w_spec, pl.BlockSpec((1, tn), lambda i, j, k: (0, j))]
        args = (x2d, w, b2d)
    return pl.pallas_call(
        kernel,
        out_shape=jax.ShapeDtypeStruct((M, Nout), x2d.dtype),
        grid_spec=pltpu.PrefetchScalarGridSpec(
            num_scalar_prefetch=0, grid=grid,
            in_specs=in_specs, out_specs=o_spec,
            scratch_shapes=[pltpu.VMEM((tm, tn), jnp.float32)]),
        compiler_params=pltpu.CompilerParams(
            dimension_semantics=("parallel", "parallel", "arbitrary"),
            vmem_limit_bytes=budget),
    )(*args)


# ----------------------------------------------------------------------------
# Kernel 2: flash-style (online softmax) multi-head attention.
#   Input qkv buffer: (B, N, 3, H, hd).  Output: (B, N, C) with C = H*hd.
#   Grid: (B, q_tiles, kv_tiles); all H heads handled per grid step.
# ----------------------------------------------------------------------------
def _flash_attn_kernel(q_ref, k_ref, v_ref, o_ref, qs_sc, m_sc, l_sc, acc_sc, *,
                       scale, seq_len, tk_size):
    ki = pl.program_id(2)

    @pl.when(ki == 0)
    def _():
        # Q block is DMA-resident across the whole kv loop: relayout to head-major
        # and apply the softmax scale exactly once per q-tile (hoisted).
        qs_sc[...] = (jnp.swapaxes(q_ref[...], 0, 1) * scale).astype(qs_sc.dtype)
        m_sc[...] = jnp.full_like(m_sc, -jnp.inf)
        l_sc[...] = jnp.zeros_like(l_sc)
        acc_sc[...] = jnp.zeros_like(acc_sc)

    masked = (seq_len % tk_size) != 0   # static: padded KV tile needs masking

    k = jnp.swapaxes(k_ref[...], 0, 1)           # (H, tk, hd), native dtype
    v_raw = v_ref[...]                           # (tk, H, hd)
    if masked:
        # Zero padded V rows so exp(-inf)=0 weights never multiply garbage bits.
        row = ki * tk_size + lax.broadcasted_iota(jnp.int32, v_raw.shape, 0)
        v_raw = jnp.where(row < seq_len, v_raw, jnp.zeros_like(v_raw))
    v = jnp.swapaxes(v_raw, 0, 1)                # (H, tk, hd)

    # s[h,q,k] = sum_d q_scaled[h,q,d] * k[h,k,d]  -- K is never transposed;
    # MXU fed in the caller's dtype (bf16 if inputs are bf16) with f32 accum.
    s = jnp.einsum('hqd,hkd->hqk', qs_sc[...], k,
                   preferred_element_type=jnp.float32)   # (H, tq, tk) f32

    if masked:
        col = ki * tk_size + lax.broadcasted_iota(jnp.int32, s.shape, 2)
        s = jnp.where(col < seq_len, s, -jnp.inf)

    m_prev = m_sc[...]                                    # (H, tq) lane-dense state
    m_new = jnp.maximum(m_prev, jnp.max(s, axis=-1))
    alpha = jnp.exp(m_prev - m_new)
    p = jnp.exp(s - m_new[..., None])                     # f32 softmax math
    l_sc[...] = alpha * l_sc[...] + jnp.sum(p, axis=-1)
    pv = jnp.einsum('hqk,hkd->hqd', p.astype(v.dtype), v,
                    preferred_element_type=jnp.float32)   # (H, tq, hd)
    acc_sc[...] = alpha[..., None] * acc_sc[...] + pv
    m_sc[...] = m_new
    # attn_drop(p=0.0) is the identity -> no-op.

    @pl.when(ki == pl.num_programs(2) - 1)
    def _():
        out = acc_sc[...] / l_sc[...][..., None]          # exact normalization
        # One relayout per q-tile at finalize, then a lane-dense (tq, C) store.
        o_ref[...] = jnp.swapaxes(out, 0, 1).reshape(o_ref.shape).astype(o_ref.dtype)


def flash_attention(qkv5, scale, *, tq_target=128, tk_target=128):
    """qkv5: (B, N, 3, H, hd) -> (B, N, H*hd)."""
    B, N, three, H, hd = qkv5.shape
    assert three == 3
    C = H * hd
    tq = N if N <= tq_target else tq_target
    tk = N if N <= tk_target else tk_target
    grid = (B, pl.cdiv(N, tq), pl.cdiv(N, tk))

    q_spec = pl.BlockSpec((None, tq, None, H, hd), lambda b, qi, ki: (b, qi, 0, 0, 0))
    k_spec = pl.BlockSpec((None, tk, None, H, hd), lambda b, qi, ki: (b, ki, 1, 0, 0))
    v_spec = pl.BlockSpec((None, tk, None, H, hd), lambda b, qi, ki: (b, ki, 2, 0, 0))
    o_spec = pl.BlockSpec((None, tq, C), lambda b, qi, ki: (b, qi, 0))

    kernel = functools.partial(_flash_attn_kernel, scale=scale, seq_len=N, tk_size=tk)
    return pl.pallas_call(
        kernel,
        out_shape=jax.ShapeDtypeStruct((B, N, C), qkv5.dtype),
        grid_spec=pltpu.PrefetchScalarGridSpec(
            num_scalar_prefetch=0,
            grid=grid,
            in_specs=[q_spec, k_spec, v_spec],
            out_specs=o_spec,
            scratch_shapes=[
                pltpu.VMEM((H, tq, hd), qkv5.dtype),   # hoisted scaled, head-major Q
                pltpu.VMEM((H, tq), jnp.float32),      # running max m (lane-dense)
                pltpu.VMEM((H, tq), jnp.float32),      # running denom l (lane-dense)
                pltpu.VMEM((H, tq, hd), jnp.float32),  # output accumulator
            ],
        ),
        compiler_params=pltpu.CompilerParams(
            dimension_semantics=("parallel", "parallel", "arbitrary"),
            vmem_limit_bytes=_vmem_budget_bytes()),
    )(qkv5, qkv5, qkv5)


# ----------------------------------------------------------------------------
# Full Attention forward (qkv_bias=False, qk_norm=False, dropouts=0.0)
# ----------------------------------------------------------------------------
def attention_forward(x, params, num_heads):
    B, N, C = x.shape
    assert C % num_heads == 0
    head_dim = C // num_heads
    scale = head_dim ** (-0.5)

    x2d = x.reshape(B * N, C)
    # QKV projection (qkv_bias=False by default); weights in PyTorch (out,in) layout.
    qkv = linear(x2d, params["w_qkv"], params.get("b_qkv"))   # (B*N, 3C)
    qkv5 = qkv.reshape(B, N, 3, num_heads, head_dim)          # free reshape, no permute
    # q_norm / k_norm are nn.Identity (qk_norm=False).
    o = flash_attention(qkv5, scale)                          # (B, N, C), no transpose
    y = linear(o.reshape(B * N, C), params["w_proj"], params["b_proj"])
    # proj_drop(p=0.0) is the identity.
    return y.reshape(B, N, C)
# TODO(synk): attn_drop/proj_drop with p>0 and qk_norm=True (LayerNorm on q/k) are
# not implemented; the module defaults make them identities.


# Pure-JAX reference for verification
def attention_reference(x, params, num_heads):
    B, N, C = x.shape
    hd = C // num_heads
    scale = hd ** (-0.5)
    qkv = x @ params["w_qkv"].T
    if params.get("b_qkv") is not None:
        qkv = qkv + params["b_qkv"]
    qkv = qkv.reshape(B, N, 3, num_heads, hd).transpose(2, 0, 3, 1, 4)
    q, k, v = qkv[0], qkv[1], qkv[2]
    attn = jax.nn.softmax((q * scale) @ jnp.swapaxes(k, -2, -1), axis=-1)
    o = jnp.swapaxes(attn @ v, 1, 2).reshape(B, N, C)
    return o @ params["w_proj"].T + params["b_proj"]


def _run_case(key, *, B, N, C, num_heads, dtype, tol):
    kx, kqkv, kproj, kb = jax.random.split(key, 4)
    x = jax.random.normal(kx, (B, N, C), dtype=jnp.float32)
    params = {
        # PyTorch nn.Linear layout: (out_features, in_features)
        "w_qkv": jax.random.normal(kqkv, (3 * C, C), dtype=jnp.float32) * 0.05,
        "w_proj": jax.random.normal(kproj, (C, C), dtype=jnp.float32) * 0.05,
        "b_proj": jax.random.normal(kb, (C,), dtype=jnp.float32) * 0.01,
    }
    if dtype != jnp.float32:
        x = x.astype(dtype)
        params = jax.tree_util.tree_map(lambda a: a.astype(dtype), params)

    x32 = x.astype(jnp.float32)
    p32 = jax.tree_util.tree_map(lambda a: a.astype(jnp.float32), params)
    ref = attention_reference(x32, p32, num_heads)

    fwd = jax.jit(attention_forward, static_argnums=2)
    out = jax.block_until_ready(fwd(x, params, num_heads))
    assert out.shape == (B, N, C)
    out32 = out.astype(jnp.float32)
    err = float(jnp.max(jnp.abs(out32 - ref)))
    assert jnp.allclose(out32, ref, atol=tol, rtol=tol), (B, N, C, num_heads, str(dtype), err)


if __name__ == "__main__":
    # Match kernel and XLA-reference matmul numerics so the checks are tight.
    jax.config.update("jax_default_matmul_precision", "highest")

    key = jax.random.PRNGKey(0)
    k1, k2, k3 = jax.random.split(key, 3)

    # Case 1: small shapes, module-default num_heads=8, f32.
    _run_case(k1, B=2, N=8, C=64, num_heads=8, dtype=jnp.float32, tol=2e-3)
    # Case 2: multi-tile sequence with N not divisible by the KV tile (exercises the
    # multi-step online-softmax recurrence and the padded-KV masking path), f32.
    _run_case(k2, B=2, N=200, C=128, num_heads=2, dtype=jnp.float32, tol=2e-3)
    # Case 3: bf16 activations/weights feed the MXU (f32 accumulation), loose check.
    _run_case(k3, B=2, N=8, C=64, num_heads=8, dtype=jnp.bfloat16, tol=1e-1)

    print("KERNEL_OK")
</pallas_src>

<mosaic_0001>
module attributes {stable_mosaic.version = 11 : i64} {
  func.func @_linear_res_kernel(%arg0: i32, %arg1: memref<16x64xf32, #tpu.memory_space<vmem>>, %arg2: memref<192x64xf32, #tpu.memory_space<vmem>>, %arg3: memref<16x192xf32, #tpu.memory_space<vmem>>) attributes {dimension_semantics = [#tpu.dimension_semantics<parallel>], iteration_bounds = array<i64: 1>, scalar_prefetch = 0 : i64, scratch_operands = 0 : i64, tpu.core_type = #tpu.core_type<tc>, window_params = [{transform_indices = @transform_0, window_bounds = array<i64: 16, 64>}, {pipeline_mode = #tpu.pipeline_mode<synchronous>, transform_indices = @transform_1, window_bounds = array<i64: 192, 64>}, {transform_indices = @transform_2, window_bounds = array<i64: 16, 192>}]} {
    %c0 = arith.constant 0 : index
    %c0_0 = arith.constant 0 : index
    %0 = vector.load %arg1[%c0, %c0_0] : memref<16x64xf32, #tpu.memory_space<vmem>>, vector<16x64xf32>
    %c0_1 = arith.constant 0 : index
    %c0_2 = arith.constant 0 : index
    %1 = vector.load %arg2[%c0_1, %c0_2] : memref<192x64xf32, #tpu.memory_space<vmem>>, vector<192x64xf32>
    %cst = arith.constant dense<0.000000e+00> : vector<16x192xf32>
    %2 = tpu.matmul %0, %1, %cst {dimension_numbers = #tpu.dot_dimension_numbers<[1], [1], [0], [0], [0, 0, 1, 0], [], []>, precision = #tpu.contract_precision<fp32>} : vector<16x64xf32>, vector<192x64xf32>, vector<16x192xf32> -> vector<16x192xf32>
    %c0_3 = arith.constant 0 : index
    %c0_4 = arith.constant 0 : index
    %3 = vector.load %arg3[%c0_3, %c0_4] : memref<16x192xf32, #tpu.memory_space<vmem>>, vector<16x192xf32>
    tpu.vector_store %arg3[%c0_3, %c0_4], %2 {strides = array<i32>} : memref<16x192xf32, #tpu.memory_space<vmem>>, vector<16x192xf32>,
    return
  }
  func.func @transform_0(%arg0: i32) -> (i32, i32) {
    %c0_i32 = arith.constant 0 : i32
    %c0_i32_0 = arith.constant 0 : i32
    return %arg0, %c0_i32 : i32, i32
  }
  func.func @transform_1(%arg0: i32) -> (i32, i32) {
    %c0_i32 = arith.constant 0 : i32
    %c0_i32_0 = arith.constant 0 : i32
    %c0_i32_1 = arith.constant 0 : i32
    return %c0_i32, %c0_i32_0 : i32, i32
  }
  func.func @transform_2(%arg0: i32) -> (i32, i32) {
    %c0_i32 = arith.constant 0 : i32
    %c0_i32_0 = arith.constant 0 : i32
    return %arg0, %c0_i32 : i32, i32
  }
}

module attributes {stable_mosaic.version = 11 : i64} {
  func.func @_flash_attn_kernel(%arg0: i32, %arg1: i32, %arg2: i32, %arg3: memref<1x8x1x8x8xf32, #tpu.memory_space<vmem>>, %arg4: memref<1x8x1x8x8xf32, #tpu.memory_space<vmem>>, %arg5: memref<1x8x1x8x8xf32, #tpu.memory_space<vmem>>, %arg6: memref<1x8x64xf32, #tpu.memory_space<vmem>>, %arg7: memref<8x8x8xf32, #tpu.memory_space<vmem>>, %arg8: memref<8x8xf32, #tpu.memory_space<vmem>>, %arg9: memref<8x8xf32, #tpu.memory_space<vmem>>, %arg10: memref<8x8x8xf32, #tpu.memory_space<vmem>>) attributes {dimension_semantics = [#tpu.dimension_semantics<parallel>, #tpu.dimension_semantics<parallel>, #tpu.dimension_semantics<arbitrary>], iteration_bounds = array<i64: 2, 1, 1>, scalar_prefetch = 0 : i64, scratch_operands = 4 : i64, tpu.core_type = #tpu.core_type<tc>, window_params = [{transform_indices = @transform_0, window_bounds = array<i64: 1, 8, 1, 8, 8>}, {transform_indices = @transform_1, window_bounds = array<i64: 1, 8, 1, 8, 8>}, {transform_indices = @transform_2, window_bounds = array<i64: 1, 8, 1, 8, 8>}, {transform_indices = @transform_3, window_bounds = array<i64: 1, 8, 64>}]} {
    %c0_i32 = arith.constant 0 : i32
    %0 = arith.cmpi eq, %arg2, %c0_i32 : i32
    %1 = arith.extui %0 : i1 to i32
    %c0_i32_0 = arith.constant 0 : i32
    %2 = arith.cmpi ne, %1, %c0_i32_0 : i32
    scf.if %2 {
      %c0_32 = arith.constant 0 : index
      %c0_33 = arith.constant 0 : index
      %c0_34 = arith.constant 0 : index
      %c0_35 = arith.constant 0 : index
      %c0_36 = arith.constant 0 : index
      %36 = vector.load %arg3[%c0_32, %c0_33, %c0_34, %c0_35, %c0_36] : memref<1x8x1x8x8xf32, #tpu.memory_space<vmem>>, vector<1x8x1x8x8xf32>
      %37 = vector.shape_cast %36 : vector<1x8x1x8x8xf32> to vector<8x8x8xf32>
      %38 = tpu.transpose %37, [1, 0, 2] : vector<8x8x8xf32> -> vector<8x8x8xf32>
      %cst_37 = arith.constant 0.353553385 : f32
      %39 = vector.broadcast %cst_37 : f32 to vector<8x8x8xf32>
      %40 = arith.mulf %38, %39 : vector<8x8x8xf32>
      %c0_38 = arith.constant 0 : index
      %c0_39 = arith.constant 0 : index
      %c0_40 = arith.constant 0 : index
      %41 = vector.load %arg7[%c0_38, %c0_39, %c0_40] : memref<8x8x8xf32, #tpu.memory_space<vmem>>, vector<8x8x8xf32>
      tpu.vector_store %arg7[%c0_38, %c0_39, %c0_40], %40 {strides = array<i32>} : memref<8x8x8xf32, #tpu.memory_space<vmem>>, vector<8x8x8xf32>,
      %cst_41 = arith.constant 0xFF800000 : f32
      %42 = vector.broadcast %cst_41 : f32 to vector<8x8xf32>
      %c0_42 = arith.constant 0 : index
      %c0_43 = arith.constant 0 : index
      %43 = vector.load %arg8[%c0_42, %c0_43] : memref<8x8xf32, #tpu.memory_space<vmem>>, vector<8x8xf32>
      tpu.vector_store %arg8[%c0_42, %c0_43], %42 {strides = array<i32>} : memref<8x8xf32, #tpu.memory_space<vmem>>, vector<8x8xf32>,
      %cst_44 = arith.constant 0.000000e+00 : f32
      %44 = vector.broadcast %cst_44 : f32 to vector<8x8xf32>
      %c0_45 = arith.constant 0 : index
      %c0_46 = arith.constant 0 : index
      %45 = vector.load %arg9[%c0_45, %c0_46] : memref<8x8xf32, #tpu.memory_space<vmem>>, vector<8x8xf32>
      tpu.vector_store %arg9[%c0_45, %c0_46], %44 {strides = array<i32>} : memref<8x8xf32, #tpu.memory_space<vmem>>, vector<8x8xf32>,
      %cst_47 = arith.constant 0.000000e+00 : f32
      %46 = vector.broadcast %cst_47 : f32 to vector<8x8x8xf32>
      %c0_48 = arith.constant 0 : index
      %c0_49 = arith.constant 0 : index
      %c0_50 = arith.constant 0 : index
      %47 = vector.load %arg10[%c0_48, %c0_49, %c0_50] : memref<8x8x8xf32, #tpu.memory_space<vmem>>, vector<8x8x8xf32>
      tpu.vector_store %arg10[%c0_48, %c0_49, %c0_50], %46 {strides = array<i32>} : memref<8x8x8xf32, #tpu.memory_space<vmem>>, vector<8x8x8xf32>,
    } else {
    }
    %c0 = arith.constant 0 : index
    %c0_1 = arith.constant 0 : index
    %c0_2 = arith.constant 0 : index
    %c0_3 = arith.constant 0 : index
    %c0_4 = arith.constant 0 : index
    %3 = vector.load %arg4[%c0, %c0_1, %c0_2, %c0_3, %c0_4] : memref<1x8x1x8x8xf32, #tpu.memory_space<vmem>>, vector<1x8x1x8x8xf32>
    %4 = vector.shape_cast %3 : vector<1x8x1x8x8xf32> to vector<8x8x8xf32>
    %5 = tpu.transpose %4, [1, 0, 2] : vector<8x8x8xf32> -> vector<8x8x8xf32>
    %c0_5 = arith.constant 0 : index
    %c0_6 = arith.constant 0 : index
    %c0_7 = arith.constant 0 : index
    %c0_8 = arith.constant 0 : index
    %c0_9 = arith.constant 0 : index
    %6 = vector.load %arg5[%c0_5, %c0_6, %c0_7, %c0_8, %c0_9] : memref<1x8x1x8x8xf32, #tpu.memory_space<vmem>>, vector<1x8x1x8x8xf32>
    %7 = vector.shape_cast %6 : vector<1x8x1x8x8xf32> to vector<8x8x8xf32>
    %8 = tpu.transpose %7, [1, 0, 2] : vector<8x8x8xf32> -> vector<8x8x8xf32>
    %c0_10 = arith.constant 0 : index
    %c0_11 = arith.constant 0 : index
    %c0_12 = arith.constant 0 : index
    %9 = vector.load %arg7[%c0_10, %c0_11, %c0_12] : memref<8x8x8xf32, #tpu.memory_space<vmem>>, vector<8x8x8xf32>
    "tpu.trace_start"() <{level = 10 : i32, message = "hqd,hkd->hqk"}> : () -> ()
    %cst = arith.constant dense<0.000000e+00> : vector<8x8x8xf32>
    %10 = tpu.matmul %9, %5, %cst {dimension_numbers = #tpu.dot_dimension_numbers<[2], [2], [1], [1], [0, 0, 0, 1, 1, 1], [0], [0]>, precision = #tpu.contract_precision<fp32>} : vector<8x8x8xf32>, vector<8x8x8xf32>, vector<8x8x8xf32> -> vector<8x8x8xf32>
    "tpu.trace_stop"() : () -> ()
    %c0_13 = arith.constant 0 : index
    %c0_14 = arith.constant 0 : index
    %11 = vector.load %arg8[%c0_13, %c0_14] : memref<8x8xf32, #tpu.memory_space<vmem>>, vector<8x8xf32>
    %cst_15 = arith.constant dense<0xFF800000> : vector<8x8xf32>
    %12 = vector.multi_reduction <maximumf>, %10, %cst_15 [2] : vector<8x8x8xf32> to vector<8x8xf32>
    %13 = arith.maximumf %11, %12 : vector<8x8xf32>
    %14 = arith.subf %11, %13 : vector<8x8xf32>
    %15 = math.exp %14 : vector<8x8xf32>
    %16 = vector.shape_cast %13 : vector<8x8xf32> to vector<8x8x1xf32>
    %17 = vector.broadcast %16 : vector<8x8x1xf32> to vector<8x8x8xf32>
    %18 = arith.subf %10, %17 : vector<8x8x8xf32>
    %19 = math.exp %18 : vector<8x8x8xf32>
    %c0_16 = arith.constant 0 : index
    %c0_17 = arith.constant 0 : index
    %20 = vector.load %arg9[%c0_16, %c0_17] : memref<8x8xf32, #tpu.memory_space<vmem>>, vector<8x8xf32>
    %21 = arith.mulf %15, %20 : vector<8x8xf32>
    %cst_18 = arith.constant dense<0.000000e+00> : vector<8x8xf32>
    %22 = vector.multi_reduction <add>, %19, %cst_18 [2] : vector<8x8x8xf32> to vector<8x8xf32>
    %23 = arith.addf %21, %22 : vector<8x8xf32>
    %c0_19 = arith.constant 0 : index
    %c0_20 = arith.constant 0 : index
    %24 = vector.load %arg9[%c0_19, %c0_20] : memref<8x8xf32, #tpu.memory_space<vmem>>, vector<8x8xf32>
    tpu.vector_store %arg9[%c0_19, %c0_20], %23 {strides = array<i32>} : memref<8x8xf32, #tpu.memory_space<vmem>>, vector<8x8xf32>,
    "tpu.trace_start"() <{level = 10 : i32, message = "hqk,hkd->hqd"}> : () -> ()
    %cst_21 = arith.constant dense<0.000000e+00> : vector<8x8x8xf32>
    %25 = tpu.matmul %19, %8, %cst_21 {dimension_numbers = #tpu.dot_dimension_numbers<[2], [1], [1], [2], [0, 0, 0, 1, 1, 2], [0], [0]>, precision = #tpu.contract_precision<fp32>} : vector<8x8x8xf32>, vector<8x8x8xf32>, vector<8x8x8xf32> -> vector<8x8x8xf32>
    "tpu.trace_stop"() : () -> ()
    %26 = vector.shape_cast %15 : vector<8x8xf32> to vector<8x8x1xf32>
    %c0_22 = arith.constant 0 : index
    %c0_23 = arith.constant 0 : index
    %c0_24 = arith.constant 0 : index
    %27 = vector.load %arg10[%c0_22, %c0_23, %c0_24] : memref<8x8x8xf32, #tpu.memory_space<vmem>>, vector<8x8x8xf32>
    %28 = vector.broadcast %26 : vector<8x8x1xf32> to vector<8x8x8xf32>
    %29 = arith.mulf %28, %27 : vector<8x8x8xf32>
    %30 = arith.addf %29, %25 : vector<8x8x8xf32>
    %c0_25 = arith.constant 0 : index
    %c0_26 = arith.constant 0 : index
    %c0_27 = arith.constant 0 : index
    %31 = vector.load %arg10[%c0_25, %c0_26, %c0_27] : memref<8x8x8xf32, #tpu.memory_space<vmem>>, vector<8x8x8xf32>
    tpu.vector_store %arg10[%c0_25, %c0_26, %c0_27], %30 {strides = array<i32>} : memref<8x8x8xf32, #tpu.memory_space<vmem>>, vector<8x8x8xf32>,
    %c0_28 = arith.constant 0 : index
    %c0_29 = arith.constant 0 : index
    %32 = vector.load %arg8[%c0_28, %c0_29] : memref<8x8xf32, #tpu.memory_space<vmem>>, vector<8x8xf32>
    tpu.vector_store %arg8[%c0_28, %c0_29], %13 {strides = array<i32>} : memref<8x8xf32, #tpu.memory_space<vmem>>, vector<8x8xf32>,
    %c0_i32_30 = arith.constant 0 : i32
    %33 = arith.cmpi eq, %arg2, %c0_i32_30 : i32
    %34 = arith.extui %33 : i1 to i32
    %c0_i32_31 = arith.constant 0 : i32
    %35 = arith.cmpi ne, %34, %c0_i32_31 : i32
    scf.if %35 {
      %c0_32 = arith.constant 0 : index
      %c0_33 = arith.constant 0 : index
      %c0_34 = arith.constant 0 : index
      %36 = vector.load %arg10[%c0_32, %c0_33, %c0_34] : memref<8x8x8xf32, #tpu.memory_space<vmem>>, vector<8x8x8xf32>
      %c0_35 = arith.constant 0 : index
      %c0_36 = arith.constant 0 : index
      %37 = vector.load %arg9[%c0_35, %c0_36] : memref<8x8xf32, #tpu.memory_space<vmem>>, vector<8x8xf32>
      %38 = vector.shape_cast %37 : vector<8x8xf32> to vector<8x8x1xf32>
      %39 = vector.broadcast %38 : vector<8x8x1xf32> to vector<8x8x8xf32>
      %40 = arith.divf %36, %39 : vector<8x8x8xf32>
      %41 = tpu.transpose %40, [1, 0, 2] : vector<8x8x8xf32> -> vector<8x8x8xf32>
      %42 = vector.shape_cast %41 : vector<8x8x8xf32> to vector<8x64xf32>
      %c0_37 = arith.constant 0 : index
      %c0_38 = arith.constant 0 : index
      %c0_39 = arith.constant 0 : index
      %43 = vector.load %arg6[%c0_37, %c0_38, %c0_39] : memref<1x8x64xf32, #tpu.memory_space<vmem>>, vector<1x8x64xf32>
      %44 = vector.shape_cast %43 : vector<1x8x64xf32> to vector<8x64xf32>
      %45 = vector.shape_cast %42 : vector<8x64xf32> to vector<1x8x64xf32>
      tpu.vector_store %arg6[%c0_37, %c0_38, %c0_39], %45 {strides = array<i32>} : memref<1x8x64xf32, #tpu.memory_space<vmem>>, vector<1x8x64xf32>,
    } else {
    }
    return
  }
  func.func @transform_0(%arg0: i32, %arg1: i32, %arg2: i32) -> (i32, i32, i32, i32, i32) {
    %c0_i32 = arith.constant 0 : i32
    %c0_i32_0 = arith.constant 0 : i32
    %c0_i32_1 = arith.constant 0 : i32
    %c0_i32_2 = arith.constant 0 : i32
    return %arg0, %arg1, %c0_i32, %c0_i32_0, %c0_i32_1 : i32, i32, i32, i32, i32
  }
  func.func @transform_1(%arg0: i32, %arg1: i32, %arg2: i32) -> (i32, i32, i32, i32, i32) {
    %c1_i32 = arith.constant 1 : i32
    %c0_i32 = arith.constant 0 : i32
    %c0_i32_0 = arith.constant 0 : i32
    %c0_i32_1 = arith.constant 0 : i32
    return %arg0, %arg2, %c1_i32, %c0_i32, %c0_i32_0 : i32, i32, i32, i32, i32
  }
  func.func @transform_2(%arg0: i32, %arg1: i32, %arg2: i32) -> (i32, i32, i32, i32, i32) {
    %c2_i32 = arith.constant 2 : i32
    %c0_i32 = arith.constant 0 : i32
    %c0_i32_0 = arith.constant 0 : i32
    %c0_i32_1 = arith.constant 0 : i32
    return %arg0, %arg2, %c2_i32, %c0_i32, %c0_i32_0 : i32, i32, i32, i32, i32
  }
  func.func @transform_3(%arg0: i32, %arg1: i32, %arg2: i32) -> (i32, i32, i32) {
    %c0_i32 = arith.constant 0 : i32
    %c0_i32_0 = arith.constant 0 : i32
    return %arg0, %arg1, %c0_i32 : i32, i32, i32
  }
}

module attributes {stable_mosaic.version = 11 : i64} {
  func.func @_linear_res_bias_kernel(%arg0: i32, %arg1: memref<16x64xf32, #tpu.memory_space<vmem>>, %arg2: memref<64x64xf32, #tpu.memory_space<vmem>>, %arg3: memref<1x64xf32, #tpu.memory_space<vmem>>, %arg4: memref<16x64xf32, #tpu.memory_space<vmem>>) attributes {dimension_semantics = [#tpu.dimension_semantics<parallel>], iteration_bounds = array<i64: 1>, scalar_prefetch = 0 : i64, scratch_operands = 0 : i64, tpu.core_type = #tpu.core_type<tc>, window_params = [{transform_indices = @transform_0, window_bounds = array<i64: 16, 64>}, {pipeline_mode = #tpu.pipeline_mode<synchronous>, transform_indices = @transform_1, window_bounds = array<i64: 64, 64>}, {pipeline_mode = #tpu.pipeline_mode<synchronous>, transform_indices = @transform_2, window_bounds = array<i64: 1, 64>}, {transform_indices = @transform_3, window_bounds = array<i64: 16, 64>}]} {
    %c0 = arith.constant 0 : index
    %c0_0 = arith.constant 0 : index
    %0 = vector.load %arg1[%c0, %c0_0] : memref<16x64xf32, #tpu.memory_space<vmem>>, vector<16x64xf32>
    %c0_1 = arith.constant 0 : index
    %c0_2 = arith.constant 0 : index
    %1 = vector.load %arg2[%c0_1, %c0_2] : memref<64x64xf32, #tpu.memory_space<vmem>>, vector<64x64xf32>
    %cst = arith.constant dense<0.000000e+00> : vector<16x64xf32>
    %2 = tpu.matmul %0, %1, %cst {dimension_numbers = #tpu.dot_dimension_numbers<[1], [1], [0], [0], [0, 0, 1, 0], [], []>, precision = #tpu.contract_precision<fp32>} : vector<16x64xf32>, vector<64x64xf32>, vector<16x64xf32> -> vector<16x64xf32>
    %c0_3 = arith.constant 0 : index
    %c0_4 = arith.constant 0 : index
    %3 = vector.load %arg3[%c0_3, %c0_4] : memref<1x64xf32, #tpu.memory_space<vmem>>, vector<1x64xf32>
    %4 = vector.broadcast %3 : vector<1x64xf32> to vector<16x64xf32>
    %5 = arith.addf %2, %4 : vector<16x64xf32>
    %c0_5 = arith.constant 0 : index
    %c0_6 = arith.constant 0 : index
    %6 = vector.load %arg4[%c0_5, %c0_6] : memref<16x64xf32, #tpu.memory_space<vmem>>, vector<16x64xf32>
    tpu.vector_store %arg4[%c0_5, %c0_6], %5 {strides = array<i32>} : memref<16x64xf32, #tpu.memory_space<vmem>>, vector<16x64xf32>,
    return
  }
  func.func @transform_0(%arg0: i32) -> (i32, i32) {
    %c0_i32 = arith.constant 0 : i32
    %c0_i32_0 = arith.constant 0 : i32
    return %arg0, %c0_i32 : i32, i32
  }
  func.func @transform_1(%arg0: i32) -> (i32, i32) {
    %c0_i32 = arith.constant 0 : i32
    %c0_i32_0 = arith.constant 0 : i32
    %c0_i32_1 = arith.constant 0 : i32
    return %c0_i32, %c0_i32_0 : i32, i32
  }
  func.func @transform_2(%arg0: i32) -> (i32, i32) {
    %c0_i32 = arith.constant 0 : i32
    %c0_i32_0 = arith.constant 0 : i32
    %c0_i32_1 = arith.constant 0 : i32
    return %c0_i32, %c0_i32_0 : i32, i32
  }
  func.func @transform_3(%arg0: i32) -> (i32, i32) {
    %c0_i32 = arith.constant 0 : i32
    %c0_i32_0 = arith.constant 0 : i32
    return %arg0, %c0_i32 : i32, i32
  }
}

</mosaic_0001>

<bundles_post_ra>
// kernel: attention_forward.3
= control target key start
LH: loop header
LB: loop body
LE: loop exit
PB: predicated region body
PF: predicated region fallthrough
CT: control target
= control target key end

     0   :  { %vm37_vm0 = vcmask 523264   ;;  %s1328_s1 = inlined_call_operand.vmem [shape: f32[192,64], index: 1, kind: input, shape index: {}]   ;;  %s1329_s0 = inlined_call_operand.vmem [shape: f32[16,64], index: 0, kind: input, shape index: {}]   ;;  %s1330_s2 = inlined_call_operand.vmem [shape: f32[16,192], index: 2, kind: output, shape index: {}]  }
   0x1   :  { %v28_v0 = vld [vmem:[%s1328_s1 + $0x78] sm:$0xff]  ;;  %v27_v1 = vld [vmem:[%s1328_s1 + $0x70] sm:$0xff]  ;;  %v26_v2 = vld [vmem:[%s1328_s1 + $0x68] sm:$0xff] }
   0x2   :  { %v90_v3 = vsel %vm37_vm0, %v28_v0, 0  ;;  %v87_v4 = vsel %vm37_vm0, %v27_v1, 0  ;;  %v84_v5 = vsel %vm37_vm0, %v26_v2, 0  ;;  %v25_v6 = vld [vmem:[%s1328_s1 + $0x60] sm:$0xff]  ;;  %v24_v7 = vld [vmem:[%s1328_s1 + $0x58] sm:$0xff]  ;;  %v23_v17 = vld [vmem:[%s1328_s1 + $0x50] sm:$0xff] }
   0x3   :  { %v813_v8 = vand.u32 4294901760, %v90_v3  ;;  %v815_v9 = vand.u32 4294901760, %v87_v4  ;;  %v817_v10 = vand.u32 4294901760, %v84_v5  ;;  %v81_v11 = vsel %vm37_vm0, %v25_v6, 0  ;;  %v22_v26 = vld [vmem:[%s1328_s1 + $0x48] sm:$0xff]  ;;  %v21_v34 = vld [vmem:[%s1328_s1 + $0x40] sm:$0xff] }
   0x4   :  { %v820_v12 = vand.u32 4294901760, %v81_v11  ;;  %v78_v16 = vsel %vm37_vm0, %v24_v7, 0  ;;  %v75_v21 = vsel %vm37_vm0, %v23_v17, 0  ;;  %v72_v29 = vsel %vm37_vm0, %v22_v26, 0  ;;  %v20_v41 = vld [vmem:[%s1328_s1 + $0x38] sm:$0xff]  ;;  %v19_v48 = vld [vmem:[%s1328_s1 + $0x30] sm:$0xff] }
   0x5   :  { %117 = vmatpush.xpose.msra.mxu0 %v813_v8  ;;  %v824_v13 = vsub.f32 %v90_v3, %v813_v8  ;;  %330 = vmatpush.xpose.msra.mxu3 %v813_v8  ;;  %v828_v14 = vsub.f32 %v87_v4, %v815_v9  ;;  %v831_v15 = vsub.f32 %v84_v5, %v817_v10  ;;  %v840_v20 = vand.u32 4294901760, %v78_v16  ;;  %v18_v54 = vld [vmem:[%s1328_s1 + $0x28] sm:$0xff]  ;;  %v17_v62 = vld [vmem:[%s1328_s1 + $0x20] sm:$0xff]  ;;  %v16_v5 = vld [vmem:[%s1328_s1 + $0x18] sm:$0xff] }
   0x6   :  { %v852_v24 = vsub.f32 %v81_v11, %v820_v12  ;;  %v859_v28 = vand.u32 4294901760, %v75_v21  ;;  %v875_v35 = vand.u32 4294901760, %v72_v29  ;;  %v69_v36 = vsel %vm37_vm0, %v21_v34, 0 }
   0x7   :  { %272 = vmatpush.xpose.msra.mxu2 %v824_v13  ;;  %v167_v18 = vand.u32 4294901760, %v824_v13  ;;  %v1345_v19 = vand.u32 4294901760, %v828_v14  ;;  %v1344_v25 = vand.u32 4294901760, %v831_v15  ;;  %v867_v32 = vsub.f32 %v78_v16, %v840_v20 }
   0x8   :  { %v1343_v33 = vand.u32 4294901760, %v852_v24  ;;  %v883_v39 = vsub.f32 %v75_v21, %v859_v28  ;;  %v891_v42 = vand.u32 4294901760, %v69_v36  ;;  %v898_v45 = vsub.f32 %v72_v29, %v875_v35 }
   0x9   :  { %119 = vmatpush.xpose.msra.mxu0 %v815_v9  ;;  %v168_v22 = vsub.f32 %v824_v13, %v167_v18  ;;  %332 = vmatpush.xpose.msra.mxu3 %v815_v9  ;;  %v174_v23 = vsub.f32 %v828_v14, %v1345_v19  ;;  %v180_v31 = vsub.f32 %v831_v15, %v1344_v25  ;;  %v1342_v40 = vand.u32 4294901760, %v867_v32  ;;  %v29_v19 = vld [vmem:[%s1328_s1 + $0x80] sm:$0xff] }
   0xa   :  { %v186_v38 = vsub.f32 %v852_v24, %v1343_v33  ;;  %v1340_v46 = vand.u32 4294901760, %v883_v39  ;;  %v66_v47 = vsel %vm37_vm0, %v20_v41, 0  ;;  %v908_v49 = vsub.f32 %v69_v36, %v891_v42  ;;  %v14_v36 = vld [vmem:[%s1328_s1 + $0x8] sm:$0xff]  ;;  %v35_v41 = vld [vmem:[%s1328_s1 + $0xb0] sm:$0xff] }
   0xb   :  { %275 = vmatpush.xpose.msra.mxu2 %v828_v14  ;;  %v169_v27 = vand.u32 4294901760, %v168_v22  ;;  %v175_v30 = vand.u32 4294901760, %v174_v23  ;;  %v181_v37 = vand.u32 4294901760, %v180_v31  ;;  %v192_v44 = vsub.f32 %v867_v32, %v1342_v40  ;;  %v15_v22 = vld [vmem:[%s1328_s1 + $0x10] sm:$0xff]  ;;  %v36_v31 = vld [vmem:[%s1328_s1 + $0xb8] sm:$0xff] }
   0xc   :  { %v187_v43 = vand.u32 4294901760, %v186_v38  ;;  %v198_v51 = vsub.f32 %v883_v39, %v1340_v46  ;;  %v914_v52 = vand.u32 4294901760, %v66_v47  ;;  %v1339_v53 = vand.u32 4294901760, %v898_v45 }
   0xd   :  { %121 = vmatpush.xpose.msra.mxu0 %v817_v10  ;;  %170 = vmatpush.xpose.msra.mxu1 %v169_v27  ;;  %v193_v50 = vand.u32 4294901760, %v192_v44  ;;  %v63_v55 = vsel %vm37_vm0, %v19_v48, 0  ;;  %v1338_v56 = vand.u32 4294901760, %v908_v49  ;;  %v60_v57 = vsel %vm37_vm0, %v18_v54, 0 }
   0xe   :  { %334 = vmatpush.xpose.msra.mxu3 %v817_v10  ;;  %v199_v58 = vand.u32 4294901760, %v198_v51  ;;  %v204_v59 = vsub.f32 %v898_v45, %v1339_v53  ;;  %v930_v60 = vsub.f32 %v66_v47, %v914_v52  ;;  %v932_v61 = vand.u32 4294901760, %v63_v55  ;;  %v13_v51 = vld [vmem:[%s1328_s1] sm:$0xff] }
   0xf   :  { %278 = vmatpush.xpose.msra.mxu2 %v831_v15  ;;  %v210_v63 = vsub.f32 %v908_v49, %v1338_v56  ;;  %v942_v0 = vand.u32 4294901760, %v60_v57  ;;  %v57_v4 = vsel %vm37_vm0, %v17_v62, 0  ;;  %v54_v21 = vsel %vm37_vm0, %v16_v5, 0 }
  0x10   :  { %v205_v1 = vand.u32 4294901760, %v204_v59  ;;  %v946_v2 = vsub.f32 %v63_v55, %v932_v61  ;;  %v1337_v3 = vand.u32 4294901760, %v930_v60  ;;  %v955_v6 = vand.u32 4294901760, %v57_v4 }
  0x11   :  { %123 = vmatpush.xpose.msra.mxu0 %v820_v12  ;;  %176 = vmatpush.xpose.msra.mxu1 %v175_v30  ;;  %v211_v7 = vand.u32 4294901760, %v210_v63  ;;  %v962_v16 = vsub.f32 %v60_v57, %v942_v0  ;;  %v978_v29 = vand.u32 4294901760, %v54_v21  ;;  %v51_v34 = vsel %vm37_vm0, %v15_v22, 0  ;;  %v33_v22 = vld [vmem:[%s1328_s1 + $0xa0] sm:$0xff] }
  0x12   :  { %336 = vmatpush.xpose.msra.mxu3 %v820_v12  ;;  %v216_v11 = vsub.f32 %v930_v60, %v1337_v3  ;;  %v1335_v17 = vand.u32 4294901760, %v946_v2  ;;  %v972_v23 = vsub.f32 %v57_v4, %v955_v6  ;;  %v114_v38 = vsel %vm37_vm0, %v36_v31, 0 }
  0x13   :  { %281 = vmatpush.xpose.msra.mxu2 %v852_v24  ;;  %v1334_v30 = vand.u32 4294901760, %v962_v16  ;;  %v1000_v47 = vsub.f32 %v54_v21, %v978_v29  ;;  %v1002_v48 = vand.u32 4294901760, %v51_v34  ;;  %v1010_v54 = vand.u32 4294901760, %v114_v38 }
  0x14   :  { %v217_v26 = vand.u32 4294901760, %v216_v11  ;;  %v222_v27 = vsub.f32 %v946_v2, %v1335_v17  ;;  %v111_v55 = vsel %vm37_vm0, %v35_v41, 0  ;;  %v45_v4 = vsel %vm37_vm0, %v13_v51, 0 }
  0x15   :  { %125 = vmatpush.xpose.msra.mxu0 %v840_v20  ;;  %182 = vmatpush.xpose.msra.mxu1 %v181_v37  ;;  %v1333_v37 = vand.u32 4294901760, %v972_v23  ;;  %v228_v44 = vsub.f32 %v962_v16, %v1334_v30  ;;  %v1018_v59 = vsub.f32 %v51_v34, %v1002_v48  ;;  %v1332_v63 = vand.u32 4294901760, %v1000_v47 }
  0x16   :  { %338 = vmatpush.xpose.msra.mxu3 %v840_v20  ;;  %v1028_v5 = vand.u32 4294901760, %v111_v55  ;;  %v1045_v31 = vand.u32 4294901760, %v45_v4 }
  0x17   :  { %284 = vmatpush.xpose.msra.mxu2 %v867_v32  ;;  %v234_v57 = vsub.f32 %v972_v23, %v1333_v37  ;;  %v1331_v34 = vand.u32 4294901760, %v1018_v59 }
  0x18   :  { %v1064_v51 = vsub.f32 %v45_v4, %v1045_v31 }
  0x19   :  { %127 = vmatpush.xpose.msra.mxu0 %v859_v28  ;;  %188 = vmatpush.xpose.msra.mxu1 %v187_v43  ;;  %v223_v43 = vand.u32 4294901760, %v222_v27  ;;  %v235_v11 = vand.u32 4294901760, %v234_v57  ;;  %v32_v57 = vld [vmem:[%s1328_s1 + $0x98] sm:$0xff] }
  0x1a   :  { %340 = vmatpush.xpose.msra.mxu3 %v859_v28  ;;  %v1341_v17 = vand.u32 4294901760, %v1064_v51 }
  0x1b   :  { %287 = vmatpush.xpose.msra.mxu2 %v883_v39 }
  0x1d   :  { %129 = vmatpush.xpose.msra.mxu0 %v875_v35  ;;  %194 = vmatpush.xpose.msra.mxu1 %v193_v50  ;;  %v48_v50 = vsel %vm37_vm0, %v14_v36, 0  ;;  %v1050_v36 = vsub.f32 %v111_v55, %v1028_v5 }
  0x1e   :  { %342 = vmatpush.xpose.msra.mxu3 %v875_v35  ;;  %v1020_v62 = vand.u32 4294901760, %v48_v50 }
  0x1f   :  { %290 = vmatpush.xpose.msra.mxu2 %v898_v45 }
  0x20   :  { %v1043_v27 = vsub.f32 %v48_v50, %v1020_v62  ;;  %v246_v50 = vsub.f32 %v1018_v59, %v1331_v34  ;;  %v102_v34 = vsel %vm37_vm0, %v32_v57, 0 }
  0x21   :  { %131 = vmatpush.xpose.msra.mxu0 %v891_v42  ;;  %200 = vmatpush.xpose.msra.mxu1 %v199_v58  ;;  %v229_v58 = vand.u32 4294901760, %v228_v44  ;;  %v1110_v3 = vand.u32 4294901760, %v102_v34 }
  0x22   :  { %344 = vmatpush.xpose.msra.mxu3 %v891_v42  ;;  %v1336_v55 = vand.u32 4294901760, %v1043_v27  ;;  %v247_v37 = vand.u32 4294901760, %v246_v50 }
  0x23   :  { %293 = vmatpush.xpose.msra.mxu2 %v908_v49 }
  0x24   :  { %v252_v30 = vsub.f32 %v1043_v27, %v1336_v55 }
  0x25   :  { %133 = vmatpush.xpose.msra.mxu0 %v914_v52  ;;  %206 = vmatpush.xpose.msra.mxu1 %v205_v1  ;;  %v34_v1 = vld [vmem:[%s1328_s1 + $0xa8] sm:$0xff] }
  0x26   :  { %346 = vmatpush.xpose.msra.mxu3 %v914_v52  ;;  %v108_v21 = vsel %vm37_vm0, %v34_v1, 0 }
  0x27   :  { %296 = vmatpush.xpose.msra.mxu2 %v930_v60  ;;  %v1056_v41 = vand.u32 4294901760, %v108_v21 }
  0x29   :  { %135 = vmatpush.xpose.msra.mxu0 %v932_v61  ;;  %212 = vmatpush.xpose.msra.mxu1 %v211_v7  ;;  %v1032_v7 = vsub.f32 %v114_v38, %v1010_v54 }
  0x2a   :  { %348 = vmatpush.xpose.msra.mxu3 %v932_v61 }
  0x2b   :  { %299 = vmatpush.xpose.msra.mxu2 %v946_v2  ;;  %v1054_v38 = vand.u32 4294901760, %v1032_v7 }
  0x2d   :  { %137 = vmatpush.xpose.msra.mxu0 %v942_v0  ;;  %218 = vmatpush.xpose.msra.mxu1 %v217_v26  ;;  %v240_v26 = vsub.f32 %v1000_v47, %v1332_v63  ;;  %v540_v4 = vsub.f32 %v1032_v7, %v1054_v38 }
  0x2e   :  { %350 = vmatpush.xpose.msra.mxu3 %v942_v0 }
  0x2f   :  { %302 = vmatpush.xpose.msra.mxu2 %v962_v16  ;;  %v241_v44 = vand.u32 4294901760, %v240_v26  ;;  %v541_v50 = vand.u32 4294901760, %v540_v4  ;;  %v30_v4 = vld [vmem:[%s1328_s1 + $0x88] sm:$0xff] }
  0x30   :  { %v96_v40 = vsel %vm37_vm0, %v30_v4, 0 }
  0x31   :  { %139 = vmatpush.xpose.msra.mxu0 %v955_v6  ;;  %224 = vmatpush.xpose.msra.mxu1 %v223_v43  ;;  %v105_v43 = vsel %vm37_vm0, %v33_v22, 0  ;;  %v1083_v22 = vsub.f32 %v108_v21, %v1056_v41  ;;  %v31_v21 = vld [vmem:[%s1328_s1 + $0x90] sm:$0xff] }
  0x32   :  { %352 = vmatpush.xpose.msra.mxu3 %v955_v6  ;;  %v1074_v1 = vand.u32 4294901760, %v105_v43  ;;  %v99_v56 = vsel %vm37_vm0, %v31_v21, 0 }
  0x33   :  { %305 = vmatpush.xpose.msra.mxu2 %v972_v23  ;;  %v1108_v55 = vand.u32 4294901760, %v1083_v22 }
  0x35   :  { %141 = vmatpush.xpose.msra.mxu0 %v978_v29  ;;  %230 = vmatpush.xpose.msra.mxu1 %v229_v58  ;;  %v1072_v58 = vand.u32 4294901760, %v1050_v36  ;;  %1350 = vst [vmem:[#allocation2_spill] sm:$0xff] %v1108_v55  ;;  %v552_v13 = vsub.f32 %v1083_v22, %v1108_v55  ;;  %v1167_v55 = vand.u32 4294901760, %v96_v40 }
  0x36   :  { %354 = vmatpush.xpose.msra.mxu3 %v978_v29 }
  0x37   :  { %308 = vmatpush.xpose.msra.mxu2 %v1000_v47  ;;  %v546_v57 = vsub.f32 %v1050_v36, %v1072_v58 }
  0x39   :  { %143 = vmatpush.xpose.msra.mxu0 %v1002_v48  ;;  %236 = vmatpush.xpose.msra.mxu1 %v235_v11  ;;  %v11_v11 = vld [vmem:[%s1329_s0] sm:$0xff]  ;;  %v547_v21 = vand.u32 4294901760, %v546_v57  ;;  %v1140_v57 = vand.u32 4294901760, %v99_v56 }
  0x3a   :  { %356 = vmatpush.xpose.msra.mxu3 %v1002_v48  ;;  %v39_v26 = vsel %vm37_vm0, %v11_v11, 0  ;;  %v1101_v11 = vsub.f32 %v105_v43, %v1074_v1  ;;  %v253_v43 = vand.u32 4294901760, %v252_v30 }
  0x3b   :  { %311 = vmatpush.xpose.msra.mxu2 %v1018_v59  ;;  %v1087_v63 = vand.u32 4294901760, %v39_v26 }
  0x3c   :  { %v1127_v46 = vand.u32 4294901760, %v1101_v11 }
  0x3d   :  { %145 = vmatpush.xpose.msra.mxu0 %v1020_v62  ;;  %242 = vmatpush.xpose.msra.mxu1 %v241_v44  ;;  %v1104_v44 = vsub.f32 %v39_v26, %v1087_v63  ;;  %v258_v26 = vsub.f32 %v1064_v51, %v1341_v17 }
  0x3e   :  { %358 = vmatpush.xpose.msra.mxu3 %v1020_v62  ;;  %1351 = vst [vmem:[#allocation3_spill] sm:$0xff] %v1127_v46 }
  0x3f   :  { %314 = vmatpush.xpose.msra.mxu2 %v1043_v27  ;;  %v1114_v53 = vand.u32 4294901760, %v1104_v44 }
  0x41   :  { %147 = vmatpush.xpose.msra.mxu0 %v1045_v31  ;;  %248 = vmatpush.xpose.msra.mxu1 %v247_v37  ;;  %v151_v30 = vsub.f32 %v1104_v44, %v1114_v53  ;;  %v12_v37 = vld [vmem:[%s1329_s0 + $0x8] sm:$0xff] }
  0x42   :  { %360 = vmatpush.xpose.msra.mxu3 %v1045_v31  ;;  %v42_v17 = vsel %vm37_vm0, %v12_v37, 0  ;;  %v558_v37 = vsub.f32 %v1101_v11, %v1127_v46  ;;  %v1184_v46 = vsub.f32 %v96_v40, %v1167_v55 }
  0x43   :  { %317 = vmatpush.xpose.msra.mxu2 %v1064_v51  ;;  %v1145_v33 = vand.u32 4294901760, %v151_v30  ;;  %v1147_v25 = vand.u32 4294901760, %v42_v17  ;;  %v1165_v30 = vsub.f32 %v99_v56, %v1140_v57 }
  0x44   :  { %v1197_v40 = vand.u32 4294901760, %v1184_v46 }
  0x45   :  { %377 = vmatpush.xpose.msrb.mxu0 %v167_v18  ;;  %v1138_v18 = vsub.f32 %v102_v34, %v1110_v3  ;;  %254 = vmatpush.xpose.msra.mxu1 %v253_v43  ;;  %v1352_v34 = vand.u32 4294901760, %v828_v14  ;;  %v1159_v4 = vsub.f32 %v42_v17, %v1147_v25  ;;  %v553_v43 = vand.u32 4294901760, %v552_v13 }
  0x46   :  { %542 = vmatpush.xpose.msrb.mxu3 %v541_v50  ;;  %v259_v50 = vand.u32 4294901760, %v258_v26  ;;  %320 = vmatmul.f32.vlgmr.msra.gmra.mxu2 %v1104_v44  ;;  %v93_v14 = vsel %vm37_vm0, %v29_v19, 0  ;;  %v559_v13 = vand.u32 4294901760, %v558_v37 }
  0x47   :  { %497 = vmatpush.xpose.msrb.mxu2 %v1010_v54  ;;  %364 = vmatmul.f32.vlgmr.msra.gmra.mxu3 %v1114_v53  ;;  %v1162_v26 = vand.u32 4294901760, %v1138_v18  ;;  %v1173_v17 = vand.u32 4294901760, %v1159_v4  ;;  %v1186_v19 = vand.u32 4294901760, %v93_v14 }
  0x48   :  { %153 = vmatmul.f32.vlgmr.msra.gmra.mxu0 %v1145_v33 }
  0x49   :  { %381 = vmatpush.xpose.msrb.mxu0 %v1352_v34  ;;  %260 = vmatpush.xpose.msra.mxu1 %v259_v50  ;;  %v564_v56 = vsub.f32 %v1138_v18, %v1162_v26  ;;  %v1181_v34 = vand.u32 4294901760, %v1165_v30  ;;  %v580_v37 = vsub.f32 %v93_v14, %v1186_v19  ;;  %v159_v14 = vsub.f32 %v1159_v4, %v1173_v17 }
  0x4a   :  { %548 = vmatpush.xpose.msrb.mxu3 %v547_v21  ;;  %v1353_v21 = vand.u32 4294901760, %v831_v15 }
  0x4b   :  { %499 = vmatpush.xpose.msrb.mxu2 %v1028_v5  ;;  %v565_v15 = vand.u32 4294901760, %v564_v56  ;;  %v570_v50 = vsub.f32 %v1165_v30, %v1181_v34 }
  0x4c   :  { %262 = vmatmul.f32.vlgmr.msra.gmra.mxu1 %v1087_v63 }
  0x4d   :  { %385 = vmatpush.xpose.msrb.mxu0 %v1353_v21  ;;  %448 = vmatpush.xpose.msrb.mxu1 %v813_v8  ;;  %v1354_v8 = vand.u32 4294901760, %v852_v24  ;;  %v576_v24 = vsub.f32 %v1184_v46, %v1197_v40  ;;  %v1207_v21 = vand.u32 4294901760, %v580_v37 }
  0x4e   :  { %554 = vmatpush.xpose.msrb.mxu3 %v553_v43  ;;  %325 = vmatmul.f32.gmra.mxu2 %v1159_v4  ;;  %v1355_v43 = vand.u32 4294901760, %v867_v32 }
  0x4f   :  { %501 = vmatpush.xpose.msrb.mxu2 %v1056_v41  ;;  %370 = vmatmul.f32.gmra.mxu3 %v1173_v17  ;;  %v577_v32 = vand.u32 4294901760, %v576_v24  ;;  %v582_v56 = vsub.f32 %v580_v37, %v1207_v21 }
  0x51   :  { %389 = vmatpush.xpose.msrb.mxu0 %v1354_v8  ;;  %450 = vmatpush.xpose.msrb.mxu1 %v815_v9  ;;  %v571_v9 = vand.u32 4294901760, %v570_v50  ;;  %v1357_v8 = vand.u32 4294901760, %v898_v45  ;;  %v1365_v45 = vand.u32 4294901760, %v1043_v27 }
  0x52   :  { %560 = vmatpush.xpose.msrb.mxu3 %v559_v13  ;;  %v1356_v13 = vand.u32 4294901760, %v883_v39  ;;  %v1358_v39 = vand.u32 4294901760, %v908_v49  ;;  %v1366_v49 = vand.u32 4294901760, %v1064_v51 }
  0x53   :  { %503 = vmatpush.xpose.msrb.mxu2 %v1074_v1 }
  0x54   :  { %266 = vmatmul.f32.gmra.mxu1 %v1147_v25 }
  0x55   :  { %393 = vmatpush.xpose.msrb.mxu0 %v1355_v43  ;;  %452 = vmatpush.xpose.msrb.mxu1 %v817_v10  ;;  %v160_v10 = vand.u32 4294901760, %v159_v14 }
  0x56   :  { %566 = vmatpush.xpose.msrb.mxu3 %v565_v15  ;;  %v583_v15 = vand.u32 4294901760, %v582_v56 }
  0x57   :  { %505 = vmatpush.xpose.msrb.mxu2 %v1110_v3  ;;  %161 = vmatmul.f32.gmra.mxu0 %v160_v10 }
  0x59   :  { %397 = vmatpush.xpose.msrb.mxu0 %v1356_v13  ;;  %454 = vmatpush.xpose.msrb.mxu1 %v820_v12  ;;  %v1359_v12 = vand.u32 4294901760, %v930_v60 }
  0x5a   :  { %572 = vmatpush.xpose.msrb.mxu3 %v571_v9 }
  0x5b   :  { %507 = vmatpush.xpose.msrb.mxu2 %v1140_v57 }
  0x5d   :  { %401 = vmatpush.xpose.msrb.mxu0 %v1357_v8  ;;  %456 = vmatpush.xpose.msrb.mxu1 %v840_v20  ;;  %v1360_v20 = vand.u32 4294901760, %v946_v2 }
  0x5e   :  { %578 = vmatpush.xpose.msrb.mxu3 %v577_v32 }
  0x5f   :  { %509 = vmatpush.xpose.msrb.mxu2 %v1167_v55 }
  0x61   :  { %405 = vmatpush.xpose.msrb.mxu0 %v1358_v39  ;;  %458 = vmatpush.xpose.msrb.mxu1 %v859_v28  ;;  %v1361_v28 = vand.u32 4294901760, %v962_v16 }
  0x62   :  { %584 = vmatpush.xpose.msrb.mxu3 %v583_v15 }
  0x63   :  { %511 = vmatpush.xpose.msrb.mxu2 %v1186_v19 }
  0x65   :  { %409 = vmatpush.xpose.msrb.mxu0 %v1359_v12  ;;  %460 = vmatpush.xpose.msrb.mxu1 %v875_v35  ;;  %v1363_v35 = vand.u32 4294901760, %v1000_v47 }
  0x66   :  { %646 = vmatpush.xpose.msra.mxu3 %v1010_v54  ;;  %517 = vmatmul.f32.vlgmr.msrb.gmra.mxu2 %v1145_v33  ;;  %v1362_v33 = vand.u32 4294901760, %v972_v23 }
  0x67   :  { %604 = vmatpush.xpose.msra.mxu2 %v1032_v7  ;;  %586 = vmatmul.f32.vlgmr.msrb.gmra.mxu3 %v1087_v63 }
  0x69   :  { %413 = vmatpush.xpose.msrb.mxu0 %v1360_v20  ;;  %462 = vmatpush.xpose.msrb.mxu1 %v891_v42  ;;  %v1364_v42 = vand.u32 4294901760, %v1018_v59 }
  0x6a   :  { %648 = vmatpush.xpose.msra.mxu3 %v1028_v5 }
  0x6b   :  { %607 = vmatpush.xpose.msra.mxu2 %v1050_v36 }
  0x6d   :  { %417 = vmatpush.xpose.msrb.mxu0 %v1361_v28  ;;  %464 = vmatpush.xpose.msrb.mxu1 %v914_v52  ;;  %v1368_v52 = vld [vmem:[#allocation3_spill] sm:$0xff] }
  0x6e   :  { %650 = vmatpush.xpose.msra.mxu3 %v1056_v41  ;;  %525 = vmatmul.f32.gmra.mxu2 %v160_v10 }
  0x6f   :  { %610 = vmatpush.xpose.msra.mxu2 %v1083_v22  ;;  %590 = vmatmul.f32.gmra.mxu3 %v1147_v25 }
  0x71   :  { %421 = vmatpush.xpose.msrb.mxu0 %v1362_v33  ;;  %466 = vmatpush.xpose.msrb.mxu1 %v932_v61 }
  0x72   :  { %652 = vmatpush.xpose.msra.mxu3 %v1074_v1 }
  0x73   :  { %613 = vmatpush.xpose.msra.mxu2 %v1101_v11 }
  0x75   :  { %425 = vmatpush.xpose.msrb.mxu0 %v1363_v35  ;;  %468 = vmatpush.xpose.msrb.mxu1 %v942_v0 }
  0x76   :  { %654 = vmatpush.xpose.msra.mxu3 %v1110_v3 }
  0x77   :  { %616 = vmatpush.xpose.msra.mxu2 %v1138_v18 }
  0x79   :  { %429 = vmatpush.xpose.msrb.mxu0 %v1364_v42  ;;  %470 = vmatpush.xpose.msrb.mxu1 %v955_v6 }
  0x7a   :  { %656 = vmatpush.xpose.msra.mxu3 %v1140_v57 }
  0x7b   :  { %619 = vmatpush.xpose.msra.mxu2 %v1165_v30 }
  0x7d   :  { %433 = vmatpush.xpose.msrb.mxu0 %v1365_v45  ;;  %472 = vmatpush.xpose.msrb.mxu1 %v978_v29 }
  0x7e   :  { %658 = vmatpush.xpose.msra.mxu3 %v1167_v55 }
  0x7f   :  { %622 = vmatpush.xpose.msra.mxu2 %v1184_v46  ;;  %v1367_v46 = vld [vmem:[#allocation2_spill] sm:$0xff] }
  0x81   :  { %437 = vmatpush.xpose.msrb.mxu0 %v1366_v49  ;;  %474 = vmatpush.xpose.msrb.mxu1 %v1002_v48 }
  0x82   :  { %660 = vmatpush.xpose.msra.mxu3 %v1186_v19 }
  0x83   :  { %625 = vmatpush.xpose.msra.mxu2 %v580_v37 }
  0x84   :  { %439 = vmatmul.f32.vlgmr.msrb.gmra.mxu0 %v1087_v63 }
  0x85   :  { %685 = vmatpush.xpose.msra.mxu0 %v1054_v38  ;;  %664 = vmatmul.f32.vlgmr.msra.gmra.mxu3 %v1114_v53 }
  0x86   :  { %772 = vmatpush.xpose.msrb.mxu3 %v1010_v54  ;;  %628 = vmatmul.f32.vlgmr.msra.gmra.mxu2 %v1104_v44 }
  0x87   :  { %764 = vmatpush.xpose.msrb.mxu2 %v1054_v38  ;;  %476 = vmatpush.xpose.msrb.mxu1 %v1020_v62 }
  0x89   :  { %689 = vmatpush.xpose.msra.mxu0 %v1072_v58 }
  0x8a   :  { %773 = vmatpush.xpose.msrb.mxu3 %v1028_v5 }
  0x8b   :  { %765 = vmatpush.xpose.msrb.mxu2 %v1072_v58  ;;  %478 = vmatpush.xpose.msrb.mxu1 %v1045_v31 }
  0x8c   :  { %443 = vmatmul.f32.gmra.mxu0 %v1147_v25 }
  0x8d   :  { %693 = vmatpush.xpose.msra.mxu0 %v1367_v46  ;;  %670 = vmatmul.f32.gmra.mxu3 %v1173_v17 }
  0x8e   :  { %774 = vmatpush.xpose.msrb.mxu3 %v1056_v41  ;;  %633 = vmatmul.f32.gmra.mxu2 %v1159_v4 }
  0x8f   :  { %766 = vmatpush.xpose.msrb.mxu2 %v1367_v46  ;;  %732 = vmatpush.xpose.msra.mxu1 %v1010_v54 }
  0x90   :  { %480 = vmatmul.f32.vlgmr.msrb.gmra.mxu1 %v1087_v63 }
  0x91   :  { %697 = vmatpush.xpose.msra.mxu0 %v1368_v52 }
  0x92   :  { %775 = vmatpush.xpose.msrb.mxu3 %v1074_v1 }
  0x93   :  { %767 = vmatpush.xpose.msrb.mxu2 %v1368_v52  ;;  %734 = vmatpush.xpose.msra.mxu1 %v1028_v5 }
  0x95   :  { %701 = vmatpush.xpose.msra.mxu0 %v1162_v26 }
  0x96   :  { %776 = vmatpush.xpose.msrb.mxu3 %v1110_v3 }
  0x97   :  { %768 = vmatpush.xpose.msrb.mxu2 %v1162_v26  ;;  %736 = vmatpush.xpose.msra.mxu1 %v1056_v41 }
  0x98   :  { %484 = vmatmul.f32.gmra.mxu1 %v1147_v25 }
  0x99   :  { %705 = vmatpush.xpose.msra.mxu0 %v1181_v34 }
  0x9a   :  { %777 = vmatpush.xpose.msrb.mxu3 %v1140_v57 }
  0x9b   :  { %769 = vmatpush.xpose.msrb.mxu2 %v1181_v34  ;;  %738 = vmatpush.xpose.msra.mxu1 %v1074_v1 }
  0x9d   :  { %709 = vmatpush.xpose.msra.mxu0 %v1197_v40 }
  0x9e   :  { %778 = vmatpush.xpose.msrb.mxu3 %v1167_v55 }
  0x9f   :  { %770 = vmatpush.xpose.msrb.mxu2 %v1197_v40  ;;  %740 = vmatpush.xpose.msra.mxu1 %v1110_v3 }
  0xa1   :  { %713 = vmatpush.xpose.msra.mxu0 %v1207_v21 }
  0xa2   :  { %779 = vmatpush.xpose.msrb.mxu3 %v1186_v19 }
  0xa3   :  { %771 = vmatpush.xpose.msrb.mxu2 %v1207_v21  ;;  %742 = vmatpush.xpose.msra.mxu1 %v1140_v57 }
  0xa4   :  { %715 = vmatmul.f32.vlgmr.msra.gmra.mxu0 %v1087_v63 }
  0xa5   :  { %752 = vmatmul.f32.vlgmr.msrb.gmra.mxu3 %v1147_v25 }
  0xa6   :  { %719 = vmatmul.f32.vlgmr.msrb.gmra.mxu2 %v1147_v25 }
  0xa7   :  { %744 = vmatpush.xpose.msra.mxu1 %v1167_v55 }
  0xab   :  { %746 = vmatpush.xpose.msra.mxu1 %v1186_v19 }
  0xae   :  { %748 = vmatmul.f32.vlgmr.msra.gmra.mxu1 %v1087_v63 }
  0xc5   :  { %v154_v61 = vpop.f32.mrf.mxu0 }
  0xc9   :  { %v321_v53 = vpop.f32.mrf.mxu2  ;;  %v263_v3 = vpop.f32.mrf.mxu1 }
  0xca   :  { %v365_v60 = vpop.f32.mrf.mxu3  ;;  %v264_v16 = vadd.f32 %v263_v3, %v154_v61 }
  0xcc   :  { %v322_v48 = vadd.f32 %v321_v53, %v264_v16 }
  0xce   :  { %v366_v25 = vadd.f32 %v365_v60, %v322_v48 }
  0xd1   :  { %v326_v0 = vpop.f32.mrf.mxu2  ;;  %v267_v47 = vpop.f32.mrf.mxu1 }
  0xd2   :  { %v371_v2 = vpop.f32.mrf.mxu3 }
  0xd4   :  { %v162_v6 = vpop.f32.mrf.mxu0 }
  0xd5   :  { %v268_v59 = vadd.f32 %v267_v47, %v162_v6 }
  0xd7   :  { %v327_v63 = vadd.f32 %v326_v0, %v268_v59 }
  0xd9   :  { %v372_v38 = vadd.f32 %v371_v2, %v327_v63 }
  0xe9   :  { %v518_v23 = vpop.f32.mrf.mxu2 }
  0xea   :  { %v587_v29 = vpop.f32.mrf.mxu3 }
  0xeb   :  { %v588_v11 = vadd.f32 %v587_v29, %v518_v23 }
  0xf1   :  { %v526_v62 = vpop.f32.mrf.mxu2 }
  0xf2   :  { %v591_v7 = vpop.f32.mrf.mxu3 }
  0xf3   :  { %v592_v22 = vadd.f32 %v591_v7, %v526_v62 }
 0x101   :  { %v440_v54 = vpop.f32.mrf.mxu0 }
 0x102   :  { %v441_v5 = vadd.f32 %v440_v54, %v366_v25 }
 0x108   :  { %v665_v1 = vpop.f32.mrf.mxu3 }
 0x109   :  { %v444_v36 = vpop.f32.mrf.mxu0  ;;  %v629_v55 = vpop.f32.mrf.mxu2 }
 0x10a   :  { %v445_v41 = vadd.f32 %v444_v36, %v372_v38  ;;  %v630_v4 = vadd.f32 %v629_v55, %v588_v11 }
 0x10c   :  { %v666_v17 = vadd.f32 %v665_v1, %v630_v4 }
 0x10d   :  { %v481_v27 = vpop.f32.mrf.mxu1 }
 0x10e   :  { %v482_v31 = vadd.f32 %v481_v27, %v441_v5 }
 0x110   :  { %756 = vst [vmem:[%s1330_s2] sm:$0xff] %v482_v31  ;;  %v671_v18 = vpop.f32.mrf.mxu3 }
 0x111   :  { %v634_v44 = vpop.f32.mrf.mxu2 }
 0x112   :  { %v635_v57 = vadd.f32 %v634_v44, %v592_v22 }
 0x114   :  { %v672_v26 = vadd.f32 %v671_v18, %v635_v57 }
 0x115   :  { %v485_v51 = vpop.f32.mrf.mxu1 }
 0x116   :  { %v486_v58 = vadd.f32 %v485_v51, %v445_v41 }
 0x118   :  { %758 = vst [vmem:[%s1330_s2 + $0x10] sm:$0xff] %v486_v58 }
 0x121   :  { %v716_v30 = vpop.f32.mrf.mxu0 }
 0x122   :  { %v717_v40 = vadd.f32 %v716_v30, %v666_v17 }
 0x128   :  { %v753_v50 = vpop.f32.mrf.mxu3 }
 0x129   :  { %v720_v34 = vpop.f32.mrf.mxu2 }
 0x12a   :  { %v721_v19 = vadd.f32 %v720_v34, %v672_v26 }
 0x12b   :  { %v749_v43 = vpop.f32.mrf.mxu1 }
 0x12c   :  { %v754_v37 = vadd.f32 %v753_v50, %v721_v19  ;;  %v750_v9 = vadd.f32 %v749_v43, %v717_v40 }
 0x12e   :  { %759 = vst.msk [vmem:[%s1330_s2 + $0x18] sm:$0xff] %vm37_vm0, %v754_v37 }
 0x12f   :  { %757 = vst.msk [vmem:[%s1330_s2 + $0x8] sm:$0xff] %vm37_vm0, %v750_v9 }

// kernel: attention_forward.5
= control target key start
LH: loop header
LB: loop body
LE: loop exit
PB: predicated region body
PF: predicated region fallthrough
CT: control target
= control target key end

     0   :  { %vm29_vm0 = vcmask 523264   ;;  %s563_s0 = inlined_call_operand.vmem [shape: f32[16,64], index: 0, kind: input, shape index: {}]   ;;  %s564_s1 = inlined_call_operand.vmem [shape: f32[64,64], index: 1, kind: input, shape index: {}]   ;;  %s565_s2 = inlined_call_operand.vmem [shape: f32[1,64], index: 2, kind: input, shape index: {}]   ;;  %s566_s3 = inlined_call_operand.hbm [shape: f32[16,64], index: 3, kind: output, shape index: {}]  }
   0x1   :  { %v24_v0 = vld [vmem:[%s564_s1 + $0x38] sm:$0xff]  ;;  %v23_v1 = vld [vmem:[%s564_s1 + $0x30] sm:$0xff]  ;;  %v22_v2 = vld [vmem:[%s564_s1 + $0x28] sm:$0xff] }
   0x2   :  { %v58_v3 = vsel %vm29_vm0, %v24_v0, 0  ;;  %v55_v4 = vsel %vm29_vm0, %v23_v1, 0  ;;  %v52_v5 = vsel %vm29_vm0, %v22_v2, 0  ;;  %v21_v6 = vld [vmem:[%s564_s1 + $0x20] sm:$0xff]  ;;  %v20_v7 = vld [vmem:[%s564_s1 + $0x18] sm:$0xff]  ;;  %v19_v17 = vld [vmem:[%s564_s1 + $0x10] sm:$0xff] }
   0x3   :  { %v435_v8 = vand.u32 4294901760, %v58_v3  ;;  %v437_v9 = vand.u32 4294901760, %v55_v4  ;;  %v439_v10 = vand.u32 4294901760, %v52_v5  ;;  %v49_v11 = vsel %vm29_vm0, %v21_v6, 0 }
   0x4   :  { %v442_v12 = vand.u32 4294901760, %v49_v11  ;;  %v46_v16 = vsel %vm29_vm0, %v20_v7, 0 }
   0x5   :  { %69 = vmatpush.xpose.msra.mxu0 %v435_v8  ;;  %v110_v13 = vsub.f32 %v58_v3, %v435_v8  ;;  %218 = vmatpush.xpose.msra.mxu3 %v435_v8  ;;  %v116_v14 = vsub.f32 %v55_v4, %v437_v9  ;;  %v122_v15 = vsub.f32 %v52_v5, %v439_v10 }
   0x6   :  { %8 = vsyncpa [#allocation3], 0  ;;  %v457_v20 = vand.u32 4294901760, %v46_v16  ;;  %v43_v21 = vsel %vm29_vm0, %v19_v17, 0  ;;  %v128_v24 = vsub.f32 %v49_v11, %v442_v12  ;;  %v18_v26 = vld [vmem:[%s564_s1 + $0x8] sm:$0xff]  ;;  %v15_v27 = vld [vmem:[%s563_s0] sm:$0xff] }
   0x7   :  { %176 = vmatpush.xpose.msra.mxu2 %v110_v13  ;;  %v453_v18 = vand.u32 4294901760, %v110_v13  ;;  %v455_v19 = vand.u32 4294901760, %v116_v14  ;;  %v465_v25 = vand.u32 4294901760, %v122_v15  ;;  %v474_v30 = vand.u32 4294901760, %v43_v21  ;;  %v17_v35 = vld [vmem:[%s564_s1] sm:$0xff]  ;;  %v16_v44 = vld [vmem:[%s563_s0 + $0x8] sm:$0xff] }
   0x8   :  { %v134_v29 = vsub.f32 %v46_v16, %v457_v20  ;;  %v40_v31 = vsel %vm29_vm0, %v18_v26, 0  ;;  %v479_v34 = vand.u32 4294901760, %v128_v24  ;;  %v31_v36 = vsel %vm29_vm0, %v15_v27, 0  ;;  %s394_s5 = smov [#allocation2]   ;;  %s395_s9 = smov 128  }
   0x9   :  { %71 = vmatpush.xpose.msra.mxu0 %v437_v9  ;;  %v112_v22 = vsub.f32 %v110_v13, %v453_v18  ;;  %220 = vmatpush.xpose.msra.mxu3 %v437_v9  ;;  %v118_v23 = vsub.f32 %v116_v14, %v455_v19  ;;  %v124_v33 = vsub.f32 %v122_v15, %v465_v25  ;;  %v486_v37 = vand.u32 4294901760, %v40_v31  ;;  %s334_s6 = sshll.u32 %s394_s5, 4  ;;  %s396_s10 = smov 8   ;;  %s335_s6 = int_to_ptr.vmem [resolvable:$true] %s334_s6 }
   0xa   :  { %v37_v38 = vsel %vm29_vm0, %v17_v35, 0  ;;  %v489_v39 = vand.u32 4294901760, %v31_v36  ;;  %v130_v41 = vsub.f32 %v128_v24, %v479_v34  ;;  %v140_v42 = vsub.f32 %v43_v21, %v474_v30 }
   0xb   :  { %179 = vmatpush.xpose.msra.mxu2 %v116_v14  ;;  %v113_v28 = vand.u32 4294901760, %v112_v22  ;;  %v119_v32 = vand.u32 4294901760, %v118_v23  ;;  %v125_v40 = vand.u32 4294901760, %v124_v33  ;;  %v494_v43 = vand.u32 4294901760, %v134_v29 }
   0xc   :  { %v500_v45 = vand.u32 4294901760, %v37_v38  ;;  %v85_v46 = vsub.f32 %v31_v36, %v489_v39  ;;  %v131_v47 = vand.u32 4294901760, %v130_v41  ;;  %v146_v49 = vsub.f32 %v40_v31, %v486_v37 }
   0xd   :  { %73 = vmatpush.xpose.msra.mxu0 %v439_v10  ;;  %114 = vmatpush.xpose.msra.mxu1 %v113_v28  ;;  %v136_v48 = vsub.f32 %v134_v29, %v494_v43  ;;  %v506_v50 = vand.u32 4294901760, %v140_v42  ;;  %v34_v51 = vsel %vm29_vm0, %v16_v44, 0 }
   0xe   :  { %222 = vmatpush.xpose.msra.mxu3 %v439_v10  ;;  %v152_v52 = vsub.f32 %v37_v38, %v500_v45  ;;  %v86_v53 = vand.u32 4294901760, %v85_v46  ;;  %v147_v56 = vand.u32 4294901760, %v146_v49  ;;  %v513_v57 = vand.u32 4294901760, %v34_v51 }
   0xf   :  { %182 = vmatpush.xpose.msra.mxu2 %v122_v15  ;;  %v137_v54 = vand.u32 4294901760, %v136_v48  ;;  %v142_v55 = vsub.f32 %v140_v42, %v506_v50 }
  0x10   :  { %v87_v58 = vsub.f32 %v85_v46, %v86_v53  ;;  %v148_v60 = vsub.f32 %v146_v49, %v147_v56  ;;  %v153_v61 = vand.u32 4294901760, %v152_v52  ;;  %v93_v62 = vsub.f32 %v34_v51, %v513_v57 }
  0x11   :  { %75 = vmatpush.xpose.msra.mxu0 %v442_v12  ;;  %120 = vmatpush.xpose.msra.mxu1 %v119_v32  ;;  %v143_v59 = vand.u32 4294901760, %v142_v55 }
  0x12   :  { %224 = vmatpush.xpose.msra.mxu3 %v442_v12  ;;  %v88_v63 = vand.u32 4294901760, %v87_v58  ;;  %v149_v0 = vand.u32 4294901760, %v148_v60  ;;  %v154_v1 = vsub.f32 %v152_v52, %v153_v61  ;;  %v94_v2 = vand.u32 4294901760, %v93_v62 }
  0x13   :  { %185 = vmatpush.xpose.msra.mxu2 %v128_v24 }
  0x14   :  { %v155_v3 = vand.u32 4294901760, %v154_v1  ;;  %v95_v4 = vsub.f32 %v93_v62, %v94_v2 }
  0x15   :  { %77 = vmatpush.xpose.msra.mxu0 %v457_v20  ;;  %126 = vmatpush.xpose.msra.mxu1 %v125_v40 }
  0x16   :  { %226 = vmatpush.xpose.msra.mxu3 %v457_v20  ;;  %v96_v5 = vand.u32 4294901760, %v95_v4 }
  0x17   :  { %188 = vmatpush.xpose.msra.mxu2 %v134_v29 }
  0x19   :  { %79 = vmatpush.xpose.msra.mxu0 %v474_v30  ;;  %132 = vmatpush.xpose.msra.mxu1 %v131_v47 }
  0x1a   :  { %228 = vmatpush.xpose.msra.mxu3 %v474_v30 }
  0x1b   :  { %191 = vmatpush.xpose.msra.mxu2 %v140_v42 }
  0x1d   :  { %81 = vmatpush.xpose.msra.mxu0 %v486_v37  ;;  %138 = vmatpush.xpose.msra.mxu1 %v137_v54 }
  0x1e   :  { %230 = vmatpush.xpose.msra.mxu3 %v486_v37 }
  0x1f   :  { %194 = vmatpush.xpose.msra.mxu2 %v146_v49 }
  0x21   :  { %83 = vmatpush.xpose.msra.mxu0 %v500_v45  ;;  %144 = vmatpush.xpose.msra.mxu1 %v143_v59 }
  0x22   :  { %232 = vmatpush.xpose.msra.mxu3 %v500_v45 }
  0x23   :  { %197 = vmatpush.xpose.msra.mxu2 %v152_v52 }
  0x24   :  { %89 = vmatmul.f32.vlgmr.msra.gmra.mxu0 %v88_v63 }
  0x25   :  { %257 = vmatpush.xpose.msrb.mxu0 %v453_v18  ;;  %150 = vmatpush.xpose.msra.mxu1 %v149_v0 }
  0x26   :  { %356 = vmatpush.xpose.msrb.mxu3 %v435_v8  ;;  %200 = vmatmul.f32.vlgmr.msra.gmra.mxu2 %v85_v46 }
  0x27   :  { %348 = vmatpush.xpose.msrb.mxu2 %v453_v18  ;;  %236 = vmatmul.f32.vlgmr.msra.gmra.mxu3 %v86_v53 }
  0x29   :  { %261 = vmatpush.xpose.msrb.mxu0 %v455_v19  ;;  %156 = vmatpush.xpose.msra.mxu1 %v155_v3 }
  0x2a   :  { %357 = vmatpush.xpose.msrb.mxu3 %v437_v9 }
  0x2b   :  { %349 = vmatpush.xpose.msrb.mxu2 %v455_v19 }
  0x2c   :  { %158 = vmatmul.f32.vlgmr.msra.gmra.mxu1 %v489_v39  ;;  %97 = vmatmul.f32.gmra.mxu0 %v96_v5 }
  0x2d   :  { %265 = vmatpush.xpose.msrb.mxu0 %v465_v25  ;;  %304 = vmatpush.xpose.msrb.mxu1 %v435_v8 }
  0x2e   :  { %358 = vmatpush.xpose.msrb.mxu3 %v439_v10  ;;  %205 = vmatmul.f32.gmra.mxu2 %v93_v62 }
  0x2f   :  { %350 = vmatpush.xpose.msrb.mxu2 %v465_v25  ;;  %242 = vmatmul.f32.gmra.mxu3 %v94_v2 }
  0x31   :  { %269 = vmatpush.xpose.msrb.mxu0 %v479_v34  ;;  %306 = vmatpush.xpose.msrb.mxu1 %v437_v9 }
  0x32   :  { %359 = vmatpush.xpose.msrb.mxu3 %v442_v12 }
  0x33   :  { %351 = vmatpush.xpose.msrb.mxu2 %v479_v34 }
  0x34   :  { %162 = vmatmul.f32.gmra.mxu1 %v513_v57 }
  0x35   :  { %273 = vmatpush.xpose.msrb.mxu0 %v494_v43  ;;  %308 = vmatpush.xpose.msrb.mxu1 %v439_v10  ;;  %v367_v10 = vld [vmem:[%s565_s2] ss:$0 sm:$0xff]  ;;  %s336_s2 = sshll.u32 %s566_s3, 4  ;;  %s337_s2 = int_to_ptr.hbm [resolvable:$true] %s336_s2 }
  0x36   :  { %360 = vmatpush.xpose.msrb.mxu3 %v457_v20 }
  0x37   :  { %352 = vmatpush.xpose.msrb.mxu2 %v494_v43 }
  0x39   :  { %277 = vmatpush.xpose.msrb.mxu0 %v506_v50  ;;  %310 = vmatpush.xpose.msrb.mxu1 %v442_v12 }
  0x3a   :  { %361 = vmatpush.xpose.msrb.mxu3 %v474_v30 }
  0x3b   :  { %353 = vmatpush.xpose.msrb.mxu2 %v506_v50 }
  0x3d   :  { %281 = vmatpush.xpose.msrb.mxu0 %v147_v56  ;;  %312 = vmatpush.xpose.msrb.mxu1 %v457_v20 }
  0x3e   :  { %362 = vmatpush.xpose.msrb.mxu3 %v486_v37 }
  0x3f   :  { %354 = vmatpush.xpose.msrb.mxu2 %v147_v56 }
  0x41   :  { %285 = vmatpush.xpose.msrb.mxu0 %v153_v61  ;;  %314 = vmatpush.xpose.msrb.mxu1 %v474_v30 }
  0x42   :  { %363 = vmatpush.xpose.msrb.mxu3 %v500_v45 }
  0x43   :  { %355 = vmatpush.xpose.msrb.mxu2 %v153_v61 }
  0x44   :  { %287 = vmatmul.f32.vlgmr.msrb.gmra.mxu0 %v489_v39 }
  0x45   :  { %316 = vmatpush.xpose.msrb.mxu1 %v486_v37  ;;  %324 = vmatmul.f32.vlgmr.msrb.gmra.mxu3 %v513_v57 }
  0x46   :  { %291 = vmatmul.f32.vlgmr.msrb.gmra.mxu2 %v513_v57 }
  0x49   :  { %318 = vmatpush.xpose.msrb.mxu1 %v500_v45 }
  0x4c   :  { %320 = vmatmul.f32.vlgmr.msrb.gmra.mxu1 %v489_v39 }
  0xa1   :  { %v90_v6 = vpop.f32.mrf.mxu0 }
  0xa2   :  { %v91_v11 = vadd.f32 %v367_v10, %v90_v6 }
  0xa9   :  { %v159_v7 = vpop.f32.mrf.mxu1  ;;  %v201_v9 = vpop.f32.mrf.mxu2 }
  0xaa   :  { %v237_v8 = vpop.f32.mrf.mxu3  ;;  %v98_v12 = vpop.f32.mrf.mxu0  ;;  %v160_v15 = vadd.f32 %v159_v7, %v91_v11 }
  0xab   :  { %v99_v13 = vadd.f32 %v367_v10, %v98_v12 }
  0xac   :  { %v202_v19 = vadd.f32 %v201_v9, %v160_v15 }
  0xae   :  { %v238_v22 = vadd.f32 %v237_v8, %v202_v19 }
  0xb1   :  { %v163_v14 = vpop.f32.mrf.mxu1  ;;  %v206_v17 = vpop.f32.mrf.mxu2 }
  0xb2   :  { %v243_v16 = vpop.f32.mrf.mxu3  ;;  %v164_v18 = vadd.f32 %v163_v14, %v99_v13 }
  0xb4   :  { %v207_v20 = vadd.f32 %v206_v17, %v164_v18 }
  0xb6   :  { %v244_v24 = vadd.f32 %v243_v16, %v207_v20 }
  0xc1   :  { %v288_v21 = vpop.f32.mrf.mxu0 }
  0xc2   :  { %v289_v23 = vadd.f32 %v288_v21, %v238_v22 }
  0xc8   :  { %v325_v25 = vpop.f32.mrf.mxu3 }
  0xc9   :  { %v292_v26 = vpop.f32.mrf.mxu2  ;;  %v321_v27 = vpop.f32.mrf.mxu1 }
  0xca   :  { %v293_v28 = vadd.f32 %v292_v26, %v244_v24  ;;  %v322_v29 = vadd.f32 %v321_v27, %v289_v23 }
  0xcc   :  { %328 = vst.msk [vmem:[#allocation2] sm:$0xff] %vm29_vm0, %v322_v29  ;;  %v326_v30 = vadd.f32 %v325_v25, %v293_v28 }
  0xce   :  { %329 = vst.msk [vmem:[#allocation2 + $0x8] sm:$0xff] %vm29_vm0, %v326_v30 }
  0xcf   :  { %342 = dma.vmem_to_hbm [thread:$0]  %s335_s6, 256, %s337_s2, [#allocation3], %s395_s9, %s395_s9, %s396_s10  }
  0xd0   :  { %392 = dma.done.wait [#allocation3], 256  }
  0xd1   :  { %393 = vsyncadd [#allocation3], 4294967040 }
  0xd2   :  { %347 = vsyncpa [#allocation3], 1 }

// kernel: attention_forward.4
= control target key start
LH: loop header
LB: loop body
LE: loop exit
PB: predicated region body
PF: predicated region fallthrough
CT: control target
= control target key end

     0   :  { %s4316_s12 = smov 0   ;;  %s4318_s13 = smov 0   ;;  %s5255_s0 = inlined_call_operand.vmem [shape: f32[2,8,3,8,8], index: 0, kind: input, shape index: {}, may-alias: {0,1,2}]   ;;  %s5256_s1 = inlined_call_operand.vmem [shape: f32[2,8,3,8,8], index: 1, kind: input, shape index: {}, may-alias: {0,1,2}]   ;;  %s5257_s2 = inlined_call_operand.vmem [shape: f32[2,8,3,8,8], index: 2, kind: input, shape index: {}, may-alias: {0,1,2}]   ;;  %s5258_s3 = inlined_call_operand.vmem [shape: f32[2,8,64], index: 3, kind: output, shape index: {}]  }
   0x1   :  { %s4320_s14 = smov 0   ;;  %s4322_s15 = smov 0  }
   0x2   :  { %s4324_s16 = smov 0  }
   0x3 LB: > { %s32_s17 = sadd.s32 1, %s4279_s15  ;;  %p48_p1 = scmp.ne.s32.totalorder %s4271_s13, %s4267_s12  ;;  %s4283_s16 = sphi %s4324_s16, %s13_s16   ;;  %s4279_s15 = sphi %s4322_s15, %s5277_s15   ;;  %s4275_s14 = sphi %s4320_s14, %s5276_s14   ;;  %s4271_s13 = sphi %s4318_s13, %s5275_s13   ;;  %s4267_s12 = sphi %s4316_s12, %s5274_s12  }
   0x4   : > { %p34_p0 = scmp.ge.s32.totalorder %s32_s17, 2  ;;  %p49_p2 = scmp.eq.s32.totalorder %s4283_s16, 0 }
   0x5   : > { %s41_s20 = sadd.s32 1, %s4271_s13  ;;  %p4126_p5 = scmp.ge.s32.totalorder %s4283_s16, 2 }
   0x6   : > { %s5279_s17 = smov (%p34_p0, %s32_s17), 0  ;;  %p4347_p3 = por %p49_p2, %p48_p1 }
   0x7   : > { %s36_s19 = ssub.s32 %s4279_s15, %s5279_s17  ;;  %158 = sbr.rel (%p4126_p5) target bundleno = 51 (0x33), region = 16 }
   0x8   : > { %p39_p4 = scmp.eq.s32.totalorder %s36_s19, 0 }
   0xa   : > { %s4355_s21 = scalar_select %p39_p4, %s4271_s13, %s41_s20  }
   0xc   : > { %161 = sbr.rel (!%p4347_p3) target bundleno = 25 (0x19), region = 20  ;;  %s163_s22 = sand.u32 (%p4347_p3), 1, %s4271_s13  }
   0xd   : > { %s4156_s23 = smul.u32 (%p4347_p3), 192, %s4279_s15  ;;  %s4127_s24 = sshll.u32 (%p4347_p3), %s163_s22, 6 }
   0xe   : > { %s165_s28 = scalar_lea.vmem (%p4347_p3), [#allocation6], %s4127_s24 }
   0xf   : > { %s171_s27 = scalar_lea.vmem (%p4347_p3), %s5255_s0, %s4156_s23 }
  0x10   : > { %v214_v0 = vld [vmem:[%s171_s27] sm:$0xff] (%p4347_p3)  ;;  %v216_v1 = vld [vmem:[%s171_s27 + $0x18] sm:$0xff] (%p4347_p3)  ;;  %v218_v2 = vld [vmem:[%s171_s27 + $0x30] sm:$0xff] (%p4347_p3) }
  0x11   : > { %215 = vst [vmem:[%s165_s28] sm:$0xff] %v214_v0  ;;  %v220_v3 = vld [vmem:[%s171_s27 + $0x48] sm:$0xff]  ;;  %v222_v4 = vld [vmem:[%s171_s27 + $0x60] sm:$0xff]  ;;  %v224_v5 = vld [vmem:[%s171_s27 + $0x78] sm:$0xff] }
  0x12   : > { %217 = vst [vmem:[%s165_s28 + $0x8] sm:$0xff] %v216_v1  ;;  %v226_v6 = vld [vmem:[%s171_s27 + $0x90] sm:$0xff]  ;;  %v228_v7 = vld [vmem:[%s171_s27 + $0xa8] sm:$0xff] }
  0x13   : > { %219 = vst [vmem:[%s165_s28 + $0x10] sm:$0xff] %v218_v2 }
  0x14   : > { %221 = vst [vmem:[%s165_s28 + $0x18] sm:$0xff] %v220_v3 }
  0x15   : > { %223 = vst [vmem:[%s165_s28 + $0x20] sm:$0xff] %v222_v4 }
  0x16   : > { %225 = vst [vmem:[%s165_s28 + $0x28] sm:$0xff] %v224_v5 }
  0x17   : > { %227 = vst [vmem:[%s165_s28 + $0x30] sm:$0xff] %v226_v6 }
  0x18   : > { %229 = vst [vmem:[%s165_s28 + $0x38] sm:$0xff] %v228_v7 }
  0x19 PF: > { %235 = sbr.rel (!%p4347_p3) target bundleno = 38 (0x26), region = 58  ;;  %s237_s29 = sand.u32 (%p4347_p3), 1, %s4271_s13  }
  0x1a   : > { %s4130_s30 = smul.u32 (%p4347_p3), 192, %s4279_s15  ;;  %s4129_s4 = sshll.u32 (%p4347_p3), %s237_s29, 6 }
  0x1b   : > { %s239_s8 = scalar_lea.vmem (%p4347_p3), [#allocation7], %s4129_s4 }
  0x1c   : > { %s4034_s7 = scalar_lea.vmem (%p4347_p3), %s5256_s1, %s4130_s30 }
  0x1d   : > { %v4131_v8 = vld [vmem:[%s4034_s7 + $0x8] sm:$0xff] (%p4347_p3)  ;;  %v4132_v9 = vld [vmem:[%s4034_s7 + $0x20] sm:$0xff] (%p4347_p3)  ;;  %v4133_v10 = vld [vmem:[%s4034_s7 + $0x38] sm:$0xff] (%p4347_p3) }
  0x1e   : > { %290 = vst [vmem:[%s239_s8] sm:$0xff] %v4131_v8  ;;  %v4134_v11 = vld [vmem:[%s4034_s7 + $0x50] sm:$0xff]  ;;  %v4135_v12 = vld [vmem:[%s4034_s7 + $0x68] sm:$0xff]  ;;  %v4136_v13 = vld [vmem:[%s4034_s7 + $0x80] sm:$0xff] }
  0x1f   : > { %292 = vst [vmem:[%s239_s8 + $0x8] sm:$0xff] %v4132_v9  ;;  %v4137_v14 = vld [vmem:[%s4034_s7 + $0x98] sm:$0xff]  ;;  %v4138_v15 = vld [vmem:[%s4034_s7 + $0xb0] sm:$0xff] }
  0x20   : > { %294 = vst [vmem:[%s239_s8 + $0x10] sm:$0xff] %v4133_v10 }
  0x21   : > { %296 = vst [vmem:[%s239_s8 + $0x18] sm:$0xff] %v4134_v11 }
  0x22   : > { %298 = vst [vmem:[%s239_s8 + $0x20] sm:$0xff] %v4135_v12 }
  0x23   : > { %300 = vst [vmem:[%s239_s8 + $0x28] sm:$0xff] %v4136_v13 }
  0x24   : > { %302 = vst [vmem:[%s239_s8 + $0x30] sm:$0xff] %v4137_v14 }
  0x25   : > { %304 = vst [vmem:[%s239_s8 + $0x38] sm:$0xff] %v4138_v15 }
  0x26 PF: > { %310 = sbr.rel (!%p4347_p3) target bundleno = 51 (0x33), region = 96  ;;  %s312_s9 = sand.u32 (%p4347_p3), 1, %s4271_s13  }
  0x27   : > { %s4140_s10 = smul.u32 (%p4347_p3), 192, %s4279_s15  ;;  %s4139_s11 = sshll.u32 (%p4347_p3), %s312_s9, 6 }
  0x28   : > { %s314_s23 = scalar_lea.vmem (%p4347_p3), [#allocation8], %s4139_s11 }
  0x29   : > { %s4042_s22 = scalar_lea.vmem (%p4347_p3), %s5257_s2, %s4140_s10 }
  0x2a   : > { %v4141_v16 = vld [vmem:[%s4042_s22 + $0x10] sm:$0xff] (%p4347_p3)  ;;  %v4142_v17 = vld [vmem:[%s4042_s22 + $0x28] sm:$0xff] (%p4347_p3)  ;;  %v4143_v18 = vld [vmem:[%s4042_s22 + $0x40] sm:$0xff] (%p4347_p3) }
  0x2b   : > { %365 = vst [vmem:[%s314_s23] sm:$0xff] %v4141_v16  ;;  %v4144_v19 = vld [vmem:[%s4042_s22 + $0x58] sm:$0xff]  ;;  %v4145_v20 = vld [vmem:[%s4042_s22 + $0x70] sm:$0xff]  ;;  %v4146_v21 = vld [vmem:[%s4042_s22 + $0x88] sm:$0xff] }
  0x2c   : > { %367 = vst [vmem:[%s314_s23 + $0x8] sm:$0xff] %v4142_v17  ;;  %v4147_v22 = vld [vmem:[%s4042_s22 + $0xa0] sm:$0xff]  ;;  %v4148_v23 = vld [vmem:[%s4042_s22 + $0xb8] sm:$0xff] }
  0x2d   : > { %369 = vst [vmem:[%s314_s23 + $0x10] sm:$0xff] %v4143_v18 }
  0x2e   : > { %371 = vst [vmem:[%s314_s23 + $0x18] sm:$0xff] %v4144_v19 }
  0x2f   : > { %373 = vst [vmem:[%s314_s23 + $0x20] sm:$0xff] %v4145_v20 }
  0x30   : > { %375 = vst [vmem:[%s314_s23 + $0x28] sm:$0xff] %v4146_v21 }
  0x31   : > { %377 = vst [vmem:[%s314_s23 + $0x30] sm:$0xff] %v4147_v22 }
  0x32   : > { %379 = vst [vmem:[%s314_s23 + $0x38] sm:$0xff] %v4148_v23 }
  0x33 PF: > { %p4149_p6 = scmp.ge.s32.totalorder %s4283_s16, 1  ;;  %p384_p7 = scmp.lt.s32.totalorder %s4283_s16, 3 }
  0x35   : > { %p385_p8 = pnand %p4149_p6, %p384_p7 }
  0x36   : > { %s391_s18 = sand.u32 (!%p385_p8), 1, %s4267_s12   ;;  %s4289_s27 = smov (!%p385_p8), 8  }
  0x37   : > { %388 = sbr.rel (%p385_p8) target bundleno = 1033 (0x409), region = 134  ;;  %s4382_s24 = sshll.u32 (!%p385_p8), %s391_s18, 6 }
  0x38   : > { %s4385_s25 = scalar_lea.vmem (!%p385_p8), [#allocation6], %s4382_s24  ;;  %s400_s12 = scalar_lea.vmem (!%p385_p8), [#allocation7], %s4382_s24 }
  0x39   : > { %s407_s26 = scalar_lea.vmem (!%p385_p8), [#allocation8], %s4382_s24  ;;  %s4290_s28 = smov (!%p385_p8), 24  }
  0x3a   : > { %s4291_s29 = smov (!%p385_p8), 16   ;;  %s4292_s30 = smov (!%p385_p8), 32  }
  0x3b   : > { %s4293_s4 = smov (!%p385_p8), 48   ;;  %s4294_s5 = smov (!%p385_p8), 40  }
  0x3c   : > { %v4388_v24 = vld [vmem:[%s4385_s25 + $0x10] sm:$0xff]  ;;  %v4391_v25 = vld [vmem:[%s4385_s25 + $0x18] sm:$0xff]  ;;  %v4285_v26 = vmov 1983009808   ;;  %v4400_v30 = vld [vmem:[%s400_s12] sm:$0xff]  ;;  %vm461_vm0 = vcmask 1047556  }
  0x3d   : > { %v466_v27 = vunpack.c.l.s4 %v4285_v26  ;;  %v4394_v28 = vld [vmem:[%s4385_s25 + $0x30] sm:$0xff]  ;;  %v4397_v29 = vld [vmem:[%s4385_s25 + $0x38] sm:$0xff]  ;;  %v4403_v31 = vld [vmem:[%s4385_s25 + $0x28] sm:$0xff]  ;;  %v473_v32 = vrot.slane %v4391_v25, 4  ;;  %v460_v36 = vrot.slane %v4388_v24, 4  ;;  %vm581_vm1 = vcmask 64512  }
  0x3e   : > { %v4406_v33 = vld [vmem:[%s400_s12 + $0x8] sm:$0xff]  ;;  %v4408_v34 = vld [vmem:[%s400_s12 + $0x10] sm:$0xff]  ;;  %v4410_v35 = vld [vmem:[%s400_s12 + $0x18] sm:$0xff]  ;;  %v497_v37 = vrot.slane %v4397_v29, 4  ;;  %v4286_v44 = vmov 1934713408  }
  0x3f   : > { %v4414_v38 = vld [vmem:[%s400_s12 + $0x20] sm:$0xff]  ;;  %v4416_v39 = vld [vmem:[%s400_s12 + $0x28] sm:$0xff]  ;;  %v4418_v40 = vld [vmem:[%s400_s12 + $0x30] sm:$0xff]  ;;  %v608_v41 = vrot.slane %v4408_v34, 4  ;;  %v621_v42 = vrot.slane %v4410_v35, 4  ;;  %v4422_v43 = vunpack.c.0.s8 %v466_v27  ;;  %v514_v45 = vunpack.c.l.s4 %v4286_v44  ;;  %s4295_s6 = smov 56  }
  0x40   : > { %v4424_v46 = vld [vmem:[%s400_s12 + $0x38] sm:$0xff]  ;;  %v633_v47 = vrot.slane %v4418_v40, 4  ;;  %v4428_v48 = vld [vmem:[%s4385_s25] sm:$0xff]  ;;  %v4431_v49 = vld [vmem:[%s4385_s25 + $0x8] sm:$0xff]  ;;  %v485_v50 = vrot.slane %v4394_v28, 4  ;;  %v498_v62 = vsel %vm461_vm0, %v497_v37, %v4403_v31  ;;  %v499_v14 = vrot.slane %v4403_v31, 4 }
  0x41   : > { %v610_v51 = vsel %vm461_vm0, %v608_v41, %v4400_v30  ;;  %v622_v52 = vsel %vm461_vm0, %v621_v42, %v4406_v33  ;;  %v645_v53 = vrot.slane %v4424_v46, 4  ;;  %v4444_v57 = vld [vmem:[%s4385_s25 + $0x20] sm:$0xff]  ;;  %v462_v58 = vsel %vm461_vm0, %v460_v36, %v4428_v48  ;;  %p441_p9 = scmp.lt.s32.totalorder %s4275_s14, 1 }
  0x42   : > { %v616_v54 = vperm.slane %v610_v51, %v4422_v43  ;;  %v628_v55 = vperm.slane %v622_v52, %v4422_v43  ;;  %v634_v56 = vsel %vm461_vm0, %v633_v47, %v4414_v38  ;;  %v474_v61 = vsel %vm461_vm0, %v473_v32, %v4431_v49 }
  0x43   : > { %v640_v59 = vperm.slane %v634_v56, %v4422_v43  ;;  %v646_v60 = vsel %vm461_vm0, %v645_v53, %v4416_v39  ;;  %v4455_v63 = vunpack.c.0.s8 %v514_v45  ;;  %v468_v3 = vperm.slane %v462_v58, %v4422_v43  ;;  %s5281_s14 = smov (!%p441_p9, %s4275_s14), 1 }
  0x44   : > { %v652_v0 = vperm.slane %v646_v60, %v4422_v43  ;;  %v657_v1 = vrot.slane %v628_v55, 4  ;;  %v480_v4 = vperm.slane %v474_v61, %v4422_v43  ;;  %v486_v5 = vsel %vm461_vm0, %v485_v50, %v4444_v57  ;;  %s4153_s7 = sshll.u32 %s5281_s14, 3 }
  0x45   : > { %v683_v2 = vrot.slane %v640_v59, 4  ;;  %v492_v8 = vperm.slane %v486_v5, %v4422_v43  ;;  %v504_v9 = vperm.slane %v498_v62, %v4422_v43  ;;  %v659_v10 = vrot.slane %v616_v54, 4  ;;  %s447_s10 = scalar_lea.vmem %s5258_s3, %s4153_s7 }
  0x46   : > { %v658_v6 = vsel %vm461_vm0, %v657_v1, %v616_v54  ;;  %v681_v7 = vrot.slane %v652_v0, 4  ;;  %v509_v12 = vrot.slane %v480_v4, 4  ;;  %v511_v13 = vrot.slane %v468_v3, 4 }
  0x47   : > { %v664_v11 = vperm.slane %v658_v6, %v4455_v63  ;;  %v533_v16 = vrot.slane %v504_v9, 4  ;;  %v535_v17 = vrot.slane %v492_v8, 4  ;;  %v684_v21 = vsel %vm461_vm0, %v652_v0, %v683_v2 }
  0x48   : > { %v682_v15 = vsel %vm461_vm0, %v681_v7, %v640_v59  ;;  %v510_v20 = vsel %vm461_vm0, %v509_v12, %v468_v3  ;;  %v692_v26 = vperm.slane %v684_v21, %v4455_v63  ;;  %v512_v27 = vsel %vm461_vm0, %v480_v4, %v511_v13 }
  0x49   : > { %v688_v18 = vperm.slane %v682_v15, %v4455_v63  ;;  %v707_v19 = vrot.slane %v664_v11, 4  ;;  %v516_v22 = vperm.slane %v510_v20, %v4455_v63  ;;  %v534_v23 = vsel %vm461_vm0, %v533_v16, %v492_v8 }
  0x4a   : > { %v540_v32 = vperm.slane %v534_v23, %v4455_v63  ;;  %v660_v37 = vsel %vm461_vm0, %v628_v55, %v659_v10  ;;  %v709_v45 = vrot.slane %v692_v26, 4  ;;  %v520_v52 = vperm.slane %v512_v27, %v4455_v63 }
  0x4b   : > { %v705_v31 = vrot.slane %v688_v18, 4  ;;  %v708_v36 = vsel %vm461_vm0, %v688_v18, %v707_v19  ;;  %v559_v41 = vrot.slane %v516_v22, 4  ;;  %v668_v44 = vperm.slane %v660_v37, %v4455_v63 }
  0x4c   : > { %v1006_v42 = vsel %vm581_vm1, %v708_v36, 0  ;;  %v557_v50 = vrot.slane %v540_v32, 4  ;;  %v536_v55 = vsel %vm461_vm0, %v504_v9, %v535_v17  ;;  %v563_v2 = vrot.slane %v520_v52, 4 }
  0x4d   : > { %v706_v47 = vsel %vm461_vm0, %v705_v31, %v664_v11  ;;  %v4481_v51 = vand.u32 4294901760, %v1006_v42  ;;  %v560_v54 = vsel %vm461_vm0, %v540_v32, %v559_v41  ;;  %v710_v56 = vsel %vm461_vm0, %v709_v45, %v668_v44 }
  0x4e   : > { %v854_v53 = vsel %vm581_vm1, %v706_v47, 0  ;;  %v558_v59 = vsel %vm461_vm0, %v557_v50, %v516_v22  ;;  %v574_v61 = vmul.f32 0.35355338, %v560_v54  ;;  %v1158_v0 = vsel %vm581_vm1, %v710_v56, 0 }
  0x4f   : > { %v871_v58 = vand.u32 4294901760, %v854_v53  ;;  %v4490_v60 = vsub.f32 %v1006_v42, %v4481_v51  ;;  %v573_v62 = vmul.f32 0.35355338, %v558_v59  ;;  %v544_v1 = vperm.slane %v536_v55, %v4455_v63 }
  0x50   : > { %583 = vst.msk [vmem:[#allocation2 + $0x8] sm:$0xff] %vm581_vm1, %v574_v61  ;;  %v4496_v5 = vand.u32 4294901760, %v1158_v0  ;;  %v711_v10 = vrot.slane %v668_v44, 4  ;;  %v500_v12 = vsel %vm461_vm0, %v4397_v29, %v499_v14  ;;  %v475_v13 = vrot.slane %v4431_v49, 4 }
  0x51   : > { %v898_v3 = vsub.f32 %v854_v53, %v871_v58  ;;  %948 = vmatpush.xpose.msra.mxu3 %v871_v58  ;;  %872 = vmatpush.xpose.msra.mxu0 %v871_v58  ;;  %v1051_v4 = vand.u32 4294901760, %v4490_v60  ;;  %582 = vst.msk [vmem:[#allocation2] sm:$0xff] %vm581_vm1, %v573_v62  ;;  %v561_v6 = vrot.slane %v544_v1, 4  ;;  %v564_v7 = vsel %vm461_vm0, %v544_v1, %v563_v2 }
  0x52   : > { %v576_v11 = vmul.f32 0.35355338, %v564_v7  ;;  %v487_v15 = vrot.slane %v4444_v57, 4  ;;  %v4510_v19 = vsub.f32 %v1158_v0, %v4496_v5  ;;  %v712_v29 = vsel %vm461_vm0, %v692_v26, %v711_v10 }
  0x53   : > { %925 = vmatpush.xpose.msra.mxu2 %v898_v3  ;;  %v899_v8 = vand.u32 4294901760, %v898_v3  ;;  %v1052_v9 = vsub.f32 %v4490_v60, %v1051_v4  ;;  %v562_v16 = vsel %vm461_vm0, %v561_v6, %v520_v52  ;;  %v4516_v49 = vperm.slane %v500_v12, %v4422_v43 }
  0x54   : > { %v575_v20 = vmul.f32 0.35355338, %v562_v16  ;;  %585 = vst.msk [vmem:[#allocation2 + $0x18] sm:$0xff] %vm581_vm1, %v576_v11  ;;  %v647_v57 = vrot.slane %v4416_v39, 4  ;;  %v463_v14 = vrot.slane %v4428_v48, 4  ;;  %v476_v23 = vsel %vm461_vm0, %v4391_v25, %v475_v13 }
  0x55   : > { %v900_v17 = vsub.f32 %v898_v3, %v899_v8  ;;  %974 = vmatpush.xpose.msrb.mxu0 %v899_v8  ;;  %v1053_v18 = vand.u32 4294901760, %v1052_v9  ;;  %v623_v27 = vrot.slane %v4406_v33, 4  ;;  %v1203_v36 = vand.u32 4294901760, %v4510_v19 }
  0x56   : > { %584 = vst.msk [vmem:[#allocation2 + $0x10] sm:$0xff] %vm581_vm1, %v575_v20  ;;  %v488_v26 = vsel %vm461_vm0, %v4394_v28, %v487_v15  ;;  %v635_v37 = vrot.slane %v4414_v38, 4  ;;  %v1310_v25 = vsel %vm581_vm1, %v712_v29, 0  ;;  %v611_v33 = vrot.slane %v4400_v30, 4 }
  0x57   : > { %1024 = vmatpush.xpose.msrb.mxu2 %v4481_v51  ;;  %v901_v21 = vand.u32 4294901760, %v900_v17  ;;  %1054 = vmatpush.xpose.msrb.mxu3 %v1053_v18  ;;  %v842_v22 = vld [vmem:[#allocation2 + $0x8] sm:$0xff]  ;;  %v4536_v42 = vperm.slane %v476_v23, %v4422_v43  ;;  %v545_v44 = vrot.slane %v4516_v49, 4  ;;  %v648_v38 = vsel %vm461_vm0, %v4424_v46, %v647_v57 }
  0x58   : > { %v841_v31 = vld [vmem:[#allocation2] sm:$0xff]  ;;  %v1003_v32 = vsel %vm581_vm1, %v842_v22, 0  ;;  %v464_v45 = vsel %vm461_vm0, %v4388_v24, %v463_v14  ;;  %v4547_v47 = vperm.slane %v488_v26, %v4422_v43  ;;  %v1204_v50 = vsub.f32 %v4510_v19, %v1203_v36 }
  0x59   : > { %902 = vmatpush.xpose.msra.mxu1 %v901_v21  ;;  %v851_v39 = vsel %vm581_vm1, %v841_v31, 0  ;;  %v4529_v48 = vand.u32 4294901760, %v1003_v32  ;;  %v4554_v52 = vand.u32 4294901760, %v1310_v25  ;;  %v624_v24 = vsel %vm461_vm0, %v4410_v35, %v623_v27 }
  0x5a   : > { %v4533_v41 = vand.u32 4294901760, %v851_v39  ;;  %v636_v46 = vsel %vm461_vm0, %v4418_v40, %v635_v37  ;;  %v4563_v54 = vperm.slane %v648_v38, %v4422_v43  ;;  %v4566_v55 = vperm.slane %v624_v24, %v4422_v43 }
  0x5b   : > { %v4540_v28 = vsub.f32 %v1003_v32, %v4529_v48  ;;  %v521_v59 = vrot.slane %v4536_v42, 4  ;;  %v612_v35 = vsel %vm461_vm0, %v4408_v34, %v611_v33  ;;  %v546_v40 = vsel %vm461_vm0, %v545_v44, %v4547_v47 }
  0x5c   : > { %v874_v30 = vsub.f32 %v851_v39, %v4533_v41  ;;  %904 = vmatmul.f32.vlgmr.msra.gmra.mxu1 %v4533_v41  ;;  %v4580_v0 = vperm.slane %v612_v35, %v4422_v43  ;;  %v4583_v1 = vperm.slane %v636_v46, %v4422_v43  ;;  %v669_v2 = vrot.slane %v4566_v55, 4 }
  0x5d   : > { %996 = vmatpush.xpose.msrb.mxu1 %v871_v58  ;;  %v1027_v53 = vand.u32 4294901760, %v4540_v28  ;;  %v4569_v58 = vperm.slane %v464_v45, %v4422_v43  ;;  %v4588_v6 = vsub.f32 %v1310_v25, %v4554_v52  ;;  %v693_v34 = vrot.slane %v4563_v54, 4  ;;  %v843_v8 = vld [vmem:[#allocation2 + $0x10] sm:$0xff] }
  0x5e   : > { %928 = vmatmul.f32.vlgmr.msra.gmra.mxu2 %v874_v30  ;;  %v875_v56 = vand.u32 4294901760, %v874_v30  ;;  %v670_v9 = vsel %vm461_vm0, %v669_v2, %v4580_v0  ;;  %v552_v11 = vperm.slane %v546_v40, %v4455_v63  ;;  %v1155_v18 = vsel %vm581_vm1, %v843_v8, 0 }
  0x5f   : > { %v1028_v61 = vsub.f32 %v4540_v28, %v1027_v53  ;;  %1126 = vmatpush.xpose.msra.mxu2 %v1051_v4  ;;  %v1205_v4 = vand.u32 4294901760, %v1204_v50  ;;  %v522_v10 = vsel %vm461_vm0, %v521_v59, %v4569_v58  ;;  %v694_v12 = vsel %vm461_vm0, %v693_v34, %v4583_v1 }
  0x60   : > { %952 = vmatmul.f32.vlgmr.msra.gmra.mxu3 %v875_v56  ;;  %v876_v62 = vsub.f32 %v874_v30, %v875_v56  ;;  %v676_v13 = vperm.slane %v670_v9, %v4455_v63  ;;  %v700_v15 = vperm.slane %v694_v12, %v4455_v63  ;;  %v528_v16 = vperm.slane %v522_v10, %v4455_v63 }
  0x61   : > { %1100 = vmatpush.xpose.msra.mxu1 %v4481_v51  ;;  %v1029_v3 = vand.u32 4294901760, %v1028_v61  ;;  %1148 = vmatpush.xpose.msra.mxu3 %v4481_v51  ;;  %v844_v51 = vld [vmem:[#allocation2 + $0x18] sm:$0xff]  ;;  %v565_v17 = vrot.slane %v552_v11, 4  ;;  %v1355_v20 = vand.u32 4294901760, %v4588_v6  ;;  %v4609_v23 = vand.u32 4294901760, %v1155_v18 }
  0x62   : > { %v877_v7 = vand.u32 4294901760, %v876_v62  ;;  %v713_v21 = vrot.slane %v700_v15, 4  ;;  %v567_v57 = vrot.slane %v528_v16, 4  ;;  %v1307_v14 = vsel %vm581_vm1, %v844_v51, 0 }
  0x63   : > { %v566_v29 = vsel %vm461_vm0, %v565_v17, %v528_v16  ;;  %v1356_v31 = vsub.f32 %v4588_v6, %v1355_v20  ;;  %v4617_v37 = vand.u32 4294901760, %v1307_v14  ;;  %v715_v25 = vrot.slane %v676_v13, 4 }
  0x64   : > { %878 = vmatmul.f32.vlgmr.msra.gmra.mxu0 %v877_v7  ;;  %998 = vmatmul.f32.vlgmr.msrb.gmra.mxu1 %v4533_v41  ;;  %v577_v22 = vmul.f32 0.35355338, %v566_v29  ;;  %v568_v27 = vsel %vm461_vm0, %v552_v11, %v567_v57  ;;  %v1178_v33 = vsub.f32 %v1155_v18, %v4609_v23  ;;  %v547_v30 = vrot.slane %v4547_v47, 4 }
  0x65   : > { %1077 = vmatpush.xpose.msra.mxu0 %v4490_v60  ;;  %1206 = vmatpush.xpose.msrb.mxu1 %v1205_v4  ;;  %v714_v60 = vsel %vm461_vm0, %v713_v21, %v676_v13  ;;  %v578_v26 = vmul.f32 0.35355338, %v568_v27  ;;  %v1357_v44 = vand.u32 4294901760, %v1356_v31  ;;  %v4631_v45 = vsub.f32 %v1307_v14, %v4617_v37 }
  0x66   : > { %1030 = vmatmul.f32.vlgmr.msrb.gmra.mxu2 %v1029_v3  ;;  %v1462_v32 = vsel %vm581_vm1, %v714_v60, 0  ;;  %586 = vst.msk [vmem:[#allocation2 + $0x20] sm:$0xff] %vm581_vm1, %v577_v22  ;;  %v1179_v50 = vand.u32 4294901760, %v1178_v33  ;;  %v548_v24 = vsel %vm461_vm0, %v4516_v49, %v547_v30  ;;  %vm2109_vm2 = vcmask 1041409  }
  0x67   : > { %1229 = vmatpush.xpose.msrb.mxu2 %v4510_v19  ;;  %v4619_v39 = vand.u32 4294901760, %v1462_v32  ;;  %587 = vst.msk [vmem:[#allocation2 + $0x28] sm:$0xff] %vm581_vm1, %v578_v26  ;;  %v1331_v46 = vand.u32 4294901760, %v4631_v45  ;;  %v556_v59 = vperm.slane %v548_v24, %v4455_v63  ;;  %vm2111_vm3 = vcmask 1042434  }
  0x68   : > { %1056 = vmatmul.f32.vlgmr.msrb.gmra.mxu3 %v4529_v48  ;;  %vm2113_vm4 = vcmask 1043459   ;;  %vm2115_vm5 = vcmask 1044484   ;;  %vm2117_vm6 = vcmask 1045509   ;;  %vm2119_vm7 = vcmask 1046534  }
  0x69   : > { %1252 = vmatpush.xpose.msrb.mxu3 %v4496_v5  ;;  %v4627_v38 = vsub.f32 %v1462_v32, %v4619_v39  ;;  %vm2121_vm8 = vcmask 1047559  }
  0x6c   : > { %976 = vmatmul.f32.vlgmr.msrb.gmra.mxu0 %v4533_v41  ;;  %1104 = vmatmul.f32.vlgmr.msra.gmra.mxu1 %v1027_v53  ;;  %v716_v41 = vsel %vm461_vm0, %v700_v15, %v715_v25  ;;  %v523_v53 = vrot.slane %v4569_v58, 4  ;;  %v569_v58 = vrot.slane %v556_v59, 4 }
  0x6d   : > { %1176 = vmatpush.xpose.msrb.mxu0 %v4496_v5  ;;  %1300 = vmatpush.xpose.msra.mxu1 %v4496_v5  ;;  %v1507_v5 = vand.u32 4294901760, %v4627_v38  ;;  %v1614_v56 = vsel %vm581_vm1, %v716_v41, 0  ;;  %v845_v7 = vld [vmem:[#allocation2 + $0x20] sm:$0xff] }
  0x6e   : > { %1128 = vmatmul.f32.vlgmr.msra.gmra.mxu2 %v4529_v48  ;;  %v524_v47 = vsel %vm461_vm0, %v4536_v42, %v523_v53  ;;  %v4655_v35 = vand.u32 4294901760, %v1614_v56  ;;  %v1332_v42 = vsub.f32 %v4631_v45, %v1331_v46  ;;  %v1459_v11 = vsel %vm581_vm1, %v845_v7, 0 }
  0x6f   : > { %1328 = vmatpush.xpose.msra.mxu2 %v4554_v52  ;;  %v532_v61 = vperm.slane %v524_v47, %v4455_v63  ;;  %v1508_v49 = vsub.f32 %v4627_v38, %v1507_v5 }
  0x70   : > { %1150 = vmatmul.f32.vlgmr.msra.gmra.mxu3 %v4529_v48  ;;  %v1180_v48 = vsub.f32 %v1178_v33, %v1179_v50  ;;  %v4665_v4 = vsub.f32 %v1614_v56, %v4655_v35 }
  0x71   : > { %1358 = vmatpush.xpose.msra.mxu3 %v1357_v44  ;;  %v570_v40 = vsel %vm461_vm0, %v569_v58, %v532_v61  ;;  %v1509_v3 = vand.u32 4294901760, %v1508_v49  ;;  %v571_v9 = vrot.slane %v532_v61, 4 }
  0x72   : > { %v579_v62 = vmul.f32 0.35355338, %v570_v40  ;;  %v1181_v19 = vand.u32 4294901760, %v1180_v48  ;;  %v1659_v12 = vand.u32 4294901760, %v4665_v4 }
  0x74   : > { %1080 = vmatmul.f32.vlgmr.msra.gmra.mxu0 %v4540_v28  ;;  %1208 = vmatmul.f32.vlgmr.msrb.gmra.mxu1 %v4609_v23  ;;  %v695_v28 = vrot.slane %v4583_v1, 4  ;;  %588 = vst.msk [vmem:[#allocation2 + $0x30] sm:$0xff] %vm581_vm1, %v579_v62  ;;  %v1333_v1 = vand.u32 4294901760, %v1332_v42  ;;  %v1660_v16 = vsub.f32 %v4665_v4, %v1659_v12 }
  0x75   : > { %1278 = vmatpush.xpose.msra.mxu0 %v1203_v36  ;;  %1404 = vmatpush.xpose.msrb.mxu1 %v4554_v52  ;;  %v671_v36 = vrot.slane %v4580_v0, 4 }
  0x76   : > { %1232 = vmatmul.f32.vlgmr.msrb.gmra.mxu2 %v1178_v33  ;;  %v696_v2 = vsel %vm461_vm0, %v4563_v54, %v695_v28  ;;  %v572_v54 = vsel %vm461_vm0, %v556_v59, %v571_v9  ;;  %v1661_v29 = vand.u32 4294901760, %v1660_v16 }
  0x77   : > { %1430 = vmatpush.xpose.msrb.mxu2 %v1355_v20  ;;  %v704_v34 = vperm.slane %v696_v2, %v4455_v63  ;;  %v672_v8 = vsel %vm461_vm0, %v4566_v55, %v671_v36  ;;  %v580_v55 = vmul.f32 0.35355338, %v572_v54 }
  0x78   : > { %1256 = vmatmul.f32.vlgmr.msrb.gmra.mxu3 %v1179_v50  ;;  %v680_v0 = vperm.slane %v672_v8, %v4455_v63 }
  0x79   : > { %1452 = vmatpush.xpose.msrb.mxu3 %v4554_v52  ;;  %v717_v10 = vrot.slane %v704_v34, 4  ;;  %v846_v52 = vld [vmem:[#allocation2 + $0x28] sm:$0xff]  ;;  %589 = vst.msk [vmem:[#allocation2 + $0x38] sm:$0xff] %vm581_vm1, %v580_v55 }
  0x7a   : > { %v1611_v15 = vsel %vm581_vm1, %v846_v52, 0  ;;  %v719_v20 = vrot.slane %v680_v0, 4 }
  0x7b   : > { %v718_v51 = vsel %vm461_vm0, %v717_v10, %v680_v0  ;;  %v1633_v18 = vand.u32 4294901760, %v1611_v15 }
  0x7c   : > { %1182 = vmatmul.f32.vlgmr.msrb.gmra.mxu0 %v1181_v19  ;;  %1302 = vmatmul.f32.vlgmr.msra.gmra.mxu1 %v4609_v23  ;;  %v1766_v13 = vsel %vm581_vm1, %v718_v51, 0  ;;  %v720_v22 = vsel %vm461_vm0, %v704_v34, %v719_v20 }
  0x7d   : > { %1381 = vmatpush.xpose.msrb.mxu0 %v4588_v6  ;;  %1510 = vmatpush.xpose.msra.mxu1 %v1509_v3  ;;  %v1481_v6 = vand.u32 4294901760, %v1459_v11  ;;  %v1783_v17 = vand.u32 4294901760, %v1766_v13  ;;  %v1634_v14 = vsub.f32 %v1611_v15, %v1633_v18  ;;  %v1918_v31 = vsel %vm581_vm1, %v720_v22, 0 }
  0x7e   : > { %1334 = vmatmul.f32.vlgmr.msra.gmra.mxu2 %v1333_v1 }
  0x7f   : > { %1533 = vmatpush.xpose.msra.mxu2 %v4627_v38  ;;  %v1482_v21 = vsub.f32 %v1459_v11, %v1481_v6  ;;  %v1810_v57 = vsub.f32 %v1766_v13, %v1783_v17  ;;  %v1635_v27 = vand.u32 4294901760, %v1634_v14 }
  0x80   : > { %1360 = vmatmul.f32.vlgmr.msra.gmra.mxu3 %v4617_v37  ;;  %v848_v30 = vld [vmem:[#allocation2 + $0x38] sm:$0xff] }
  0x81   : > { %1556 = vmatpush.xpose.msra.mxu3 %v4619_v39  ;;  %v1483_v60 = vand.u32 4294901760, %v1482_v21  ;;  %v1636_v25 = vsub.f32 %v1634_v14, %v1635_v27 }
  0x83   : > { %v1484_v32 = vsub.f32 %v1482_v21, %v1483_v60  ;;  %v1637_v41 = vand.u32 4294901760, %v1636_v25 }
  0x84   : > { %1280 = vmatmul.f32.vlgmr.msra.gmra.mxu0 %v4609_v23  ;;  %1408 = vmatmul.f32.vlgmr.msrb.gmra.mxu1 %v1331_v46  ;;  %v1811_v23 = vand.u32 4294901760, %v1810_v57 }
  0x85   : > { %1480 = vmatpush.xpose.msra.mxu0 %v4619_v39  ;;  %1604 = vmatpush.xpose.msrb.mxu1 %v4619_v39  ;;  %v1935_v39 = vand.u32 4294901760, %v1918_v31 }
  0x86   : > { %1432 = vmatmul.f32.vlgmr.msrb.gmra.mxu2 %v4617_v37  ;;  %v1812_v26 = vsub.f32 %v1810_v57, %v1811_v23 }
  0x87   : > { %1632 = vmatpush.xpose.msrb.mxu2 %v4655_v35  ;;  %v1962_v44 = vsub.f32 %v1918_v31, %v1935_v39 }
  0x88   : > { %1454 = vmatmul.f32.vlgmr.msrb.gmra.mxu3 %v4617_v37  ;;  %v1485_v37 = vand.u32 4294901760, %v1484_v32  ;;  %v1813_v33 = vand.u32 4294901760, %v1812_v26 }
  0x89   : > { %1662 = vmatpush.xpose.msrb.mxu3 %v1661_v29  ;;  %v1963_v50 = vand.u32 4294901760, %v1962_v44 }
  0x8b   : > { %v1964_v24 = vsub.f32 %v1962_v44, %v1963_v50 }
  0x8c   : > { %1384 = vmatmul.f32.vlgmr.msrb.gmra.mxu0 %v4631_v45  ;;  %1512 = vmatmul.f32.vlgmr.msra.gmra.mxu1 %v1481_v6  ;;  %v847_v45 = vld [vmem:[#allocation2 + $0x30] sm:$0xff] }
  0x8d   : > { %1582 = vmatpush.xpose.msrb.mxu0 %v1507_v5  ;;  %1708 = vmatpush.xpose.msra.mxu1 %v4655_v35  ;;  %v1763_v38 = vsel %vm581_vm1, %v847_v45, 0  ;;  %v1915_v5 = vsel %vm581_vm1, %v848_v30, 0  ;;  %v1965_v59 = vand.u32 4294901760, %v1964_v24 }
  0x8e   : > { %1536 = vmatmul.f32.vlgmr.msra.gmra.mxu2 %v1482_v21  ;;  %v1785_v53 = vand.u32 4294901760, %v1763_v38  ;;  %v1937_v46 = vand.u32 4294901760, %v1915_v5 }
  0x8f   : > { %1734 = vmatpush.xpose.msra.mxu2 %v1659_v12 }
  0x90   : > { %1560 = vmatmul.f32.vlgmr.msra.gmra.mxu3 %v1483_v60  ;;  %v1786_v56 = vsub.f32 %v1763_v38, %v1785_v53  ;;  %v1938_v47 = vsub.f32 %v1915_v5, %v1937_v46 }
  0x91   : > { %1756 = vmatpush.xpose.msra.mxu3 %v4655_v35 }
  0x92   : > { %v1787_v48 = vand.u32 4294901760, %v1786_v56  ;;  %v1939_v61 = vand.u32 4294901760, %v1938_v47 }
  0x94   : > { %1486 = vmatmul.f32.vlgmr.msra.gmra.mxu0 %v1485_v37  ;;  %1606 = vmatmul.f32.vlgmr.msrb.gmra.mxu1 %v1481_v6  ;;  %v1788_v58 = vsub.f32 %v1786_v56, %v1787_v48  ;;  %v1940_v49 = vsub.f32 %v1938_v47, %v1939_v61 }
  0x95   : > { %1685 = vmatpush.xpose.msra.mxu0 %v4665_v4  ;;  %1814 = vmatpush.xpose.msrb.mxu1 %v1813_v33 }
  0x96   : > { %1638 = vmatmul.f32.vlgmr.msrb.gmra.mxu2 %v1637_v41  ;;  %v1789_v35 = vand.u32 4294901760, %v1788_v58  ;;  %v1941_v42 = vand.u32 4294901760, %v1940_v49 }
  0x97   : > { %1837 = vmatpush.xpose.msrb.mxu2 %v1810_v57 }
  0x98   : > { %1664 = vmatmul.f32.vlgmr.msrb.gmra.mxu3 %v1633_v18 }
  0x99   : > { %1860 = vmatpush.xpose.msrb.mxu3 %v1783_v17 }
  0x9c   : > { %1584 = vmatmul.f32.vlgmr.msrb.gmra.mxu0 %v1481_v6  ;;  %1712 = vmatmul.f32.vlgmr.msra.gmra.mxu1 %v1635_v27 }
  0x9d   : > { %1784 = vmatpush.xpose.msrb.mxu0 %v1783_v17  ;;  %1908 = vmatpush.xpose.msra.mxu1 %v1783_v17 }
  0x9e   : > { %1736 = vmatmul.f32.vlgmr.msra.gmra.mxu2 %v1633_v18 }
  0x9f   : > { %1936 = vmatpush.xpose.msra.mxu2 %v1935_v39 }
  0xa0   : > { %1758 = vmatmul.f32.vlgmr.msra.gmra.mxu3 %v1633_v18 }
  0xa1   : > { %1966 = vmatpush.xpose.msra.mxu3 %v1965_v59 }
  0xa4   : > { %1688 = vmatmul.f32.vlgmr.msra.gmra.mxu0 %v1634_v14  ;;  %1816 = vmatmul.f32.vlgmr.msrb.gmra.mxu1 %v1785_v53 }
  0xa5   : > { %1886 = vmatpush.xpose.msra.mxu0 %v1811_v23  ;;  %2012 = vmatpush.xpose.msrb.mxu1 %v1935_v39 }
  0xa6   : > { %1840 = vmatmul.f32.vlgmr.msrb.gmra.mxu2 %v1786_v56 }
  0xa7   : > { %2038 = vmatpush.xpose.msrb.mxu2 %v1963_v50 }
  0xa8   : > { %1864 = vmatmul.f32.vlgmr.msrb.gmra.mxu3 %v1787_v48 }
  0xa9   : > { %2060 = vmatpush.xpose.msrb.mxu3 %v1935_v39 }
  0xac   : > { %1790 = vmatmul.f32.vlgmr.msrb.gmra.mxu0 %v1789_v35  ;;  %1910 = vmatmul.f32.vlgmr.msra.gmra.mxu1 %v1785_v53 }
  0xad   : > { %1989 = vmatpush.xpose.msrb.mxu0 %v1962_v44 }
  0xae   : > { %1942 = vmatmul.f32.vlgmr.msra.gmra.mxu2 %v1941_v42 }
  0xb0   : > { %1968 = vmatmul.f32.vlgmr.msra.gmra.mxu3 %v1937_v46 }
  0xb4   : > { %1888 = vmatmul.f32.vlgmr.msra.gmra.mxu0 %v1785_v53  ;;  %2016 = vmatmul.f32.vlgmr.msrb.gmra.mxu1 %v1939_v61 }
  0xb6   : > { %2040 = vmatmul.f32.vlgmr.msrb.gmra.mxu2 %v1937_v46 }
  0xb8   : > { %2062 = vmatmul.f32.vlgmr.msrb.gmra.mxu3 %v1937_v46 }
  0xbc   : > { %1992 = vmatmul.f32.vlgmr.msrb.gmra.mxu0 %v1938_v47 }
  0xd9   : > { %v905_v28 = vpop.f32.mrf.mxu1 }
  0xe1   : > { %v879_v40 = vpop.f32.mrf.mxu0  ;;  %v929_v62 = vpop.f32.mrf.mxu2 }
  0xe2   : > { %v906_v19 = vadd.f32 %v905_v28, %v879_v40  ;;  %v999_v36 = vpop.f32.mrf.mxu1 }
  0xe3   : > { %v953_v2 = vpop.f32.mrf.mxu3 }
  0xe4   : > { %v930_v3 = vadd.f32 %v929_v62, %v906_v19 }
  0xe6   : > { %v954_v4 = vadd.f32 %v953_v2, %v930_v3 }
  0xe9   : > { %v977_v34 = vpop.f32.mrf.mxu0  ;;  %v1031_v1 = vpop.f32.mrf.mxu2 }
  0xea   : > { %v978_v7 = vadd.f32 %v977_v34, %v954_v4  ;;  %v1105_v8 = vpop.f32.mrf.mxu1 }
  0xeb   : > { %v1057_v9 = vpop.f32.mrf.mxu3 }
  0xec   : > { %v4701_v0 = vadd.f32 %v999_v36, %v978_v7  ;;  %v1058_v52 = vadd.f32 %v1057_v9, %v1031_v1 }
  0xee   : > { %v2067_v10 = vsel %vm581_vm1, %v4701_v0, -inf }
  0xef   : > { %2068 = vmax.xlane.f32.xlu0 %v2067_v10 }
  0xf1   : > { %v1081_v54 = vpop.f32.mrf.mxu0  ;;  %v1129_v11 = vpop.f32.mrf.mxu2 }
  0xf2   : > { %v1082_v12 = vadd.f32 %v1081_v54, %v1058_v52  ;;  %v1209_v51 = vpop.f32.mrf.mxu1 }
  0xf3   : > { %v1151_v55 = vpop.f32.mrf.mxu3 }
  0xf4   : > { %v1106_v13 = vadd.f32 %v1105_v8, %v1082_v12 }
  0xf6   : > { %v1130_v15 = vadd.f32 %v1129_v11, %v1106_v13 }
  0xf8   : > { %v4705_v6 = vadd.f32 %v1151_v55, %v1130_v15 }
  0xf9   : > { %v1183_v16 = vpop.f32.mrf.mxu0  ;;  %v1233_v17 = vpop.f32.mrf.mxu2 }
  0xfa   : > { %v1210_v18 = vadd.f32 %v1209_v51, %v1183_v16  ;;  %v2070_v20 = vsel %vm581_vm1, %v4705_v6, -inf  ;;  %v1303_v21 = vpop.f32.mrf.mxu1 }
  0xfb   : > { %2071 = vmax.xlane.f32.xlu0 %v2070_v20  ;;  %v1257_v29 = vpop.f32.mrf.mxu3 }
  0xfc   : > { %v1234_v57 = vadd.f32 %v1233_v17, %v1210_v18 }
  0xfe   : > { %v1258_v14 = vadd.f32 %v1257_v29, %v1234_v57 }
 0x101   : > { %v1281_v22 = vpop.f32.mrf.mxu0  ;;  %v1335_v60 = vpop.f32.mrf.mxu2 }
 0x102   : > { %v1282_v23 = vadd.f32 %v1281_v22, %v1258_v14  ;;  %v1409_v27 = vpop.f32.mrf.mxu1 }
 0x103   : > { %v1361_v31 = vpop.f32.mrf.mxu3 }
 0x104   : > { %v4709_v32 = vadd.f32 %v1303_v21, %v1282_v23  ;;  %v1362_v39 = vadd.f32 %v1361_v31, %v1335_v60  ;;  %v2099_v31 = vlaneseq }
 0x106   : > { %v2073_v26 = vsel %vm581_vm1, %v4709_v32, -inf }
 0x107   : > { %2074 = vmax.xlane.f32.xlu1 %v2073_v26  ;;  %v2130_v26 = vshrl.u32 %v2099_v31, 7 }
 0x109   : > { %v1385_v25 = vpop.f32.mrf.mxu0  ;;  %v1433_v37 = vpop.f32.mrf.mxu2  ;;  %4210 = vset.pattern.permute.xlu1 %v2130_v26  ;;  %4209 = vset.pattern.permute.xlu0 %v2130_v26 }
 0x10a   : > { %v1386_v33 = vadd.f32 %v1385_v25, %v1362_v39  ;;  %v1513_v44 = vpop.f32.mrf.mxu1  ;;  %v4287_v39 = vmov -inf   ;;  %4208 = vset.pattern.permute.xlu2 %v2130_v26 }
 0x10b   : > { %v1455_v41 = vpop.f32.mrf.mxu3  ;;  %590 = vst.msk [vmem:[#allocation3] sm:$0xff] %vm581_vm1, %v4287_v39 }
 0x10c   : > { %v1410_v45 = vadd.f32 %v1409_v27, %v1386_v33 }
 0x10e   : > { %v1434_v30 = vadd.f32 %v1433_v37, %v1410_v45  ;;  %v4288_v37 = vmov 0.0   ;;  %v4743_v45 = vand.u32 127, %v2099_v31  ;;  %v4784_v31 = vld [vmem:[%s407_s26 + $0x20] sm:$0xff] }
 0x10f   : > { %594 = vst.msk [vmem:[#allocation5 + $0x10] sm:$0xff] %vm581_vm1, %v4288_v37 }
 0x110   : > { %v4713_v38 = vadd.f32 %v1455_v41, %v1434_v30  ;;  %591 = vst.msk [vmem:[#allocation4] sm:$0xff] %vm581_vm1, %v4288_v37 }
 0x111   : > { %v1487_v50 = vpop.f32.mrf.mxu0  ;;  %v1537_v5 = vpop.f32.mrf.mxu2  ;;  %592 = vst.msk [vmem:[#allocation5] sm:$0xff] %vm581_vm1, %v4288_v37 }
 0x112   : > { %v1514_v53 = vadd.f32 %v1513_v44, %v1487_v50  ;;  %v2076_v24 = vsel %vm581_vm1, %v4713_v38, -inf  ;;  %v1607_v56 = vpop.f32.mrf.mxu1  ;;  %593 = vst.msk [vmem:[#allocation5 + $0x8] sm:$0xff] %vm581_vm1, %v4288_v37 }
 0x113   : > { %2077 = vmax.xlane.f32.xlu1 %v2076_v24  ;;  %v1561_v46 = vpop.f32.mrf.mxu3  ;;  %595 = vst.msk [vmem:[#allocation5 + $0x18] sm:$0xff] %vm581_vm1, %v4288_v37 }
 0x114   : > { %v1538_v59 = vadd.f32 %v1537_v5, %v1514_v53  ;;  %596 = vst.msk [vmem:[#allocation5 + $0x20] sm:$0xff] %vm581_vm1, %v4288_v37 }
 0x115   : > { %597 = vst.msk [vmem:[#allocation5 + $0x28] sm:$0xff] %vm581_vm1, %v4288_v37 }
 0x116   : > { %v1562_v47 = vadd.f32 %v1561_v46, %v1538_v59  ;;  %598 = vst.msk [vmem:[#allocation5 + $0x30] sm:$0xff] %vm581_vm1, %v4288_v37 }
 0x117   : > { %599 = vst.msk [vmem:[#allocation5 + $0x38] sm:$0xff] %vm581_vm1, %v4288_v37 }
 0x119   : > { %v1585_v48 = vpop.f32.mrf.mxu0  ;;  %v1639_v61 = vpop.f32.mrf.mxu2 }
 0x11a   : > { %v1586_v58 = vadd.f32 %v1585_v48, %v1562_v47  ;;  %v1713_v42 = vpop.f32.mrf.mxu1 }
 0x11b   : > { %v1665_v49 = vpop.f32.mrf.mxu3 }
 0x11c   : > { %v4717_v35 = vadd.f32 %v1607_v56, %v1586_v58  ;;  %v1666_v40 = vadd.f32 %v1665_v49, %v1639_v61 }
 0x11e   : > { %v2079_v28 = vsel %vm581_vm1, %v4717_v35, -inf }
 0x11f   : > { %2080 = vmax.xlane.f32.xlu2 %v2079_v28 }
 0x121   : > { %v1689_v62 = vpop.f32.mrf.mxu0  ;;  %v1737_v19 = vpop.f32.mrf.mxu2 }
 0x122   : > { %v1690_v36 = vadd.f32 %v1689_v62, %v1666_v40  ;;  %v1817_v34 = vpop.f32.mrf.mxu1  ;;  %v2066_v62 = vld [vmem:[#allocation3] sm:$0xff] }
 0x123   : > { %v1759_v2 = vpop.f32.mrf.mxu3 }
 0x124   : > { %v1714_v3 = vadd.f32 %v1713_v42, %v1690_v36 }
 0x126   : > { %v1738_v4 = vadd.f32 %v1737_v19, %v1714_v3 }
 0x128   : > { %v4721_v1 = vadd.f32 %v1759_v2, %v1738_v4 }
 0x129   : > { %v1791_v7 = vpop.f32.mrf.mxu0  ;;  %v1841_v8 = vpop.f32.mrf.mxu2 }
 0x12a   : > { %v1818_v9 = vadd.f32 %v1817_v34, %v1791_v7  ;;  %v2082_v10 = vsel %vm581_vm1, %v4721_v1, -inf  ;;  %v1911_v11 = vpop.f32.mrf.mxu1 }
 0x12b   : > { %2083 = vmax.xlane.f32.xlu2 %v2082_v10  ;;  %v1865_v52 = vpop.f32.mrf.mxu3 }
 0x12c   : > { %v1842_v54 = vadd.f32 %v1841_v8, %v1818_v9 }
 0x12e   : > { %v1866_v12 = vadd.f32 %v1865_v52, %v1842_v54 }
 0x131   : > { %v1889_v51 = vpop.f32.mrf.mxu0  ;;  %v1943_v55 = vpop.f32.mrf.mxu2 }
 0x132   : > { %v1890_v13 = vadd.f32 %v1889_v51, %v1866_v12  ;;  %v2017_v21 = vpop.f32.mrf.mxu1 }
 0x133   : > { %v1969_v16 = vpop.f32.mrf.mxu3 }
 0x134   : > { %v4725_v15 = vadd.f32 %v1911_v11, %v1890_v13  ;;  %v1970_v18 = vadd.f32 %v1969_v16, %v1943_v55 }
 0x136   : > { %v2085_v17 = vsel %vm581_vm1, %v4725_v15, -inf }
 0x137   : > { %2086 = vmax.xlane.f32.xlu0 %v2085_v17  ;;  %v4767_v17 = vld [vmem:[%s407_s26 + $0x38] sm:$0xff] }
 0x139   : > { %v1993_v20 = vpop.f32.mrf.mxu0  ;;  %v2041_v57 = vpop.f32.mrf.mxu2 }
 0x13a   : > { %v1994_v29 = vadd.f32 %v1993_v20, %v1970_v18  ;;  %v765_v18 = vrot.slane %v4767_v17, 4  ;;  %v4770_v20 = vld [vmem:[%s407_s26 + $0x18] sm:$0xff] }
 0x13b   : > { %v2063_v22 = vpop.f32.mrf.mxu3 }
 0x13c   : > { %v2018_v14 = vadd.f32 %v2017_v21, %v1994_v29  ;;  %v4772_v21 = vld [vmem:[%s407_s26 + $0x28] sm:$0xff]  ;;  %v4774_v29 = vld [vmem:[%s407_s26 + $0x30] sm:$0xff] }
 0x13e   : > { %v2042_v60 = vadd.f32 %v2041_v57, %v2018_v14  ;;  %v741_v57 = vrot.slane %v4770_v20, 4  ;;  %v753_v14 = vrot.slane %v4774_v29, 4 }
 0x140   : > { %v4729_v23 = vadd.f32 %v2063_v22, %v2042_v60  ;;  %v766_v22 = vsel %vm461_vm0, %v765_v18, %v4772_v21  ;;  %v4780_v60 = vld [vmem:[%s407_s26 + $0x8] sm:$0xff]  ;;  %v754_v37 = vsel %vm461_vm0, %v753_v14, %v4784_v31 }
 0x141   : > { %v772_v26 = vperm.slane %v766_v22, %v4422_v43 }
 0x142   : > { %v2088_v27 = vsel %vm581_vm1, %v4729_v23, -inf }
 0x143   : > { %2089 = vmax.xlane.f32.xlu1 %v2088_v27  ;;  %v4782_v27 = vld [vmem:[%s407_s26 + $0x10] sm:$0xff] }
 0x144   : > { %v729_v39 = vrot.slane %v4782_v27, 4 }
 0x162   : > { %v2069_v25 = vpop.xlane.xlu0 %2068 }
 0x163   : > { %v2101_v24 = vperm.slane %v2069_v25, %v4743_v45  ;;  %v742_v25 = vsel %vm461_vm0, %v741_v57, %v4780_v60 }
 0x16e   : > { %v2072_v41 = vpop.xlane.xlu0 %2071 }
 0x16f   : > { %v2102_v50 = vperm.slane %v2072_v41, %v4743_v45  ;;  %v760_v41 = vperm.slane %v754_v37, %v4422_v43 }
 0x171   : > { %v2110_v47 = vsel %vm2109_vm2, %v2102_v50, %v2101_v24 }
 0x17a   : > { %v2075_v33 = vpop.xlane.xlu1 %2074 }
 0x17b   : > { %v2103_v5 = vperm.slane %v2075_v33, %v4743_v45  ;;  %v4792_v33 = vld [vmem:[%s407_s26] sm:$0xff] }
 0x17c   : > { %v730_v50 = vsel %vm461_vm0, %v729_v39, %v4792_v33 }
 0x17d   : > { %v2112_v61 = vsel %vm2111_vm3, %v2103_v5, %v2110_v47  ;;  %v736_v5 = vperm.slane %v730_v50, %v4422_v43 }
 0x186   : > { %v2078_v30 = vpop.xlane.xlu1 %2077 }
 0x187   : > { %v2104_v46 = vperm.slane %v2078_v30, %v4743_v45  ;;  %v801_v30 = vrot.slane %v772_v26, 4 }
 0x189   : > { %v2114_v49 = vsel %vm2113_vm4, %v2104_v46, %v2112_v61  ;;  %v802_v24 = vsel %vm461_vm0, %v801_v30, %v760_v41 }
 0x18a   : > { %v808_v46 = vperm.slane %v802_v24, %v4455_v63 }
 0x18c   : > { %v825_v47 = vrot.slane %v808_v46, 4 }
 0x192   : > { %v2081_v44 = vpop.xlane.xlu2 %2080 }
 0x193   : > { %v2105_v59 = vperm.slane %v2081_v44, %v4743_v45  ;;  %v748_v44 = vperm.slane %v742_v25, %v4422_v43 }
 0x195   : > { %v2116_v42 = vsel %vm2115_vm5, %v2105_v59, %v2114_v49 }
 0x19e   : > { %v2084_v53 = vpop.xlane.xlu2 %2083 }
 0x19f   : > { %v2106_v48 = vperm.slane %v2084_v53, %v4743_v45  ;;  %v777_v53 = vrot.slane %v748_v44, 4 }
 0x1a1   : > { %v2118_v40 = vsel %vm2117_vm6, %v2106_v48, %v2116_v42 }
 0x1aa   : > { %v2087_v56 = vpop.xlane.xlu0 %2086 }
 0x1ab   : > { %v2107_v58 = vperm.slane %v2087_v56, %v4743_v45  ;;  %v778_v56 = vsel %vm461_vm0, %v777_v53, %v736_v5 }
 0x1ac   : > { %v784_v59 = vperm.slane %v778_v56, %v4455_v63 }
 0x1ad   : > { %v2120_v36 = vsel %vm2119_vm7, %v2107_v58, %v2118_v40 }
 0x1ae   : > { %v826_v48 = vsel %vm461_vm0, %v825_v47, %v784_v59  ;;  %v827_v40 = vrot.slane %v784_v59, 4  ;;  %v743_v59 = vrot.slane %v4780_v60, 4  ;;  %v755_v47 = vrot.slane %v4784_v31, 4 }
 0x1af   : > { %v2278_v61 = vand.u32 4294901760, %v826_v48 }
 0x1b0   : > { %v744_v60 = vsel %vm461_vm0, %v4770_v20, %v743_v59 }
 0x1b1   : > { %v2305_v58 = vsub.f32 %v826_v48, %v2278_v61  ;;  %2355 = vmatpush.msra.mxu3 %v2278_v61  ;;  %2279 = vmatpush.msra.mxu0 %v2278_v61 }
 0x1b3   : > { %v2306_v49 = vand.u32 4294901760, %v2305_v58  ;;  %2332 = vmatpush.msra.mxu2 %v2305_v58 }
 0x1b5   : > { %v2307_v42 = vsub.f32 %v2305_v58, %v2306_v49  ;;  %2381 = vmatpush.msrb.mxu0 %v2306_v49 }
 0x1b6   : > { %v2090_v28 = vpop.xlane.xlu1 %2089 }
 0x1b7   : > { %v2108_v19 = vperm.slane %v2090_v28, %v4743_v45  ;;  %v2308_v28 = vand.u32 4294901760, %v2307_v42 }
 0x1b9   : > { %v2122_v2 = vsel %vm2121_vm8, %v2108_v19, %v2120_v36  ;;  %2309 = vmatpush.msra.mxu1 %v2308_v28 }
 0x1ba   : > { %v2124_v3 = vmax.f32 %v2066_v62, %v2122_v2 }
 0x1bb   : > { %2403 = vmatpush.msrb.mxu1 %v2278_v61 }
 0x1bc   : > { %v2125_v4 = vsub.f32 %v2066_v62, %v2124_v3  ;;  %3540 = vst.msk [vmem:[#allocation3] sm:$0xff] %vm581_vm1, %v2124_v3  ;;  %v2142_v34 = vperm.slane %v2124_v3, 2  ;;  %v2135_v7 = vperm.slane %v2124_v3, 1  ;;  %v2128_v8 = vperm.slane %v2124_v3, 0 }
 0x1bd   : > { %v2163_v10 = vperm.slane %v2124_v3, 5  ;;  %v2149_v52 = vperm.slane %v2124_v3, 3  ;;  %v2177_v12 = vperm.slane %v2124_v3, 7  ;;  %v2156_v51 = vperm.slane %v2124_v3, 4 }
 0x1be   : > { %v2126_v9 = vmul.f32 1.442695, %v2125_v4  ;;  %2147 = vperm.xlu1 %4210, %v2142_v34   ;;  %2140 = vperm.xlu0 %4209, %v2135_v7   ;;  %v2170_v13 = vperm.slane %v2124_v3, 6  ;;  %v828_v62 = vsel %vm461_vm0, %v808_v46, %v827_v40  ;;  %v803_v34 = vrot.slane %v760_v41, 4 }
 0x1bf   : > { %2133 = vperm.xlu2 %4208, %v2128_v8   ;;  %v2427_v19 = vand.u32 4294901760, %v828_v62  ;;  %v767_v46 = vrot.slane %v4772_v21, 4  ;;  %v731_v21 = vrot.slane %v4792_v33, 4 }
 0x1c0   : > { %4211 = vpow2.f32 %v2126_v9  ;;  %v779_v9 = vrot.slane %v736_v5, 4 }
 0x1c1   : > { %v2454_v36 = vsub.f32 %v828_v62, %v2427_v19  ;;  %2428 = vmatpush.msrb.mxu2 %v2427_v19 }
 0x1c3   : > { %v2455_v4 = vand.u32 4294901760, %v2454_v36 }
 0x1c5   : > { %v2456_v8 = vsub.f32 %v2454_v36, %v2455_v4 }
 0x1c6   : > { %v4761_v54 = vpop.eup %4211  ;;  %2168 = vperm.xlu1 %4210, %v2163_v10   ;;  %v804_v10 = vsel %vm461_vm0, %v772_v26, %v803_v34 }
 0x1c7   : > { %2154 = vperm.xlu2 %4208, %v2149_v52   ;;  %v3452_v11 = vperm.slane %v4761_v54, 0  ;;  %v3480_v55 = vperm.slane %v4761_v54, 4  ;;  %v3466_v16 = vperm.slane %v4761_v54, 2  ;;  %v812_v52 = vperm.slane %v804_v10, %v4455_v63 }
 0x1c9   : > { %3457 = vperm.xlu0 %4209, %v3452_v11   ;;  %v2457_v11 = vand.u32 4294901760, %v2456_v8 }
 0x1cb   : > { %2458 = vmatpush.msrb.mxu3 %v2457_v11 }
 0x1ce   : > { %2182 = vperm.xlu1 %4210, %v2177_v12   ;;  %v780_v12 = vsel %vm461_vm0, %v748_v44, %v779_v9 }
 0x1cf   : > { %2161 = vperm.xlu2 %4208, %v2156_v51   ;;  %v788_v51 = vperm.slane %v780_v12, %v4455_v63 }
 0x1d1   : > { %v831_v53 = vrot.slane %v788_v51, 4 }
 0x1d3   : > { %v832_v58 = vsel %vm461_vm0, %v812_v52, %v831_v53 }
 0x1d6   : > { %3485 = vperm.xlu1 %4210, %v3480_v55   ;;  %v829_v55 = vrot.slane %v812_v52, 4 }
 0x1d7   : > { %2175 = vperm.xlu2 %4208, %v2170_v13  }
 0x1df   : > { %3471 = vperm.xlu2 %4208, %v3466_v16  }
 0x219   : > { %v2134_v2 = vpop.permute.xlu2 %2133 }
 0x21a   : > { %v2184_v3 = vsub.f32 %v4701_v0, %v2134_v2  ;;  %v830_v0 = vsel %vm461_vm0, %v829_v55, %v788_v51 }
 0x21b   : > { %v4811_v16 = vand.u32 4294901760, %v830_v0 }
 0x21c   : > { %v2192_v7 = vmul.f32 1.442695, %v2184_v3 }
 0x21d   : > { %v4814_v57 = vsub.f32 %v830_v0, %v4811_v16 }
 0x21e   : > { %4213 = vpow2.f32 %v2192_v7 }
 0x21f   : > { %v2604_v39 = vand.u32 4294901760, %v4814_v57 }
 0x221   : > { %v2155_v13 = vpop.permute.xlu2 %2154  ;;  %v2605_v44 = vsub.f32 %v4814_v57, %v2604_v39 }
 0x222   : > { %v2187_v31 = vsub.f32 %v4713_v38, %v2155_v13 }
 0x223   : > { %v2606_v24 = vand.u32 4294901760, %v2605_v44 }
 0x224   : > { %v4214_v18 = vpop.eup %4213 }
 0x225   : > { %v2210_v14 = vsel %vm581_vm1, %v4214_v18, 0.0  ;;  %v2261_v22 = vsel %vm581_vm1, %v4214_v18, 0 }
 0x226   : > { %2211 = vadd.xlane.f32.xlu0 %v2210_v14  ;;  %v2280_v26 = vand.u32 4294901760, %v2261_v22 }
 0x228   : > { %2311 = vmatmul.f32.vlgmr.msra.gmra.mxu1 %v2280_v26  ;;  %v2281_v25 = vsub.f32 %v2261_v22, %v2280_v26 }
 0x229   : > { %v2162_v37 = vpop.permute.xlu2 %2161  ;;  %2504 = vmatpush.msra.mxu1 %v2427_v19 }
 0x22a   : > { %v2188_v41 = vsub.f32 %v4717_v35, %v2162_v37  ;;  %2335 = vmatmul.f32.vlgmr.msra.gmra.mxu2 %v2281_v25  ;;  %v2282_v30 = vand.u32 4294901760, %v2281_v25  ;;  %v768_v35 = vsel %vm461_vm0, %v4767_v17, %v767_v46  ;;  %v4836_v17 = vperm.slane %v744_v60, %v4422_v43 }
 0x22b   : > { %2530 = vmatpush.msra.mxu2 %v2455_v4  ;;  %v4839_v28 = vperm.slane %v768_v35, %v4422_v43 }
 0x22c   : > { %v2200_v50 = vmul.f32 1.442695, %v2188_v41  ;;  %2359 = vmatmul.f32.vlgmr.msra.gmra.mxu3 %v2282_v30  ;;  %v2283_v5 = vsub.f32 %v2281_v25, %v2282_v30  ;;  %v789_v2 = vrot.slane %v4836_v17, 4 }
 0x22d   : > { %2552 = vmatpush.msra.mxu3 %v2427_v19  ;;  %v4847_v19 = vand.u32 4294901760, %v832_v58 }
 0x22e   : > { %4215 = vpow2.f32 %v2200_v50  ;;  %v2284_v56 = vand.u32 4294901760, %v2283_v5 }
 0x22f   : > { %v4860_v34 = vsub.f32 %v832_v58, %v4847_v19 }
 0x230   : > { %2285 = vmatmul.f32.vlgmr.msra.gmra.mxu0 %v2284_v56  ;;  %2405 = vmatmul.f32.vlgmr.msrb.gmra.mxu1 %v2280_v26  ;;  %v2148_v48 = vpop.permute.xlu1 %2147  ;;  %v2141_v61 = vpop.permute.xlu0 %2140 }
 0x231   : > { %v2186_v49 = vsub.f32 %v4709_v32, %v2148_v48  ;;  %v2185_v42 = vsub.f32 %v4705_v6, %v2141_v61  ;;  %2481 = vmatpush.msra.mxu0 %v2454_v36  ;;  %2607 = vmatpush.msrb.mxu1 %v2606_v24  ;;  %v732_v6 = vsel %vm461_vm0, %v4782_v27, %v731_v21  ;;  %v2198_v27 = vmul.f32 1.442695, %v2187_v31  ;;  %v2176_v3 = vpop.permute.xlu2 %2175 }
 0x232   : > { %v756_v32 = vsel %vm461_vm0, %v4774_v29, %v755_v47  ;;  %v4852_v20 = vperm.slane %v732_v6, %v4422_v43  ;;  %v813_v29 = vrot.slane %v4839_v28, 4  ;;  %v2190_v12 = vsub.f32 %v4725_v15, %v2176_v3 }
 0x233   : > { %v2196_v40 = vmul.f32 1.442695, %v2186_v49  ;;  %v2194_v62 = vmul.f32 1.442695, %v2185_v42  ;;  %v4855_v36 = vperm.slane %v756_v32, %v4422_v43  ;;  %v2753_v0 = vand.u32 4294901760, %v4860_v34 }
 0x234   : > { %v4845_v33 = vpop.eup %4215  ;;  %v790_v8 = vsel %vm461_vm0, %v789_v2, %v4852_v20  ;;  %v2204_v44 = vmul.f32 1.442695, %v2190_v12 }
 0x235   : > { %4217 = vpow2.f32 %v2196_v40  ;;  %v2222_v38 = vsel %vm581_vm1, %v4845_v33, 0.0  ;;  %v814_v9 = vsel %vm461_vm0, %v813_v29, %v4855_v36  ;;  %v796_v10 = vperm.slane %v790_v8, %v4455_v63 }
 0x236   : > { %4219 = vpow2.f32 %v2194_v62  ;;  %2223 = vadd.xlane.f32.xlu0 %v2222_v38  ;;  %v820_v52 = vperm.slane %v814_v9, %v4455_v63  ;;  %v2754_v24 = vsub.f32 %v4860_v34, %v2753_v0  ;;  %v2857_v6 = vsel %vm581_vm1, %v4845_v33, 0 }
 0x237   : > { %4221 = vpow2.f32 %v2198_v27  ;;  %v835_v61 = vrot.slane %v796_v10, 4  ;;  %v815_v2 = vrot.slane %v4855_v36, 4  ;;  %v791_v33 = vrot.slane %v4852_v20, 4 }
 0x238   : > { %2383 = vmatmul.f32.vlgmr.msrb.gmra.mxu0 %v2280_v26  ;;  %v2169_v4 = vpop.permute.xlu1 %2168  ;;  %v833_v18 = vrot.slane %v820_v52, 4  ;;  %v2755_v49 = vand.u32 4294901760, %v2754_v24 }
 0x239   : > { %v2189_v7 = vsub.f32 %v4721_v1, %v2169_v4  ;;  %2577 = vmatpush.msrb.mxu0 %v4811_v16  ;;  %v836_v60 = vsel %vm461_vm0, %v820_v52, %v835_v61  ;;  %v816_v3 = vsel %vm461_vm0, %v4839_v28, %v815_v2  ;;  %v4926_v4 = vand.u32 4294901760, %v2857_v6 }
 0x23a   : > { %v834_v15 = vsel %vm461_vm0, %v833_v18, %v796_v10  ;;  %v4920_v27 = vand.u32 4294901760, %v836_v60  ;;  %v792_v20 = vsel %vm461_vm0, %v4836_v17, %v791_v33 }
 0x23b   : > { %v4218_v11 = vpop.eup %4217  ;;  %v2202_v51 = vmul.f32 1.442695, %v2189_v7  ;;  %v4888_v46 = vand.u32 4294901760, %v834_v15  ;;  %v824_v7 = vperm.slane %v816_v3, %v4455_v63  ;;  %v800_v9 = vperm.slane %v792_v20, %v4455_v63  ;;  %v3508_v20 = vld [vmem:[#allocation5] sm:$0xff] }
 0x23c   : > { %v4220_v55 = vpop.eup %4219  ;;  %v2559_v1 = vsel %vm581_vm1, %v4218_v11, 0  ;;  %v2216_v13 = vsel %vm581_vm1, %v4218_v11, 0.0  ;;  %v4932_v36 = vsub.f32 %v836_v60, %v4920_v27  ;;  %v2877_v52 = vsub.f32 %v2857_v6, %v4926_v4 }
 0x23d   : > { %v4874_v14 = vand.u32 4294901760, %v2559_v1  ;;  %4223 = vpow2.f32 %v2202_v51  ;;  %2217 = vadd.xlane.f32.xlu1 %v2216_v13  ;;  %v2213_v22 = vsel %vm581_vm1, %v4220_v55, 0.0  ;;  %v2410_v26 = vsel %vm581_vm1, %v4220_v55, 0  ;;  %v4222_v50 = vpop.eup %4221 }
 0x23e   : > { %2214 = vadd.xlane.f32.xlu2 %v2213_v22  ;;  %v2429_v25 = vand.u32 4294901760, %v2410_v26  ;;  %4225 = vpow2.f32 %v2204_v44  ;;  %v2219_v58 = vsel %vm581_vm1, %v4222_v50, 0.0  ;;  %v4900_v42 = vsub.f32 %v834_v15, %v4888_v46 }
 0x23f   : > { %v4880_v37 = vsub.f32 %v2559_v1, %v4874_v14  ;;  %v2708_v62 = vsel %vm581_vm1, %v4222_v50, 0  ;;  %v837_v10 = vrot.slane %v824_v7, 4  ;;  %v3051_v11 = vand.u32 4294901760, %v4932_v36 }
 0x240   : > { %2460 = vmatmul.f32.vlgmr.msrb.gmra.mxu3 %v2429_v25  ;;  %v2183_v41 = vpop.permute.xlu1 %2182  ;;  %v2430_v30 = vsub.f32 %v2410_v26, %v2429_v25  ;;  %v2902_v40 = vand.u32 4294901760, %v4900_v42  ;;  %v2727_v29 = vand.u32 4294901760, %v2708_v62  ;;  %v2878_v17 = vand.u32 4294901760, %v2877_v52 }
 0x241   : > { %v2191_v5 = vsub.f32 %v4729_v23, %v2183_v41  ;;  %v2580_v53 = vand.u32 4294901760, %v4880_v37  ;;  %2653 = vmatpush.msrb.mxu3 %v4811_v16  ;;  %v3052_v51 = vsub.f32 %v4932_v36, %v3051_v11  ;;  %v3494_v13 = vperm.slane %v4761_v54, 6 }
 0x242   : > { %2484 = vmatmul.f32.vlgmr.msra.gmra.mxu0 %v2430_v30  ;;  %v2431_v56 = vand.u32 4294901760, %v2430_v30  ;;  %v2903_v38 = vsub.f32 %v4900_v42, %v2902_v40  ;;  %v2728_v28 = vsub.f32 %v2708_v62, %v2727_v29  ;;  %v2879_v18 = vsub.f32 %v2877_v52, %v2878_v17 }
 0x243   : > { %v4890_v59 = vpop.eup %4223  ;;  %v2206_v47 = vmul.f32 1.442695, %v2191_v5  ;;  %2679 = vmatpush.msra.mxu0 %v2604_v39  ;;  %v2581_v48 = vsub.f32 %v4880_v37, %v2580_v53  ;;  %v3053_v22 = vand.u32 4294901760, %v3052_v51  ;;  %v3473_v44 = vperm.slane %v4761_v54, 3 }
 0x244   : > { %2508 = vmatmul.f32.vlgmr.msra.gmra.mxu1 %v2431_v56  ;;  %v2225_v23 = vsel %vm581_vm1, %v4890_v59, 0.0  ;;  %v2432_v35 = vsub.f32 %v2430_v30, %v2431_v56  ;;  %v4903_v31 = vpop.eup %4225  ;;  %v2904_v8 = vand.u32 4294901760, %v2903_v38  ;;  %v2729_v12 = vand.u32 4294901760, %v2728_v28 }
 0x245   : > { %4227 = vpow2.f32 %v2206_v47  ;;  %2226 = vadd.xlane.f32.xlu1 %v2225_v23  ;;  %2701 = vmatpush.msra.mxu1 %v4811_v16  ;;  %v2582_v21 = vand.u32 4294901760, %v2581_v48  ;;  %v3155_v41 = vsel %vm581_vm1, %v4903_v31, 0 }
 0x246   : > { %2220 = vadd.xlane.f32.xlu2 %v2219_v58  ;;  %v2433_v39 = vand.u32 4294901760, %v2432_v35  ;;  %v2730_v1 = vsub.f32 %v2728_v28, %v2729_v12 }
 0x248   : > { %2434 = vmatmul.f32.vlgmr.msrb.gmra.mxu2 %v2433_v39  ;;  %2554 = vmatmul.f32.vlgmr.msra.gmra.mxu3 %v2429_v25 }
 0x249   : > { %2630 = vmatpush.msrb.mxu2 %v4814_v57  ;;  %2756 = vmatpush.msra.mxu3 %v2755_v49  ;;  %v2228_v57 = vsel %vm581_vm1, %v4903_v31, 0.0 }
 0x24a   : > { %2583 = vmatmul.f32.vlgmr.msrb.gmra.mxu0 %v2582_v21 }
 0x24b   : > { %v4907_v16 = vpop.eup %4227  ;;  %2779 = vmatpush.msrb.mxu0 %v4860_v34  ;;  %v2731_v34 = vand.u32 4294901760, %v2730_v1 }
 0x24c   : > { %2609 = vmatmul.f32.vlgmr.msrb.gmra.mxu1 %v4874_v14  ;;  %v2231_v32 = vsel %vm581_vm1, %v4907_v16, 0.0  ;;  %v3304_v21 = vsel %vm581_vm1, %v4907_v16, 0  ;;  %v3458_v16 = vpop.permute.xlu0 %3457 }
 0x24d   : > { %2232 = vadd.xlane.f32.xlu0 %v2231_v32  ;;  %2802 = vmatpush.msrb.mxu1 %v4847_v19  ;;  %v3323_v60 = vand.u32 4294901760, %v3304_v21  ;;  %v4966_v32 = vpop.permute.xlu2 %3471 }
 0x24e   : > { %2229 = vadd.xlane.f32.xlu2 %v2228_v57  ;;  %v4968_v57 = vpop.permute.xlu1 %3485 }
 0x24f   : > { %v3324_v31 = vsub.f32 %v3304_v21, %v3323_v60 }
 0x250   : > { %2532 = vmatmul.f32.vlgmr.msra.gmra.mxu2 %v2429_v25  ;;  %2657 = vmatmul.f32.vlgmr.msrb.gmra.mxu3 %v2580_v53  ;;  %v3174_v53 = vand.u32 4294901760, %v3155_v41 }
 0x251   : > { %2726 = vmatpush.msra.mxu2 %v4847_v19  ;;  %2850 = vmatpush.msrb.mxu3 %v4847_v19  ;;  %v838_v19 = vsel %vm461_vm0, %v837_v10, %v800_v9 }
 0x252   : > { %2681 = vmatmul.f32.vlgmr.msra.gmra.mxu0 %v4874_v14  ;;  %v3172_v55 = vand.u32 4294901760, %v838_v19 }
 0x253   : > { %2875 = vmatpush.msra.mxu0 %v4888_v46 }
 0x254   : > { %2703 = vmatmul.f32.vlgmr.msra.gmra.mxu1 %v4874_v14  ;;  %v839_v14 = vrot.slane %v800_v9, 4  ;;  %v3199_v26 = vsub.f32 %v838_v19, %v3172_v55 }
 0x255   : > { %2905 = vmatpush.msra.mxu1 %v2904_v8 }
 0x256   : > { %v840_v25 = vsel %vm461_vm0, %v824_v7, %v839_v14  ;;  %v3200_v15 = vand.u32 4294901760, %v3199_v26 }
 0x257   : > { %v3321_v50 = vand.u32 4294901760, %v840_v25 }
 0x258   : > { %2633 = vmatmul.f32.vlgmr.msrb.gmra.mxu2 %v4880_v37  ;;  %2758 = vmatmul.f32.vlgmr.msra.gmra.mxu3 %v2727_v29  ;;  %v3006_v37 = vsel %vm581_vm1, %v4890_v59, 0  ;;  %v3201_v30 = vsub.f32 %v3199_v26, %v3200_v15  ;;  %v3175_v59 = vsub.f32 %v3155_v41, %v3174_v53 }
 0x259   : > { %2828 = vmatpush.msrb.mxu2 %v2753_v0  ;;  %2951 = vmatpush.msra.mxu3 %v4888_v46  ;;  %v2880_v0 = vand.u32 4294901760, %v2879_v18  ;;  %v3025_v5 = vand.u32 4294901760, %v3006_v37 }
 0x25a   : > { %2782 = vmatmul.f32.vlgmr.msrb.gmra.mxu0 %v2728_v28  ;;  %v3202_v24 = vand.u32 4294901760, %v3201_v30  ;;  %v3176_v35 = vand.u32 4294901760, %v3175_v59  ;;  %v2208_v30 = vld [vmem:[#allocation4] sm:$0xff] }
 0x25b   : > { %2977 = vmatpush.msrb.mxu0 %v2902_v40  ;;  %v3026_v56 = vsub.f32 %v3006_v37, %v3025_v5  ;;  %v3325_v40 = vand.u32 4294901760, %v3324_v31 }
 0x25c   : > { %2806 = vmatmul.f32.vlgmr.msrb.gmra.mxu1 %v2729_v12  ;;  %v3177_v58 = vsub.f32 %v3175_v59, %v3176_v35 }
 0x25d   : > { %2999 = vmatpush.msrb.mxu1 %v4888_v46  ;;  %v3348_v46 = vsub.f32 %v840_v25, %v3321_v50  ;;  %v3027_v23 = vand.u32 4294901760, %v3026_v56  ;;  %v3326_v62 = vsub.f32 %v3324_v31, %v3325_v40 }
 0x25e   : > { %3499 = vperm.xlu1 %4210, %v3494_v13   ;;  %v3178_v39 = vand.u32 4294901760, %v3177_v58 }
 0x25f   : > { %v3349_v47 = vand.u32 4294901760, %v3348_v46  ;;  %v3028_v61 = vsub.f32 %v3026_v56, %v3027_v23  ;;  %v3327_v6 = vand.u32 4294901760, %v3326_v62 }
 0x260   : > { %2732 = vmatmul.f32.vlgmr.msra.gmra.mxu2 %v2731_v34  ;;  %2852 = vmatmul.f32.vlgmr.msrb.gmra.mxu3 %v2727_v29 }
 0x261   : > { %2928 = vmatpush.msra.mxu2 %v4900_v42  ;;  %3054 = vmatpush.msrb.mxu3 %v3053_v22  ;;  %v3350_v48 = vsub.f32 %v3348_v46, %v3349_v47  ;;  %v3029_v42 = vand.u32 4294901760, %v3028_v61 }
 0x262   : > { %2881 = vmatmul.f32.vlgmr.msra.gmra.mxu0 %v2880_v0 }
 0x263   : > { %3077 = vmatpush.msra.mxu0 %v4932_v36  ;;  %v3351_v49 = vand.u32 4294901760, %v3350_v48 }
 0x264   : > { %2907 = vmatmul.f32.vlgmr.msra.gmra.mxu1 %v4926_v4 }
 0x265   : > { %3100 = vmatpush.msra.mxu1 %v4920_v27 }
 0x266   : > { %3478 = vperm.xlu2 %4208, %v3473_v44  }
 0x268   : > { %2830 = vmatmul.f32.vlgmr.msrb.gmra.mxu2 %v2727_v29  ;;  %2955 = vmatmul.f32.vlgmr.msra.gmra.mxu3 %v2878_v17 }
 0x269   : > { %3024 = vmatpush.msrb.mxu2 %v4920_v27  ;;  %3148 = vmatpush.msra.mxu3 %v4920_v27 }
 0x26a   : > { %2979 = vmatmul.f32.vlgmr.msrb.gmra.mxu0 %v4926_v4 }
 0x26b   : > { %3173 = vmatpush.msrb.mxu0 %v3172_v55 }
 0x26c   : > { %3001 = vmatmul.f32.vlgmr.msrb.gmra.mxu1 %v4926_v4 }
 0x26d   : > { %3203 = vmatpush.msrb.mxu1 %v3202_v24 }
 0x270   : > { %2931 = vmatmul.f32.vlgmr.msra.gmra.mxu2 %v2877_v52  ;;  %3056 = vmatmul.f32.vlgmr.msrb.gmra.mxu3 %v3025_v5 }
 0x271   : > { %3126 = vmatpush.msra.mxu2 %v3051_v11  ;;  %3249 = vmatpush.msrb.mxu3 %v3172_v55  ;;  %v3516_v11 = vmul.f32 %v3508_v20, %v3458_v16  ;;  %v3510_v20 = vld [vmem:[#allocation5 + $0x10] sm:$0xff] }
 0x272   : > { %3080 = vmatmul.f32.vlgmr.msra.gmra.mxu0 %v3026_v56  ;;  %v2209_v56 = vmul.f32 %v4761_v54, %v2208_v30 }
 0x273   : > { %3275 = vmatpush.msra.mxu0 %v3200_v15 }
 0x274   : > { %3104 = vmatmul.f32.vlgmr.msra.gmra.mxu1 %v3027_v23 }
 0x275   : > { %3297 = vmatpush.msra.mxu1 %v3172_v55 }
 0x278   : > { %3030 = vmatmul.f32.vlgmr.msrb.gmra.mxu2 %v3029_v42  ;;  %3150 = vmatmul.f32.vlgmr.msra.gmra.mxu3 %v3025_v5 }
 0x279   : > { %3226 = vmatpush.msrb.mxu2 %v3199_v26  ;;  %3352 = vmatpush.msra.mxu3 %v3351_v49 }
 0x27a   : > { %3179 = vmatmul.f32.vlgmr.msrb.gmra.mxu0 %v3178_v39 }
 0x27b   : > { %3375 = vmatpush.msrb.mxu0 %v3348_v46 }
 0x27c   : > { %3205 = vmatmul.f32.vlgmr.msrb.gmra.mxu1 %v3174_v53 }
 0x27d   : > { %3398 = vmatpush.msrb.mxu1 %v3321_v50 }
 0x280   : > { %3128 = vmatmul.f32.vlgmr.msra.gmra.mxu2 %v3025_v5  ;;  %3253 = vmatmul.f32.vlgmr.msrb.gmra.mxu3 %v3176_v35 }
 0x281   : > { %3322 = vmatpush.msra.mxu2 %v3321_v50  ;;  %3446 = vmatpush.msrb.mxu3 %v3321_v50 }
 0x282   : > { %3277 = vmatmul.f32.vlgmr.msra.gmra.mxu0 %v3174_v53 }
 0x284   : > { %3299 = vmatmul.f32.vlgmr.msra.gmra.mxu1 %v3174_v53 }
 0x288   : > { %3229 = vmatmul.f32.vlgmr.msrb.gmra.mxu2 %v3175_v59  ;;  %3354 = vmatmul.f32.vlgmr.msra.gmra.mxu3 %v3323_v60 }
 0x289   : > { %3424 = vmatpush.msrb.mxu2 %v3349_v47 }
 0x28a   : > { %3378 = vmatmul.f32.vlgmr.msrb.gmra.mxu0 %v3324_v31 }
 0x28c   : > { %3402 = vmatmul.f32.vlgmr.msrb.gmra.mxu1 %v3325_v40 }
 0x290   : > { %3328 = vmatmul.f32.vlgmr.msra.gmra.mxu2 %v3327_v6  ;;  %3448 = vmatmul.f32.vlgmr.msrb.gmra.mxu3 %v3323_v60 }
 0x298   : > { %3426 = vmatmul.f32.vlgmr.msrb.gmra.mxu2 %v3323_v60 }
 0x299   : > { %v2212_v33 = vpop.xlane.xlu0 %2211 }
 0x29a   : > { %v2242_v52 = vperm.slane %v2212_v33, %v4743_v45 }
 0x2a5   : > { %v2312_v38 = vpop.f32.mrf.mxu1 }
 0x2a9   : > { %v2224_v12 = vpop.xlane.xlu0 %2223 }
 0x2aa   : > { %v2246_v26 = vperm.slane %v2224_v12, %v4743_v45 }
 0x2ad   : > { %v2286_v27 = vpop.f32.mrf.mxu0  ;;  %v2336_v29 = vpop.f32.mrf.mxu2 }
 0x2ae   : > { %v2313_v2 = vadd.f32 %v2312_v38, %v2286_v27  ;;  %v2406_v19 = vpop.f32.mrf.mxu1 }
 0x2af   : > { %v2360_v7 = vpop.f32.mrf.mxu3 }
 0x2b0   : > { %v2337_v3 = vadd.f32 %v2336_v29, %v2313_v2  ;;  %v2218_v36 = vpop.xlane.xlu1 %2217 }
 0x2b1   : > { %v2215_v4 = vpop.xlane.xlu2 %2214  ;;  %v2244_v17 = vperm.slane %v2218_v36, %v4743_v45 }
 0x2b2   : > { %v2361_v8 = vadd.f32 %v2360_v7, %v2337_v3  ;;  %v2243_v28 = vperm.slane %v2215_v4, %v4743_v45 }
 0x2b4   : > { %v2250_v55 = vsel %vm2109_vm2, %v2243_v28, %v2242_v52  ;;  %v3487_v52 = vperm.slane %v4761_v54, 5 }
 0x2b5   : > { %v2384_v9 = vpop.f32.mrf.mxu0  ;;  %v2251_v14 = vsel %vm2111_vm3, %v2244_v17, %v2250_v55 }
 0x2b6   : > { %v2385_v10 = vadd.f32 %v2384_v9, %v2361_v8 }
 0x2b8   : > { %v2407_v51 = vadd.f32 %v2406_v19, %v2385_v10  ;;  %v2227_v34 = vpop.xlane.xlu1 %2226 }
 0x2b9   : > { %v2221_v1 = vpop.xlane.xlu2 %2220  ;;  %v2247_v37 = vperm.slane %v2227_v34, %v4743_v45 }
 0x2ba   : > { %v3524_v13 = vadd.f32 %v3516_v11, %v2407_v51  ;;  %v2245_v18 = vperm.slane %v2221_v1, %v4743_v45  ;;  %v3518_v11 = vmul.f32 %v3510_v20, %v4966_v32  ;;  %v3511_v32 = vld [vmem:[#allocation5 + $0x18] sm:$0xff] }
 0x2bc   : > { %3532 = vst.msk [vmem:[#allocation5] sm:$0xff] %vm581_vm1, %v3524_v13  ;;  %v2252_v22 = vsel %vm2113_vm4, %v2245_v18, %v2251_v14  ;;  %v3501_v14 = vperm.slane %v4761_v54, 7 }
 0x2bd   : > { %v2253_v25 = vsel %vm2115_vm5, %v2246_v26, %v2252_v22  ;;  %v3459_v26 = vperm.slane %v4761_v54, 1  ;;  %v3512_v54 = vld [vmem:[#allocation5 + $0x20] sm:$0xff] }
 0x2be   : > { %v2254_v53 = vsel %vm2117_vm6, %v2247_v37, %v2253_v25 }
 0x2bf   : > { %v2485_v0 = vpop.f32.mrf.mxu0 }
 0x2c0   : > { %v2233_v15 = vpop.xlane.xlu0 %2232 }
 0x2c1   : > { %v2509_v44 = vpop.f32.mrf.mxu1  ;;  %v2230_v41 = vpop.xlane.xlu2 %2229  ;;  %v2249_v50 = vperm.slane %v2233_v15, %v4743_v45 }
 0x2c2   : > { %v2248_v5 = vperm.slane %v2230_v41, %v4743_v45 }
 0x2c3   : > { %v2461_v24 = vpop.f32.mrf.mxu3 }
 0x2c4   : > { %v2255_v46 = vsel %vm2119_vm7, %v2248_v5, %v2254_v53 }
 0x2c5   : > { %v2256_v59 = vsel %vm2121_vm8, %v2249_v50, %v2255_v46 }
 0x2c6   : > { %v2258_v47 = vadd.f32 %v2256_v59, %v2209_v56 }
 0x2c7   : > { %v2584_v23 = vpop.f32.mrf.mxu0 }
 0x2c8   : > { %2259 = vst.msk [vmem:[#allocation4] sm:$0xff] %vm581_vm1, %v2258_v47 }
 0x2c9   : > { %v2610_v35 = vpop.f32.mrf.mxu1 }
 0x2ca   : > { %v2611_v33 = vadd.f32 %v2610_v35, %v2584_v23  ;;  %v3520_v23 = vmul.f32 %v3512_v54, %v4968_v57 }
 0x2cb   : > { %v2435_v48 = vpop.f32.mrf.mxu2  ;;  %v2555_v61 = vpop.f32.mrf.mxu3 }
 0x2cc   : > { %v2462_v58 = vadd.f32 %v2461_v24, %v2435_v48 }
 0x2ce   : > { %v2486_v49 = vadd.f32 %v2485_v0, %v2462_v58  ;;  %v3479_v0 = vpop.permute.xlu2 %3478 }
 0x2cf   : > { %v3552_v42 = vld [vmem:[#allocation4] sm:$0xff]  ;;  %v2682_v31 = vpop.f32.mrf.mxu0  ;;  %v3519_v37 = vmul.f32 %v3511_v32, %v3479_v0 }
 0x2d0   : > { %v3581_v45 = vperm.slane %v3552_v42, 4  ;;  %v3567_v39 = vperm.slane %v3552_v42, 2  ;;  %v3553_v21 = vperm.slane %v3552_v42, 0  ;;  %v2510_v60 = vadd.f32 %v2509_v44, %v2486_v49 }
 0x2d1   : > { %v2704_v16 = vpop.f32.mrf.mxu1  ;;  %v3574_v27 = vperm.slane %v3552_v42, 3  ;;  %v3560_v2 = vperm.slane %v3552_v42, 1  ;;  %v3595_v29 = vperm.slane %v3552_v42, 6  ;;  %v3588_v10 = vperm.slane %v3552_v42, 5 }
 0x2d2   : > { %3586 = vperm.xlu2 %4208, %v3581_v45   ;;  %3572 = vperm.xlu1 %4210, %v3567_v39   ;;  %v3602_v19 = vperm.slane %v3552_v42, 7 }
 0x2d3   : > { %3558 = vperm.xlu0 %4209, %v3553_v21   ;;  %v2533_v40 = vpop.f32.mrf.mxu2  ;;  %v2658_v62 = vpop.f32.mrf.mxu3 }
 0x2d4   : > { %v2534_v6 = vadd.f32 %v2533_v40, %v2510_v60 }
 0x2d6   : > { %v4988_v38 = vadd.f32 %v2555_v61, %v2534_v6 }
 0x2d7   : > { %v2783_v8 = vpop.f32.mrf.mxu0 }
 0x2d9   : > { %v2807_v28 = vpop.f32.mrf.mxu1 }
 0x2da   : > { %3579 = vperm.xlu1 %4210, %v3574_v27   ;;  %3565 = vperm.xlu2 %4208, %v3560_v2   ;;  %v3500_v27 = vpop.permute.xlu1 %3499 }
 0x2db   : > { %3600 = vperm.xlu0 %4209, %v3595_v29   ;;  %v2634_v3 = vpop.f32.mrf.mxu2  ;;  %v2759_v4 = vpop.f32.mrf.mxu3 }
 0x2dc   : > { %v2635_v7 = vadd.f32 %v2634_v3, %v2611_v33 }
 0x2de   : > { %v2659_v36 = vadd.f32 %v2658_v62, %v2635_v7 }
 0x2df   : > { %v2882_v18 = vpop.f32.mrf.mxu0 }
 0x2e0   : > { %v2683_v9 = vadd.f32 %v2682_v31, %v2659_v36 }
 0x2e1   : > { %v2908_v22 = vpop.f32.mrf.mxu1 }
 0x2e2   : > { %v2705_v12 = vadd.f32 %v2704_v16, %v2683_v9  ;;  %3593 = vperm.xlu1 %4210, %v3588_v10   ;;  %3492 = vperm.xlu2 %4208, %v3487_v52   ;;  %v2909_v5 = vadd.f32 %v2908_v22, %v2882_v18  ;;  %v3514_v16 = vld [vmem:[#allocation5 + $0x30] sm:$0xff] }
 0x2e3   : > { %3607 = vperm.xlu0 %4209, %v3602_v19   ;;  %v2733_v17 = vpop.f32.mrf.mxu2  ;;  %v2853_v1 = vpop.f32.mrf.mxu3  ;;  %v3522_v33 = vmul.f32 %v3514_v16, %v3500_v27  ;;  %v3513_v19 = vld [vmem:[#allocation5 + $0x28] sm:$0xff] }
 0x2e4   : > { %v3526_v51 = vadd.f32 %v3518_v11, %v2705_v12  ;;  %v2760_v55 = vadd.f32 %v2759_v4, %v2733_v17 }
 0x2e6   : > { %3534 = vst.msk [vmem:[#allocation5 + $0x10] sm:$0xff] %vm581_vm1, %v3526_v51  ;;  %v2784_v13 = vadd.f32 %v2783_v8, %v2760_v55 }
 0x2e7   : > { %v2980_v50 = vpop.f32.mrf.mxu0 }
 0x2e8   : > { %v2808_v34 = vadd.f32 %v2807_v28, %v2784_v13 }
 0x2e9   : > { %v3002_v53 = vpop.f32.mrf.mxu1 }
 0x2ea   : > { %3506 = vperm.xlu1 %4210, %v3501_v14  }
 0x2eb   : > { %3464 = vperm.xlu0 %4209, %v3459_v26   ;;  %v2831_v25 = vpop.f32.mrf.mxu2  ;;  %v2956_v41 = vpop.f32.mrf.mxu3 }
 0x2ec   : > { %v2832_v15 = vadd.f32 %v2831_v25, %v2808_v34 }
 0x2ee   : > { %v2854_v44 = vadd.f32 %v2853_v1, %v2832_v15 }
 0x2ef   : > { %v3081_v48 = vpop.f32.mrf.mxu0 }
 0x2f0   : > { %v3527_v30 = vadd.f32 %v3519_v37, %v2854_v44 }
 0x2f1   : > { %v3105_v49 = vpop.f32.mrf.mxu1 }
 0x2f2   : > { %3535 = vst.msk [vmem:[#allocation5 + $0x18] sm:$0xff] %vm581_vm1, %v3527_v30 }
 0x2f3   : > { %v2932_v24 = vpop.f32.mrf.mxu2  ;;  %v3057_v47 = vpop.f32.mrf.mxu3 }
 0x2f4   : > { %v2933_v46 = vadd.f32 %v2932_v24, %v2909_v5 }
 0x2f6   : > { %v2957_v56 = vadd.f32 %v2956_v41, %v2933_v46 }
 0x2f7   : > { %v3180_v39 = vpop.f32.mrf.mxu0 }
 0x2f8   : > { %v2981_v59 = vadd.f32 %v2980_v50, %v2957_v56 }
 0x2f9   : > { %v3206_v21 = vpop.f32.mrf.mxu1 }
 0x2fa   : > { %v3003_v35 = vadd.f32 %v3002_v53, %v2981_v59  ;;  %v3207_v60 = vadd.f32 %v3206_v21, %v3180_v39 }
 0x2fb   : > { %v3031_v61 = vpop.f32.mrf.mxu2  ;;  %v3151_v42 = vpop.f32.mrf.mxu3 }
 0x2fc   : > { %v3528_v58 = vadd.f32 %v3520_v23, %v3003_v35  ;;  %v3058_v8 = vadd.f32 %v3057_v47, %v3031_v61 }
 0x2fe   : > { %3536 = vst.msk [vmem:[#allocation5 + $0x20] sm:$0xff] %vm581_vm1, %v3528_v58  ;;  %v3082_v36 = vadd.f32 %v3081_v48, %v3058_v8 }
 0x2ff   : > { %v3278_v2 = vpop.f32.mrf.mxu0 }
 0x300   : > { %v3106_v9 = vadd.f32 %v3105_v49, %v3082_v36 }
 0x301   : > { %v3300_v29 = vpop.f32.mrf.mxu1 }
 0x303   : > { %v3129_v45 = vpop.f32.mrf.mxu2  ;;  %v3254_v62 = vpop.f32.mrf.mxu3 }
 0x304   : > { %v3130_v10 = vadd.f32 %v3129_v45, %v3106_v9 }
 0x305   : > { %v3548_v23 = vld [vmem:[#allocation5 + $0x20] sm:$0xff] }
 0x306   : > { %v3152_v12 = vadd.f32 %v3151_v42, %v3130_v10 }
 0x307   : > { %v3379_v25 = vpop.f32.mrf.mxu0 }
 0x309   : > { %v3403_v50 = vpop.f32.mrf.mxu1 }
 0x30b   : > { %v3230_v31 = vpop.f32.mrf.mxu2  ;;  %v3355_v18 = vpop.f32.mrf.mxu3 }
 0x30c   : > { %v3231_v40 = vadd.f32 %v3230_v31, %v3207_v60 }
 0x30e   : > { %v3255_v6 = vadd.f32 %v3254_v62, %v3231_v40 }
 0x310   : > { %v3279_v57 = vadd.f32 %v3278_v2, %v3255_v6 }
 0x312   : > { %v3301_v3 = vadd.f32 %v3300_v29, %v3279_v57 }
 0x313   : > { %v3329_v13 = vpop.f32.mrf.mxu2  ;;  %v3449_v39 = vpop.f32.mrf.mxu3 }
 0x314   : > { %v3530_v4 = vadd.f32 %v3522_v33, %v3301_v3  ;;  %v3356_v22 = vadd.f32 %v3355_v18, %v3329_v13 }
 0x316   : > { %3538 = vst.msk [vmem:[#allocation5 + $0x30] sm:$0xff] %vm581_vm1, %v3530_v4  ;;  %v3380_v15 = vadd.f32 %v3379_v25, %v3356_v22 }
 0x318   : > { %v3404_v54 = vadd.f32 %v3403_v50, %v3380_v15  ;;  %v3546_v15 = vld [vmem:[#allocation5 + $0x10] sm:$0xff]  ;;  %v3515_v50 = vld [vmem:[#allocation5 + $0x38] sm:$0xff] }
 0x31b   : > { %v3427_v53 = vpop.f32.mrf.mxu2 }
 0x31c   : > { %v3428_v48 = vadd.f32 %v3427_v53, %v3404_v54  ;;  %v3509_v53 = vld [vmem:[#allocation5 + $0x8] sm:$0xff] }
 0x31e   : > { %v5033_v60 = vadd.f32 %v3449_v39, %v3428_v48 }
 0x32c   : > { %v3587_v7 = vpop.permute.xlu2 %3586 }
 0x32d   : > { %4229 = vrcp.f32 %v3587_v7  ;;  %v3680_v32 = vand.u32 2147483648, %v3587_v7  ;;  %vm3674_vm10 = vweird.f32 %v3587_v7  ;;  %v3678_v0 = vand.u32 2147483647, %v3587_v7 }
 0x32f   : > { %v3681_v41 = vor.u32 1.1754944e-38, %v3680_v32  ;;  %vm3679_vm12 = vcmp.eq.f32.partialorder %v3678_v0, 8.507059e+37 }
 0x333   : > { %v4230_v28 = vpop.eup %4229 }
 0x334   : > { %v4999_v20 = vpop.permute.xlu2 %3565  ;;  %v3670_v52 = vmul.f32 %v4230_v28, %v3587_v7  ;;  %vm3675_vm9 = vweird.f32 %v4230_v28 }
 0x335   : > { %4231 = vrcp.f32 %v4999_v20  ;;  %vm3676_vm11 = vmor %vm3674_vm10, %vm3675_vm9  ;;  %v3635_v62 = vand.u32 2147483648, %v4999_v20 }
 0x336   : > { %v3671_v17 = vsub.f32 1.0, %v3670_v52 }
 0x338   : > { %v3672_v1 = vmul.f32 %v4230_v28, %v3671_v17 }
 0x33a   : > { %v3673_v26 = vadd.f32 %v4230_v28, %v3672_v1 }
 0x33b   : > { %v5009_v44 = vpop.eup %4231 }
 0x33c   : > { %v3493_v11 = vpop.permute.xlu2 %3492  ;;  %v3677_v37 = vsel %vm3676_vm11, %v4230_v28, %v3673_v26  ;;  %v3625_v58 = vmul.f32 %v5009_v44, %v4999_v20  ;;  %vm3630_vm8 = vweird.f32 %v5009_v44 }
 0x33d   : > { %v3521_v51 = vmul.f32 %v3513_v19, %v3493_v11  ;;  %v3682_v24 = vsel %vm3679_vm12, %v3681_v41, %v3677_v37  ;;  %vm3629_vm12 = vweird.f32 %v4999_v20 }
 0x33e   : > { %v5025_v61 = vmul.f32 %v3682_v24, %v3548_v23  ;;  %v3626_v40 = vsub.f32 1.0, %v3625_v58 }
 0x33f   : > { %v3529_v55 = vadd.f32 %v3521_v51, %v3152_v12 }
 0x340   : > { %v3755_v31 = vrot.slane %v5025_v61, 4  ;;  %v3627_v36 = vmul.f32 %v5009_v44, %v3626_v40 }
 0x341   : > { %3537 = vst.msk [vmem:[#allocation5 + $0x28] sm:$0xff] %vm581_vm1, %v3529_v55 }
 0x344   : > { %v5003_v14 = vpop.permute.xlu1 %3572 }
 0x345   : > { %4233 = vrcp.f32 %v5003_v14  ;;  %v5006_v34 = vpop.permute.xlu0 %3558  ;;  %v3650_v27 = vand.u32 2147483648, %v5003_v14  ;;  %vm3644_vm14 = vweird.f32 %v5003_v14  ;;  %v3648_v4 = vand.u32 2147483647, %v5003_v14 }
 0x346   : > { %4235 = vrcp.f32 %v5006_v34  ;;  %v3618_v7 = vand.u32 2147483647, %v5006_v34  ;;  %v3620_v8 = vand.u32 2147483648, %v5006_v34  ;;  %vm3614_vm3 = vweird.f32 %v5006_v34 }
 0x347   : > { %v3651_v19 = vor.u32 1.1754944e-38, %v3650_v27  ;;  %vm3649_vm6 = vcmp.eq.f32.partialorder %v3648_v4, 8.507059e+37 }
 0x348   : > { %vm3619_vm7 = vcmp.eq.f32.partialorder %v3618_v7, 8.507059e+37  ;;  %v3621_v1 = vor.u32 1.1754944e-38, %v3620_v8  ;;  %v3549_v11 = vld [vmem:[#allocation5 + $0x28] sm:$0xff] }
 0x34b   : > { %v5011_v30 = vpop.eup %4233 }
 0x34c   : > { %v5013_v5 = vpop.eup %4235  ;;  %v3640_v46 = vmul.f32 %v5011_v30, %v5003_v14  ;;  %v5017_v56 = vpop.permute.xlu1 %3579  ;;  %vm3645_vm13 = vweird.f32 %v5011_v30 }
 0x34d   : > { %v3610_v59 = vmul.f32 %v5013_v5, %v5006_v34  ;;  %4237 = vrcp.f32 %v5017_v56  ;;  %v5022_v47 = vpop.permute.xlu0 %3600  ;;  %vm3615_vm15 = vweird.f32 %v5013_v5  ;;  %vm5055_vm2 = vmor %vm3644_vm14, %vm3645_vm13  ;;  %v3663_v13 = vand.u32 2147483647, %v5017_v56 }
 0x34e   : > { %v3641_v35 = vsub.f32 1.0, %v3640_v46  ;;  %4239 = vrcp.f32 %v5022_v47  ;;  %vm5063_vm4 = vmor %vm3614_vm3, %vm3615_vm15  ;;  %v3710_v12 = vand.u32 2147483648, %v5022_v47  ;;  %v3708_v55 = vand.u32 2147483647, %v5022_v47 }
 0x34f   : > { %v3611_v49 = vsub.f32 1.0, %v3610_v59  ;;  %vm3704_vm9 = vweird.f32 %v5022_v47  ;;  %v5078_v34 = vadd.f32 %v5009_v44, %v3627_v36  ;;  %vm3659_vm10 = vweird.f32 %v5017_v56  ;;  %v3544_v59 = vld [vmem:[#allocation5] sm:$0xff] }
 0x350   : > { %v3642_v42 = vmul.f32 %v5011_v30, %v3641_v35  ;;  %v3711_v25 = vor.u32 1.1754944e-38, %v3710_v12  ;;  %v3665_v37 = vand.u32 2147483648, %v5017_v56  ;;  %vm3709_vm13 = vcmp.eq.f32.partialorder %v3708_v55, 8.507059e+37 }
 0x351   : > { %v3612_v45 = vmul.f32 %v5013_v5, %v3611_v49  ;;  %vm5094_vm15 = vcmp.eq.f32.partialorder %v3663_v13, 8.507059e+37 }
 0x352   : > { %v3643_v16 = vadd.f32 %v5011_v30, %v3642_v42  ;;  %v3550_v42 = vld [vmem:[#allocation5 + $0x30] sm:$0xff] }
 0x353   : > { %v5031_v21 = vpop.eup %4237  ;;  %v3613_v29 = vadd.f32 %v5013_v5, %v3612_v45 }
 0x354   : > { %v4240_v6 = vpop.eup %4239  ;;  %v3655_v2 = vmul.f32 %v5031_v21, %v5017_v56  ;;  %v5042_v57 = vpop.permute.xlu1 %3593  ;;  %v3647_v52 = vsel %vm5055_vm2, %v5011_v30, %v3643_v16  ;;  %vm3660_vm14 = vweird.f32 %v5031_v21 }
 0x355   : > { %v3700_v33 = vmul.f32 %v4240_v6, %v5022_v47  ;;  %v5048_v3 = vpop.permute.xlu0 %3607  ;;  %4241 = vrcp.f32 %v5042_v57  ;;  %v3617_v17 = vsel %vm5063_vm4, %v5013_v5, %v3613_v29  ;;  %vm3705_vm5 = vweird.f32 %v4240_v6  ;;  %vm5107_vm3 = vmor %vm3659_vm10, %vm3660_vm14 }
 0x356   : > { %v3656_v9 = vsub.f32 1.0, %v3655_v2  ;;  %4243 = vrcp.f32 %v5048_v3  ;;  %v3652_v18 = vsel %vm3649_vm6, %v3651_v19, %v3647_v52  ;;  %v3622_v32 = vsel %vm3619_vm7, %v3621_v1, %v3617_v17  ;;  %vm5082_vm11 = vmor %vm3704_vm9, %vm3705_vm5 }
 0x357   : > { %v3701_v10 = vsub.f32 1.0, %v3700_v33  ;;  %v3653_v54 = vmul.f32 %v3652_v18, %v3546_v15  ;;  %v3623_v35 = vmul.f32 %v3622_v32, %v3544_v59  ;;  %v3693_v45 = vand.u32 2147483647, %v5042_v57  ;;  %vm5127_vm9 = vmor %vm3629_vm12, %vm3630_vm8 }
 0x358   : > { %v3657_v14 = vmul.f32 %v5031_v21, %v3656_v9  ;;  %v3695_v39 = vand.u32 2147483648, %v5042_v57  ;;  %v3666_v33 = vor.u32 1.1754944e-38, %v3665_v37  ;;  %vm3689_vm4 = vweird.f32 %v5042_v57 }
 0x359   : > { %v3702_v51 = vmul.f32 %v4240_v6, %v3701_v10  ;;  %v3729_v8 = vrot.slane %v3653_v54, 4  ;;  %v3731_v56 = vrot.slane %v3623_v35, 4  ;;  %vm3694_vm6 = vcmp.eq.f32.partialorder %v3693_v45, 8.507059e+37 }
 0x35a   : > { %v3658_v48 = vadd.f32 %v5031_v21, %v3657_v14  ;;  %v3696_v10 = vor.u32 1.1754944e-38, %v3695_v39  ;;  %v3725_v52 = vand.u32 2147483648, %v5048_v3  ;;  %vm3719_vm10 = vweird.f32 %v5048_v3  ;;  %v3547_v14 = vld [vmem:[#allocation5 + $0x18] sm:$0xff] }
 0x35b   : > { %v3703_v22 = vadd.f32 %v4240_v6, %v3702_v51  ;;  %v4242_v26 = vpop.eup %4241  ;;  %v3723_v17 = vand.u32 2147483647, %v5048_v3  ;;  %v3633_v51 = vand.u32 2147483647, %v4999_v20  ;;  %v3730_v55 = vsel %vm461_vm0, %v3729_v8, %v3623_v35 }
 0x35c   : > { %v3685_v30 = vmul.f32 %v4242_v26, %v5042_v57  ;;  %v3507_v5 = vpop.permute.xlu1 %3506  ;;  %v5091_v46 = vpop.eup %4243  ;;  %vm3690_vm2 = vweird.f32 %v4242_v26  ;;  %v3662_v36 = vsel %vm5107_vm3, %v5031_v21, %v3658_v48  ;;  %v3632_v18 = vsel %vm5127_vm9, %v5009_v44, %v5078_v34 }
 0x35d   : > { %v3707_v41 = vsel %vm5082_vm11, %v4240_v6, %v3703_v22  ;;  %v3465_v24 = vpop.permute.xlu0 %3464  ;;  %v3715_v49 = vmul.f32 %v5091_v46, %v5048_v3  ;;  %v3523_v40 = vmul.f32 %v3515_v50, %v3507_v5  ;;  %vm3691_vm5 = vmor %vm3689_vm4, %vm3690_vm2  ;;  %vm3720_vm7 = vweird.f32 %v5091_v46 }
 0x35e   : > { %v3712_v23 = vsel %vm3709_vm13, %v3711_v25, %v3707_v41  ;;  %v3686_v58 = vsub.f32 1.0, %v3685_v30  ;;  %v3517_v6 = vmul.f32 %v3509_v53, %v3465_v24  ;;  %v3667_v19 = vsel %vm5094_vm15, %v3666_v33, %v3662_v36  ;;  %vm5139_vm8 = vmor %vm3719_vm10, %vm3720_vm7 }
 0x35f   : > { %v3713_v16 = vmul.f32 %v3712_v23, %v3550_v42  ;;  %v3716_v2 = vsub.f32 1.0, %v3715_v49  ;;  %v3531_v4 = vadd.f32 %v3523_v40, %v5033_v60  ;;  %v3668_v32 = vmul.f32 %v3667_v19, %v3547_v14 }
 0x360   : > { %v3687_v27 = vmul.f32 %v4242_v26, %v3686_v58  ;;  %v3525_v7 = vadd.f32 %v3517_v6, %v4988_v38  ;;  %v3726_v25 = vor.u32 1.1754944e-38, %v3725_v52  ;;  %v3636_v15 = vor.u32 1.1754944e-38, %v3635_v62 }
 0x361   : > { %v3717_v9 = vmul.f32 %v5091_v46, %v3716_v2  ;;  %3539 = vst.msk [vmem:[#allocation5 + $0x38] sm:$0xff] %vm581_vm1, %v3531_v4  ;;  %v3753_v57 = vrot.slane %v3713_v16, 4  ;;  %v3756_v3 = vsel %vm461_vm0, %v3713_v16, %v3755_v31  ;;  %v3736_v44 = vperm.slane %v3730_v55, %v4422_v43 }
 0x362   : > { %v3688_v28 = vadd.f32 %v4242_v26, %v3687_v27  ;;  %3533 = vst.msk [vmem:[#allocation5 + $0x8] sm:$0xff] %vm581_vm1, %v3525_v7  ;;  %vm3724_vm11 = vcmp.eq.f32.partialorder %v3723_v17, 8.507059e+37  ;;  %vm3634_vm12 = vcmp.eq.f32.partialorder %v3633_v51, 8.507059e+37  ;;  %v3764_v31 = vperm.slane %v3756_v3, %v4422_v43 }
 0x363   : > { %v3718_v38 = vadd.f32 %v5091_v46, %v3717_v9  ;;  %v3754_v0 = vsel %vm461_vm0, %v3753_v57, %v5025_v61  ;;  %v3637_v30 = vsel %vm3634_vm12, %v3636_v15, %v3632_v18  ;;  %v3741_v24 = vrot.slane %v3668_v32, 4 }
 0x364   : > { %v3692_v60 = vsel %vm3691_vm5, %v4242_v26, %v3688_v28  ;;  %v3732_v26 = vsel %vm461_vm0, %v3653_v54, %v3731_v56  ;;  %v3760_v5 = vperm.slane %v3754_v0, %v4422_v43  ;;  %v3779_v20 = vrot.slane %v3736_v44, 4 }
 0x365   : > { %v3697_v12 = vsel %vm3694_vm6, %v3696_v10, %v3692_v60  ;;  %v3722_v22 = vsel %vm5139_vm8, %v5091_v46, %v3718_v38  ;;  %v3740_v50 = vperm.slane %v3732_v26, %v4422_v43  ;;  %v3815_v59 = vrot.slane %v3764_v31, 4 }
 0x366   : > { %v3698_v1 = vmul.f32 %v3697_v12, %v3549_v11  ;;  %v3727_v37 = vsel %vm3724_vm11, %v3726_v25, %v3722_v22  ;;  %v3803_v58 = vrot.slane %v3760_v5, 4  ;;  %vm3982_vm13 = vcmask 130048  }
 0x367   : > { %v3791_v48 = vrot.slane %v3740_v50, 4  ;;  %vm3984_vm14 = vcmask 195584   ;;  %vm3986_vm15 = vcmask 261120   ;;  %vm3988_vm2 = vcmask 326656  }
 0x368   : > { %v3767_v34 = vrot.slane %v3698_v1, 4  ;;  %v3551_v41 = vld [vmem:[#allocation5 + $0x38] sm:$0xff]  ;;  %vm3992_vm3 = vcmask 457728  }
 0x369   : > { %v3545_v53 = vld [vmem:[#allocation5 + $0x8] sm:$0xff]  ;;  %v3728_v61 = vmul.f32 %v3727_v37, %v3551_v41 }
 0x36a   : > { %v3638_v46 = vmul.f32 %v3637_v30, %v3545_v53 }
 0x36b   : > { %v3765_v62 = vrot.slane %v3728_v61, 4  ;;  %v3768_v54 = vsel %vm461_vm0, %v3728_v61, %v3767_v34 }
 0x36c   : > { %v3742_v47 = vsel %vm461_vm0, %v3741_v24, %v3638_v46  ;;  %v3743_v23 = vrot.slane %v3638_v46, 4  ;;  %v3776_v35 = vperm.slane %v3768_v54, %v4422_v43 }
 0x36d   : > { %v3748_v49 = vperm.slane %v3742_v47, %v4422_v43  ;;  %v3766_v42 = vsel %vm461_vm0, %v3765_v62, %v3698_v1 }
 0x36e   : > { %v3744_v45 = vsel %vm461_vm0, %v3668_v32, %v3743_v23  ;;  %v3772_v39 = vperm.slane %v3766_v42, %v4422_v43  ;;  %v3813_v40 = vrot.slane %v3776_v35, 4  ;;  %v3816_v6 = vsel %vm461_vm0, %v3776_v35, %v3815_v59 }
 0x36f   : > { %v3752_v16 = vperm.slane %v3744_v45, %v4422_v43  ;;  %v3777_v27 = vrot.slane %v3748_v49, 4  ;;  %v3780_v2 = vsel %vm461_vm0, %v3748_v49, %v3779_v20  ;;  %v3824_v29 = vperm.slane %v3816_v6, %v4455_v63 }
 0x370   : > { %v3788_v33 = vperm.slane %v3780_v2, %v4455_v63  ;;  %v3801_v4 = vrot.slane %v3772_v39, 4  ;;  %v3804_v7 = vsel %vm461_vm0, %v3772_v39, %v3803_v58  ;;  %v3814_v8 = vsel %vm461_vm0, %v3813_v40, %v3764_v31 }
 0x371   : > { %v3778_v36 = vsel %vm461_vm0, %v3777_v27, %v3736_v44  ;;  %v3789_v28 = vrot.slane %v3752_v16, 4  ;;  %v3792_v9 = vsel %vm461_vm0, %v3752_v16, %v3791_v48  ;;  %v3812_v56 = vperm.slane %v3804_v7, %v4455_v63 }
 0x372   : > { %v3784_v10 = vperm.slane %v3778_v36, %v4455_v63  ;;  %v3800_v57 = vperm.slane %v3792_v9, %v4455_v63  ;;  %v3802_v60 = vsel %vm461_vm0, %v3801_v4, %v3760_v5  ;;  %v3820_v38 = vperm.slane %v3814_v8, %v4455_v63 }
 0x373   : > { %v3790_v52 = vsel %vm461_vm0, %v3789_v28, %v3740_v50  ;;  %v3808_v21 = vperm.slane %v3802_v60, %v4455_v63  ;;  %v3829_v19 = vrot.slane %v3812_v56, 4  ;;  %v3831_v11 = vrot.slane %v3788_v33, 4 }
 0x374   : > { %v3796_v12 = vperm.slane %v3790_v52, %v4455_v63  ;;  %v3827_v17 = vrot.slane %v3784_v10, 4  ;;  %v3833_v51 = vrot.slane %v3820_v38, 4  ;;  %v3837_v55 = vrot.slane %v3824_v29, 4 }
 0x375   : > { %v3825_v1 = vrot.slane %v3808_v21, 4  ;;  %v3830_v13 = vsel %vm461_vm0, %v3829_v19, %v3788_v33  ;;  %v3832_v18 = vsel %vm461_vm0, %v3812_v56, %v3831_v11  ;;  %v3839_v14 = vrot.slane %v3800_v57, 4 }
 0x376   : > { %v3828_v3 = vsel %vm461_vm0, %v3808_v21, %v3827_v17  ;;  %v3834_v22 = vsel %vm461_vm0, %v3833_v51, %v3796_v12  ;;  %v3835_v26 = vrot.slane %v3796_v12, 4  ;;  %v3838_v32 = vsel %vm461_vm0, %v3837_v55, %v3800_v57 }
 0x377   : > { %v3826_v0 = vsel %vm461_vm0, %v3825_v1, %v3784_v10  ;;  %v3840_v25 = vsel %vm461_vm0, %v3824_v29, %v3839_v14  ;;  %v3841_v15 = vrot.slane %v3830_v13, 4  ;;  %v3853_v44 = vrot.slane %v3832_v18, 4 }
 0x378   : > { %v3836_v34 = vsel %vm461_vm0, %v3820_v38, %v3835_v26  ;;  %v3843_v31 = vrot.slane %v3826_v0, 4  ;;  %v3855_v37 = vrot.slane %v3828_v3, 4  ;;  %v3865_v41 = vrot.slane %v3838_v32, 4 }
 0x379   : > { %v3842_v30 = vsel %vm461_vm0, %v3841_v15, %v3826_v0  ;;  %v3854_v50 = vsel %vm461_vm0, %v3853_v44, %v3828_v3  ;;  %v3877_v5 = vrot.slane %v3840_v25, 4  ;;  %v3879_v53 = vrot.slane %v3836_v34, 4 }
 0x37a   : > { %v3848_v61 = vperm.slane %v3842_v30, %v4422_v43  ;;  %v3860_v24 = vperm.slane %v3854_v50, %v4422_v43  ;;  %v3866_v46 = vsel %vm461_vm0, %v3865_v41, %v3834_v22  ;;  %v3844_v20 = vsel %vm461_vm0, %v3830_v13, %v3843_v31 }
 0x37b   : > { %v3872_v62 = vperm.slane %v3866_v46, %v4422_v43  ;;  %v3878_v54 = vsel %vm461_vm0, %v3877_v5, %v3836_v34  ;;  %v3852_v59 = vperm.slane %v3844_v20, %v4422_v43  ;;  %v3856_v47 = vsel %vm461_vm0, %v3832_v18, %v3855_v37 }
 0x37c   : > { %v3884_v23 = vperm.slane %v3878_v54, %v4422_v43  ;;  %v3891_v35 = vrot.slane %v3848_v61, 4  ;;  %v3889_v48 = vrot.slane %v3860_v24, 4  ;;  %v3864_v58 = vperm.slane %v3856_v47, %v4422_v43 }
 0x37d   : > { %v3915_v49 = vrot.slane %v3872_v62, 4  ;;  %v3867_v42 = vrot.slane %v3834_v22, 4  ;;  %v3880_v45 = vsel %vm461_vm0, %v3840_v25, %v3879_v53  ;;  %v3903_v39 = vrot.slane %v3852_v59, 4 }
 0x37e   : > { %v3892_v40 = vsel %vm461_vm0, %v3860_v24, %v3891_v35  ;;  %v3890_v6 = vsel %vm461_vm0, %v3889_v48, %v3848_v61  ;;  %v3913_v16 = vrot.slane %v3884_v23, 4  ;;  %v3888_v27 = vperm.slane %v3880_v45, %v4422_v43 }
 0x37f   : > { %v3900_v2 = vperm.slane %v3892_v40, %v4455_v63  ;;  %v3916_v29 = vsel %vm461_vm0, %v3884_v23, %v3915_v49  ;;  %v3896_v33 = vperm.slane %v3890_v6, %v4455_v63  ;;  %v3868_v4 = vsel %vm461_vm0, %v3838_v32, %v3867_v42 }
 0x380   : > { %v3924_v7 = vperm.slane %v3916_v29, %v4455_v63  ;;  %v3914_v8 = vsel %vm461_vm0, %v3913_v16, %v3872_v62  ;;  %v3876_v36 = vperm.slane %v3868_v4, %v4422_v43  ;;  %v3901_v28 = vrot.slane %v3864_v58, 4 }
 0x381   : > { %v3920_v9 = vperm.slane %v3914_v8, %v4455_v63  ;;  %v3939_v56 = vrot.slane %v3896_v33, 4  ;;  %v3943_v10 = vrot.slane %v3900_v2, 4  ;;  %v3925_v57 = vrot.slane %v3888_v27, 4 }
 0x382   : > { %v3941_v60 = vrot.slane %v3924_v7, 4  ;;  %v3902_v38 = vsel %vm461_vm0, %v3901_v28, %v3852_v59  ;;  %v3927_v52 = vrot.slane %v3876_v36, 4  ;;  %v3904_v12 = vsel %vm461_vm0, %v3864_v58, %v3903_v39 }
 0x383   : > { %v3937_v21 = vrot.slane %v3920_v9, 4  ;;  %v3940_v19 = vsel %vm461_vm0, %v3920_v9, %v3939_v56  ;;  %v3944_v11 = vsel %vm461_vm0, %v3924_v7, %v3943_v10  ;;  %v3908_v43 = vperm.slane %v3902_v38, %v4455_v63 }
 0x384   : > { %v3942_v17 = vsel %vm461_vm0, %v3941_v60, %v3900_v2  ;;  %3954 = vrot.lane.b32.xlu0 %v3940_v19, %s4289_s27  ;;  %3962 = vrot.lane.b32.xlu1 %v3944_v11, %s4290_s28  ;;  %v3926_v51 = vsel %vm461_vm0, %v3925_v57, %v3876_v36  ;;  %v3928_v1 = vsel %vm461_vm0, %v3888_v27, %v3927_v52 }
 0x385   : > { %3958 = vrot.lane.b32.xlu2 %v3942_v17, %s4291_s29  ;;  %v3932_v55 = vperm.slane %v3926_v51, %v4455_v63  ;;  %v3938_v13 = vsel %vm461_vm0, %v3937_v21, %v3896_v33  ;;  %v3936_v18 = vperm.slane %v3928_v1, %v4455_v63  ;;  %v3912_v3 = vperm.slane %v3904_v12, %v4455_v63 }
 0x386   : > { %v3947_v22 = vrot.slane %v3908_v43, 4 }
 0x387   : > { %v3945_v14 = vrot.slane %v3932_v55, 4  ;;  %v3949_v26 = vrot.slane %v3936_v18, 4  ;;  %v3951_v15 = vrot.slane %v3912_v3, 4 }
 0x388   : > { %v3948_v25 = vsel %vm461_vm0, %v3932_v55, %v3947_v22 }
 0x389   : > { %v3946_v32 = vsel %vm461_vm0, %v3945_v14, %v3908_v43  ;;  %v3950_v0 = vsel %vm461_vm0, %v3949_v26, %v3912_v3  ;;  %v3952_v44 = vsel %vm461_vm0, %v3936_v18, %v3951_v15  ;;  %vm3990_vm0 = vcmask 392192  }
 0x38c   : > { %3966 = vrot.lane.b32.xlu0 %v3946_v32, %s4292_s30  ;;  %3974 = vrot.lane.b32.xlu1 %v3950_v0, %s4293_s4 }
 0x38d   : > { %3970 = vrot.lane.b32.xlu2 %v3948_v25, %s4294_s5 }
 0x394   : > { %3978 = vrot.lane.b32.xlu0 %v3952_v44, %s4295_s6 }
 0x3df   : > { %v3959_v34 = vpop.permute.xlu2 %3958 }
 0x3e7   : > { %v3971_v53 = vpop.permute.xlu2 %3970 }
 0x3f6   : > { %v3955_v63 = vpop.permute.xlu0 %3954  ;;  %v3963_v37 = vpop.permute.xlu1 %3962 }
 0x3f7   : > { %v3981_v31 = vsel %vm581_vm1, %v3938_v13, %v3955_v63  ;;  %vm3994_vm1 = vcmask 523264  }
 0x3f8   : > { %v3983_v41 = vsel %vm3982_vm13, %v3981_v31, %v3959_v34 }
 0x3f9   : > { %v3985_v50 = vsel %vm3984_vm14, %v3983_v41, %v3963_v37 }
 0x3fe   : > { %v3967_v30 = vpop.permute.xlu0 %3966  ;;  %v3975_v61 = vpop.permute.xlu1 %3974 }
 0x3ff   : > { %v3987_v5 = vsel %vm3986_vm15, %v3985_v50, %v3967_v30 }
 0x400   : > { %v3989_v24 = vsel %vm3988_vm2, %v3987_v5, %v3971_v53 }
 0x401   : > { %v3991_v46 = vsel %vm3990_vm0, %v3989_v24, %v3975_v61 }
 0x406   : > { %v3979_v20 = vpop.permute.xlu0 %3978 }
 0x407   : > { %v3993_v62 = vsel %vm3992_vm3, %v3991_v46, %v3979_v20 }
 0x408   : > { %3995 = vst.msk [vmem:[%s447_s10] sm:$0xff] %vm3994_vm1, %v3993_v62 }
 0x409 PF: > { %s13_s16 = sadd.s32 1, %s4283_s16   ;;  %s5274_s12 = smov %s4271_s13 }
 0x40a   : > { %p10_p10 = scmp.ge.s32.totalorder %s13_s16, 4   ;;  %s5275_s13 = smov %s4355_s21 }
 0x40b   : > { %s5276_s14 = smov %s4279_s15  ;;  %s5277_s15 = smov %s5279_s17 }
 0x40c   :  { %12 = sbr.rel (!%p10_p10) target bundleno = 3 (0x3), region = 205 }

</bundles_post_ra>
